<compile_context>
chip_gen: v6e
topology: v6e:2x2x1
jax: 0.10.0
libtpu: 0.0.40
codegen_flags: <defaults>
</compile_context>

<pallas_src>
import numpy as np
import jax
import jax.numpy as jnp
from jax import lax
from jax.experimental import pallas as pl
from jax.experimental.pallas import tpu as pltpu

SLOPE = 0.001  # LeakyReLU negative slope


def _round_up(v, m):
    return (v + m - 1) // m * m


def _make_kernel(*, N, H, W, Hp, Wp, TH, L1, L2, L3, o0, o1, o2, compute_dtype):
    """Fused conv1->lrelu->conv2->lrelu->conv3 over one row tile."""
    Lm = (TH + 12) * Wp           # flat length of one (haloed) input tile
    inv_wp = 1.0 / float(Wp)

    def lrelu(v):
        return jnp.where(v >= 0.0, v, v * SLOPE)

    def conv(a, w_ref, k, l_out, base):
        """k x k 'same' conv as k row-shift (kh) matmuls accumulated in f32.

        `a` is (Cin_pad, L_in) spanning exactly [out_start - reach, ...)
        (base shifts the window for the raw input tile).  Each kh builds a
        (k*Cin_pad, l_out) slab (kw-concat, sublane aligned) and contributes
        one MXU matmul to the accumulator -> no k*k im2col materialization.
        """
        a = a.astype(compute_dtype)
        acc = None
        for kh in range(k):
            row = base + kh * Wp
            slab = jnp.concatenate(
                [a[:, row + kw: row + kw + l_out] for kw in range(k)], axis=0)
            part = jnp.dot(w_ref[kh], slab, preferred_element_type=jnp.float32)
            acc = part if acc is None else acc + part
        return acc

    def kernel(x_ref, w1_ref, b1_ref, w2_ref, b2_ref, w3_ref, b3_ref, o_ref):
        t = pl.program_id(0)
        x = x_ref[0]                                   # (C0p, Lm)

        # ---- interior masks generated in-kernel (no mask DMA streams) ----
        j = lax.broadcasted_iota(jnp.int32, (1, Lm), 1)
        jf = j.astype(jnp.float32)
        # floor((j + 0.5) / Wp): exact local row recovery for Lm < ~2e6.
        rloc = jnp.floor((jf + 0.5) * inv_wp).astype(jnp.int32)
        col = j - rloc * Wp
        trow = rloc + (t * TH - 6)                     # row in batch-folded canvas
        # Batch is folded on rows; N is a small static constant -> unrolled OR.
        row_ok = (trow >= 2) & (trow < 2 + H)
        for n in range(1, N):
            row_ok = row_ok | ((trow >= n * Hp + 2) & (trow < n * Hp + 2 + H))
        col_ok = (col >= 2) & (col < 2 + W)
        mask = jnp.where(row_ok & col_ok, 1.0, 0.0).astype(jnp.float32)
        m1 = mask[:, o1:o1 + L1]
        m2 = mask[:, o2:o2 + L2]

        # ---- fused convs; masks re-establish exact zero padding ----
        a1 = lrelu(conv(x, w1_ref, 5, L1, o0) + b1_ref[...]) * m1     # (24,  L1)
        a2 = lrelu(conv(a1, w2_ref, 3, L2, 0) + b2_ref[...]) * m2     # (16,  L2)
        y = conv(a2, w3_ref, 5, L3, 0) + b3_ref[...]                  # (C3p, L3)
        o_ref[0] = y.astype(o_ref.dtype)

    return kernel


def network_forward(params, x_nchw, *, row_tile=64, compute_dtype=jnp.float32,
                    vmem_limit_bytes=48 * 1024 * 1024):
    N, C, H, W = x_nchw.shape
    Hp = H + 4
    # Lane alignment gate: pad canvas width to a 128 multiple only when W is
    # large enough that the rounding waste is small (review: W >= ~60).
    Wp = _round_up(W + 4, 128) if (W + 4) >= 64 else (W + 4)

    C0p = _round_up(C, 8)          # conv1 input channels (sublane aligned)
    C2p = _round_up(12, 8)         # conv2 out / conv3 in channels -> 16
    C3p = _round_up(C, 8)          # conv3 output channels (sublane-dense store)

    rows_tot = N * Hp              # batch folded along the row axis
    T = max(1, -(-rows_tot // row_tile))
    if T == 1 and rows_tot >= 2:
        T = 2                      # >= 2 grid steps: pipeline + megacore on v7x
    TH = -(-rows_tot // T)
    rows_pad = T * TH

    R5, R3 = 2 * Wp + 2, Wp + 1    # flat reach of 5x5 / 3x3 tap sets
    L3 = TH * Wp                   # output band per tile (TH rows x Wp cols)
    L2 = L3 + 2 * R5
    L1 = L2 + 2 * R3
    o0, o1, o2 = Wp - 5, 3 * Wp - 3, 4 * Wp - 2     # static in-tile offsets
    Lm = (TH + 12) * Wp
    assert Lm < 2_000_000          # float row-recovery exactness bound

    w1, b1 = params["conv1"]       # HWIO weights, 1-D biases
    w2, b2 = params["conv2"]
    w3, b3 = params["conv3"]

    def prep_w(w, cin_p, cout_p):
        kh, kw, cin, cout = w.shape
        wpad = jnp.pad(w, ((0, 0), (0, 0), (0, cin_p - cin), (0, cout_p - cout)))
        # (KH, Cout_pad, KW*Cin_pad): rows match the kernel's kw-major concat.
        return (jnp.transpose(wpad, (0, 3, 1, 2))
                .reshape(kh, cout_p, kw * cin_p).astype(compute_dtype))

    def prep_b(b, cout_p):
        return jnp.pad(b, (0, cout_p - b.shape[0])).reshape(cout_p, 1).astype(jnp.float32)

    w1m, b1c = prep_w(w1, C0p, 24), prep_b(b1, 24)
    w2m, b2c = prep_w(w2, 24, C2p), prep_b(b2, C2p)
    w3m, b3c = prep_w(w3, C2p, C3p), prep_b(b3, C3p)

    # Batch-folded "tall canvas": channels first, N padded images stacked on rows.
    xp = jnp.pad(x_nchw, ((0, 0), (0, C0p - C), (2, 2), (2, Wp - W - 2)))
    tall = jnp.transpose(xp, (1, 0, 2, 3)).reshape(C0p, rows_tot, Wp)
    tall = jnp.pad(tall, ((0, 0), (6, 6 + rows_pad - rows_tot), (0, 0)))
    # Overlapping row tiles (6-row halo each side), flattened per tile.
    ridx = np.arange(T)[:, None] * TH + np.arange(TH + 12)[None, :]
    x_tiles = jnp.transpose(tall[:, ridx, :], (1, 0, 2, 3)).reshape(T, C0p, Lm)
    x_tiles = x_tiles.astype(jnp.float32)

    kernel = _make_kernel(N=N, H=H, W=W, Hp=Hp, Wp=Wp, TH=TH,
                          L1=L1, L2=L2, L3=L3, o0=o0, o1=o1, o2=o2,
                          compute_dtype=compute_dtype)

    out = pl.pallas_call(
        kernel,
        out_shape=jax.ShapeDtypeStruct((T, C3p, L3), jnp.float32),
        grid=(T,),
        in_specs=[
            pl.BlockSpec((1, C0p, Lm), lambda t: (t, 0, 0)),       # input tile
            pl.BlockSpec((5, 24, 5 * C0p), lambda t: (0, 0, 0)),   # w1 (resident)
            pl.BlockSpec((24, 1), lambda t: (0, 0)),
            pl.BlockSpec((3, C2p, 3 * 24), lambda t: (0, 0, 0)),   # w2
            pl.BlockSpec((C2p, 1), lambda t: (0, 0)),
            pl.BlockSpec((5, C3p, 5 * C2p), lambda t: (0, 0, 0)),  # w3
            pl.BlockSpec((C3p, 1), lambda t: (0, 0)),
        ],
        out_specs=pl.BlockSpec((1, C3p, L3), lambda t: (t, 0, 0)),
        compiler_params=pltpu.CompilerParams(
            dimension_semantics=("parallel",),   # row tiles shard across TCs
            vmem_limit_bytes=vmem_limit_bytes,   # sized for v7x's 64 MiB VMEM
        ),
    )(x_tiles, w1m, b1c, w2m, b2c, w3m, b3c)

    # Reassemble the tall canvas rows and crop channels + spatial interior.
    out = out.reshape(T, C3p, TH, Wp)
    out = jnp.transpose(out, (1, 0, 2, 3)).reshape(C3p, rows_pad, Wp)
    out = out[:, :rows_tot, :].reshape(C3p, N, Hp, Wp)
    out = jnp.transpose(out, (1, 0, 2, 3))
    return out[:, :C, 2:2 + H, 2:2 + W]


def init_params(key, n_chan):
    """Deterministic init, same shapes / fan-in bounds as PyTorch defaults."""

    def conv_init(k, kh, kw, cin, cout):
        kw_key, kb_key = jax.random.split(k)
        bound = 1.0 / np.sqrt(cin * kh * kw)
        w = jax.random.uniform(kw_key, (kh, kw, cin, cout), jnp.float32,
                               -bound, bound)
        b = jax.random.uniform(kb_key, (cout,), jnp.float32, -bound, bound)
        return w, b

    k1, k2, k3 = jax.random.split(key, 3)
    return {
        "conv1": conv_init(k1, 5, 5, n_chan, 24),
        "conv2": conv_init(k2, 3, 3, 24, 12),
        "conv3": conv_init(k3, 5, 5, 12, n_chan),
    }


def network_forward_ref(params, x_nchw):
    """Pure-JAX reference (XLA conv) for correctness checking."""
    x = jnp.transpose(x_nchw, (0, 2, 3, 1))
    dn = ("NHWC", "HWIO", "NHWC")

    def conv(x, w, b):
        y = jax.lax.conv_general_dilated(x, w, (1, 1), "SAME",
                                         dimension_numbers=dn,
                                         precision=jax.lax.Precision.HIGHEST)
        return y + b.reshape(1, 1, 1, -1)

    lrelu = lambda v: jnp.where(v >= 0.0, v, v * SLOPE)
    w1, b1 = params["conv1"]
    w2, b2 = params["conv2"]
    w3, b3 = params["conv3"]
    x = lrelu(conv(x, w1, b1))
    x = lrelu(conv(x, w2, b2))
    x = conv(x, w3, b3)
    return jnp.transpose(x, (0, 3, 1, 2))


if __name__ == "__main__":
    key = jax.random.PRNGKey(0)
    pkey, xkey = jax.random.split(key)

    n_chan, N, H, W = 4, 2, 16, 16
    params = init_params(pkey, n_chan)
    x = jax.random.normal(xkey, (N, n_chan, H, W), dtype=jnp.float32)

    out = jax.jit(network_forward)(params, x)
    out = jax.block_until_ready(out)

    ref = jax.block_until_ready(network_forward_ref(params, x))
    assert out.shape == (N, n_chan, H, W)
    np.testing.assert_allclose(np.asarray(out), np.asarray(ref),
                               rtol=5e-4, atol=5e-4)

    print("KERNEL_OK")
</pallas_src>

<mosaic_0001>
module attributes {stable_mosaic.version = 11 : i64} {
  func.func @kernel(%arg0: i32, %arg1: memref<1x8x640xf32, #tpu.memory_space<vmem>>, %arg2: memref<5x24x40xf32, #tpu.memory_space<vmem>>, %arg3: memref<24x1xf32, #tpu.memory_space<vmem>>, %arg4: memref<3x16x72xf32, #tpu.memory_space<vmem>>, %arg5: memref<16x1xf32, #tpu.memory_space<vmem>>, %arg6: memref<5x8x80xf32, #tpu.memory_space<vmem>>, %arg7: memref<8x1xf32, #tpu.memory_space<vmem>>, %arg8: memref<1x8x400xf32, #tpu.memory_space<vmem>>) attributes {dimension_semantics = [#tpu.dimension_semantics<parallel>], iteration_bounds = array<i64: 2>, scalar_prefetch = 0 : i64, scratch_operands = 0 : i64, tpu.core_type = #tpu.core_type<tc>, window_params = [{transform_indices = @transform_0, window_bounds = array<i64: 1, 8, 640>}, {pipeline_mode = #tpu.pipeline_mode<synchronous>, transform_indices = @transform_1, window_bounds = array<i64: 5, 24, 40>}, {pipeline_mode = #tpu.pipeline_mode<synchronous>, transform_indices = @transform_2, window_bounds = array<i64: 24, 1>}, {pipeline_mode = #tpu.pipeline_mode<synchronous>, transform_indices = @transform_3, window_bounds = array<i64: 3, 16, 72>}, {pipeline_mode = #tpu.pipeline_mode<synchronous>, transform_indices = @transform_4, window_bounds = array<i64: 16, 1>}, {pipeline_mode = #tpu.pipeline_mode<synchronous>, transform_indices = @transform_5, window_bounds = array<i64: 5, 8, 80>}, {pipeline_mode = #tpu.pipeline_mode<synchronous>, transform_indices = @transform_6, window_bounds = array<i64: 8, 1>}, {transform_indices = @transform_7, window_bounds = array<i64: 1, 8, 400>}]} {
    %c0 = arith.constant 0 : index
    %c0_0 = arith.constant 0 : index
    %c0_1 = arith.constant 0 : index
    %0 = vector.load %arg1[%c0, %c0_0, %c0_1] : memref<1x8x640xf32, #tpu.memory_space<vmem>>, vector<1x8x640xf32>
    %1 = vector.shape_cast %0 : vector<1x8x640xf32> to vector<8x640xf32>
    %2 = tpu.iota {dimensions = array<i32: 1>} : vector<1x640xi32>
    %3 = arith.sitofp %2 : vector<1x640xi32> to vector<1x640xf32>
    %cst = arith.constant 5.000000e-01 : f32
    %4 = vector.broadcast %cst : f32 to vector<1x640xf32>
    %5 = arith.addf %3, %4 : vector<1x640xf32>
    %cst_2 = arith.constant 5.000000e-02 : f32
    %6 = vector.broadcast %cst_2 : f32 to vector<1x640xf32>
    %7 = arith.mulf %5, %6 : vector<1x640xf32>
    %8 = math.floor %7 : vector<1x640xf32>
    %9 = arith.fptosi %8 : vector<1x640xf32> to vector<1x640xi32>
    %c20_i32 = arith.constant 20 : i32
    %10 = vector.broadcast %c20_i32 : i32 to vector<1x640xi32>
    %11 = arith.muli %9, %10 : vector<1x640xi32>
    %12 = arith.subi %2, %11 : vector<1x640xi32>
    %c20_i32_3 = arith.constant 20 : i32
    %13 = arith.muli %arg0, %c20_i32_3 : i32
    %c6_i32 = arith.constant 6 : i32
    %14 = arith.subi %13, %c6_i32 : i32
    %15 = vector.broadcast %14 : i32 to vector<1x640xi32>
    %16 = arith.addi %9, %15 : vector<1x640xi32>
    %c2_i32 = arith.constant 2 : i32
    %17 = vector.broadcast %c2_i32 : i32 to vector<1x640xi32>
    %18 = arith.cmpi sge, %16, %17 : vector<1x640xi32>
    %c18_i32 = arith.constant 18 : i32
    %19 = vector.broadcast %c18_i32 : i32 to vector<1x640xi32>
    %20 = arith.cmpi slt, %16, %19 : vector<1x640xi32>
    %21 = arith.andi %18, %20 : vector<1x640xi1>
    %c22_i32 = arith.constant 22 : i32
    %22 = vector.broadcast %c22_i32 : i32 to vector<1x640xi32>
    %23 = arith.cmpi sge, %16, %22 : vector<1x640xi32>
    %c38_i32 = arith.constant 38 : i32
    %24 = vector.broadcast %c38_i32 : i32 to vector<1x640xi32>
    %25 = arith.cmpi slt, %16, %24 : vector<1x640xi32>
    %26 = arith.andi %23, %25 : vector<1x640xi1>
    %27 = arith.ori %21, %26 : vector<1x640xi1>
    %c2_i32_4 = arith.constant 2 : i32
    %28 = vector.broadcast %c2_i32_4 : i32 to vector<1x640xi32>
    %29 = arith.cmpi sge, %12, %28 : vector<1x640xi32>
    %c18_i32_5 = arith.constant 18 : i32
    %30 = vector.broadcast %c18_i32_5 : i32 to vector<1x640xi32>
    %31 = arith.cmpi slt, %12, %30 : vector<1x640xi32>
    %32 = arith.andi %29, %31 : vector<1x640xi1>
    %33 = arith.andi %27, %32 : vector<1x640xi1>
    %cst_6 = arith.constant 1.000000e+00 : f32
    %cst_7 = arith.constant 0.000000e+00 : f32
    %34 = vector.broadcast %cst_6 : f32 to vector<1x640xf32>
    %35 = vector.broadcast %cst_7 : f32 to vector<1x640xf32>
    %36 = arith.select %33, %34, %35 : vector<1x640xi1>, vector<1x640xf32>
    %37 = vector.extract_strided_slice %36 {offsets = [0, 57], sizes = [1, 526], strides = [1, 1]} : vector<1x640xf32> to vector<1x526xf32>
    %38 = vector.extract_strided_slice %36 {offsets = [0, 78], sizes = [1, 484], strides = [1, 1]} : vector<1x640xf32> to vector<1x484xf32>
    %39 = vector.extract_strided_slice %1 {offsets = [0, 15], sizes = [8, 526], strides = [1, 1]} : vector<8x640xf32> to vector<8x526xf32>
    %40 = vector.extract_strided_slice %1 {offsets = [0, 16], sizes = [8, 526], strides = [1, 1]} : vector<8x640xf32> to vector<8x526xf32>
    %41 = vector.extract_strided_slice %1 {offsets = [0, 17], sizes = [8, 526], strides = [1, 1]} : vector<8x640xf32> to vector<8x526xf32>
    %42 = vector.extract_strided_slice %1 {offsets = [0, 18], sizes = [8, 526], strides = [1, 1]} : vector<8x640xf32> to vector<8x526xf32>
    %43 = vector.extract_strided_slice %1 {offsets = [0, 19], sizes = [8, 526], strides = [1, 1]} : vector<8x640xf32> to vector<8x526xf32>
    %44 = tpu.concatenate %39, %40, %41, %42, %43 in 0 : vector<8x526xf32>, vector<8x526xf32>, vector<8x526xf32>, vector<8x526xf32>, vector<8x526xf32> -> vector<40x526xf32>
    %c0_8 = arith.constant 0 : index
    %c0_9 = arith.constant 0 : index
    %c0_10 = arith.constant 0 : index
    %45 = vector.load %arg2[%c0_8, %c0_9, %c0_10] : memref<5x24x40xf32, #tpu.memory_space<vmem>>, vector<1x24x40xf32>
    %46 = vector.shape_cast %45 : vector<1x24x40xf32> to vector<24x40xf32>
    %cst_11 = arith.constant dense<0.000000e+00> : vector<24x526xf32>
    %47 = tpu.matmul %46, %44, %cst_11 {dimension_numbers = #tpu.dot_dimension_numbers<[1], [0], [0], [1], [0, 0, 1, 1], [], []>} : vector<24x40xf32>, vector<40x526xf32>, vector<24x526xf32> -> vector<24x526xf32>
    %48 = vector.extract_strided_slice %1 {offsets = [0, 35], sizes = [8, 526], strides = [1, 1]} : vector<8x640xf32> to vector<8x526xf32>
    %49 = vector.extract_strided_slice %1 {offsets = [0, 36], sizes = [8, 526], strides = [1, 1]} : vector<8x640xf32> to vector<8x526xf32>
    %50 = vector.extract_strided_slice %1 {offsets = [0, 37], sizes = [8, 526], strides = [1, 1]} : vector<8x640xf32> to vector<8x526xf32>
    %51 = vector.extract_strided_slice %1 {offsets = [0, 38], sizes = [8, 526], strides = [1, 1]} : vector<8x640xf32> to vector<8x526xf32>
    %52 = vector.extract_strided_slice %1 {offsets = [0, 39], sizes = [8, 526], strides = [1, 1]} : vector<8x640xf32> to vector<8x526xf32>
    %53 = tpu.concatenate %48, %49, %50, %51, %52 in 0 : vector<8x526xf32>, vector<8x526xf32>, vector<8x526xf32>, vector<8x526xf32>, vector<8x526xf32> -> vector<40x526xf32>
    %c1 = arith.constant 1 : index
    %c0_12 = arith.constant 0 : index
    %c0_13 = arith.constant 0 : index
    %54 = vector.load %arg2[%c1, %c0_12, %c0_13] : memref<5x24x40xf32, #tpu.memory_space<vmem>>, vector<1x24x40xf32>
    %55 = vector.shape_cast %54 : vector<1x24x40xf32> to vector<24x40xf32>
    %cst_14 = arith.constant dense<0.000000e+00> : vector<24x526xf32>
    %56 = tpu.matmul %55, %53, %cst_14 {dimension_numbers = #tpu.dot_dimension_numbers<[1], [0], [0], [1], [0, 0, 1, 1], [], []>} : vector<24x40xf32>, vector<40x526xf32>, vector<24x526xf32> -> vector<24x526xf32>
    %57 = arith.addf %47, %56 : vector<24x526xf32>
    %58 = vector.extract_strided_slice %1 {offsets = [0, 55], sizes = [8, 526], strides = [1, 1]} : vector<8x640xf32> to vector<8x526xf32>
    %59 = vector.extract_strided_slice %1 {offsets = [0, 56], sizes = [8, 526], strides = [1, 1]} : vector<8x640xf32> to vector<8x526xf32>
    %60 = vector.extract_strided_slice %1 {offsets = [0, 57], sizes = [8, 526], strides = [1, 1]} : vector<8x640xf32> to vector<8x526xf32>
    %61 = vector.extract_strided_slice %1 {offsets = [0, 58], sizes = [8, 526], strides = [1, 1]} : vector<8x640xf32> to vector<8x526xf32>
    %62 = vector.extract_strided_slice %1 {offsets = [0, 59], sizes = [8, 526], strides = [1, 1]} : vector<8x640xf32> to vector<8x526xf32>
    %63 = tpu.concatenate %58, %59, %60, %61, %62 in 0 : vector<8x526xf32>, vector<8x526xf32>, vector<8x526xf32>, vector<8x526xf32>, vector<8x526xf32> -> vector<40x526xf32>
    %c2 = arith.constant 2 : index
    %c0_15 = arith.constant 0 : index
    %c0_16 = arith.constant 0 : index
    %64 = vector.load %arg2[%c2, %c0_15, %c0_16] : memref<5x24x40xf32, #tpu.memory_space<vmem>>, vector<1x24x40xf32>
    %65 = vector.shape_cast %64 : vector<1x24x40xf32> to vector<24x40xf32>
    %cst_17 = arith.constant dense<0.000000e+00> : vector<24x526xf32>
    %66 = tpu.matmul %65, %63, %cst_17 {dimension_numbers = #tpu.dot_dimension_numbers<[1], [0], [0], [1], [0, 0, 1, 1], [], []>} : vector<24x40xf32>, vector<40x526xf32>, vector<24x526xf32> -> vector<24x526xf32>
    %67 = arith.addf %57, %66 : vector<24x526xf32>
    %68 = vector.extract_strided_slice %1 {offsets = [0, 75], sizes = [8, 526], strides = [1, 1]} : vector<8x640xf32> to vector<8x526xf32>
    %69 = vector.extract_strided_slice %1 {offsets = [0, 76], sizes = [8, 526], strides = [1, 1]} : vector<8x640xf32> to vector<8x526xf32>
    %70 = vector.extract_strided_slice %1 {offsets = [0, 77], sizes = [8, 526], strides = [1, 1]} : vector<8x640xf32> to vector<8x526xf32>
    %71 = vector.extract_strided_slice %1 {offsets = [0, 78], sizes = [8, 526], strides = [1, 1]} : vector<8x640xf32> to vector<8x526xf32>
    %72 = vector.extract_strided_slice %1 {offsets = [0, 79], sizes = [8, 526], strides = [1, 1]} : vector<8x640xf32> to vector<8x526xf32>
    %73 = tpu.concatenate %68, %69, %70, %71, %72 in 0 : vector<8x526xf32>, vector<8x526xf32>, vector<8x526xf32>, vector<8x526xf32>, vector<8x526xf32> -> vector<40x526xf32>
    %c3 = arith.constant 3 : index
    %c0_18 = arith.constant 0 : index
    %c0_19 = arith.constant 0 : index
    %74 = vector.load %arg2[%c3, %c0_18, %c0_19] : memref<5x24x40xf32, #tpu.memory_space<vmem>>, vector<1x24x40xf32>
    %75 = vector.shape_cast %74 : vector<1x24x40xf32> to vector<24x40xf32>
    %cst_20 = arith.constant dense<0.000000e+00> : vector<24x526xf32>
    %76 = tpu.matmul %75, %73, %cst_20 {dimension_numbers = #tpu.dot_dimension_numbers<[1], [0], [0], [1], [0, 0, 1, 1], [], []>} : vector<24x40xf32>, vector<40x526xf32>, vector<24x526xf32> -> vector<24x526xf32>
    %77 = arith.addf %67, %76 : vector<24x526xf32>
    %78 = vector.extract_strided_slice %1 {offsets = [0, 95], sizes = [8, 526], strides = [1, 1]} : vector<8x640xf32> to vector<8x526xf32>
    %79 = vector.extract_strided_slice %1 {offsets = [0, 96], sizes = [8, 526], strides = [1, 1]} : vector<8x640xf32> to vector<8x526xf32>
    %80 = vector.extract_strided_slice %1 {offsets = [0, 97], sizes = [8, 526], strides = [1, 1]} : vector<8x640xf32> to vector<8x526xf32>
    %81 = vector.extract_strided_slice %1 {offsets = [0, 98], sizes = [8, 526], strides = [1, 1]} : vector<8x640xf32> to vector<8x526xf32>
    %82 = vector.extract_strided_slice %1 {offsets = [0, 99], sizes = [8, 526], strides = [1, 1]} : vector<8x640xf32> to vector<8x526xf32>
    %83 = tpu.concatenate %78, %79, %80, %81, %82 in 0 : vector<8x526xf32>, vector<8x526xf32>, vector<8x526xf32>, vector<8x526xf32>, vector<8x526xf32> -> vector<40x526xf32>
    %c4 = arith.constant 4 : index
    %c0_21 = arith.constant 0 : index
    %c0_22 = arith.constant 0 : index
    %84 = vector.load %arg2[%c4, %c0_21, %c0_22] : memref<5x24x40xf32, #tpu.memory_space<vmem>>, vector<1x24x40xf32>
    %85 = vector.shape_cast %84 : vector<1x24x40xf32> to vector<24x40xf32>
    %cst_23 = arith.constant dense<0.000000e+00> : vector<24x526xf32>
    %86 = tpu.matmul %85, %83, %cst_23 {dimension_numbers = #tpu.dot_dimension_numbers<[1], [0], [0], [1], [0, 0, 1, 1], [], []>} : vector<24x40xf32>, vector<40x526xf32>, vector<24x526xf32> -> vector<24x526xf32>
    %87 = arith.addf %77, %86 : vector<24x526xf32>
    %c0_24 = arith.constant 0 : index
    %c0_25 = arith.constant 0 : index
    %88 = vector.load %arg3[%c0_24, %c0_25] : memref<24x1xf32, #tpu.memory_space<vmem>>, vector<24x1xf32>
    %89 = vector.broadcast %88 : vector<24x1xf32> to vector<24x526xf32>
    %90 = arith.addf %87, %89 : vector<24x526xf32>
    %cst_26 = arith.constant 0.000000e+00 : f32
    %91 = vector.broadcast %cst_26 : f32 to vector<24x526xf32>
    %92 = arith.cmpf oge, %90, %91 : vector<24x526xf32>
    %cst_27 = arith.constant 1.000000e-03 : f32
    %93 = vector.broadcast %cst_27 : f32 to vector<24x526xf32>
    %94 = arith.mulf %90, %93 : vector<24x526xf32>
    %95 = arith.select %92, %90, %94 : vector<24x526xi1>, vector<24x526xf32>
    %96 = vector.broadcast %37 : vector<1x526xf32> to vector<24x526xf32>
    %97 = arith.mulf %95, %96 : vector<24x526xf32>
    %98 = vector.extract_strided_slice %97 {offsets = [0, 0], sizes = [24, 484], strides = [1, 1]} : vector<24x526xf32> to vector<24x484xf32>
    %99 = vector.extract_strided_slice %97 {offsets = [0, 1], sizes = [24, 484], strides = [1, 1]} : vector<24x526xf32> to vector<24x484xf32>
    %100 = vector.extract_strided_slice %97 {offsets = [0, 2], sizes = [24, 484], strides = [1, 1]} : vector<24x526xf32> to vector<24x484xf32>
    %101 = tpu.concatenate %98, %99, %100 in 0 : vector<24x484xf32>, vector<24x484xf32>, vector<24x484xf32> -> vector<72x484xf32>
    %c0_28 = arith.constant 0 : index
    %c0_29 = arith.constant 0 : index
    %c0_30 = arith.constant 0 : index
    %102 = vector.load %arg4[%c0_28, %c0_29, %c0_30] : memref<3x16x72xf32, #tpu.memory_space<vmem>>, vector<1x16x72xf32>
    %103 = vector.shape_cast %102 : vector<1x16x72xf32> to vector<16x72xf32>
    %cst_31 = arith.constant dense<0.000000e+00> : vector<16x484xf32>
    %104 = tpu.matmul %103, %101, %cst_31 {dimension_numbers = #tpu.dot_dimension_numbers<[1], [0], [0], [1], [0, 0, 1, 1], [], []>} : vector<16x72xf32>, vector<72x484xf32>, vector<16x484xf32> -> vector<16x484xf32>
    %105 = vector.extract_strided_slice %97 {offsets = [0, 20], sizes = [24, 484], strides = [1, 1]} : vector<24x526xf32> to vector<24x484xf32>
    %106 = vector.extract_strided_slice %97 {offsets = [0, 21], sizes = [24, 484], strides = [1, 1]} : vector<24x526xf32> to vector<24x484xf32>
    %107 = vector.extract_strided_slice %97 {offsets = [0, 22], sizes = [24, 484], strides = [1, 1]} : vector<24x526xf32> to vector<24x484xf32>
    %108 = tpu.concatenate %105, %106, %107 in 0 : vector<24x484xf32>, vector<24x484xf32>, vector<24x484xf32> -> vector<72x484xf32>
    %c1_32 = arith.constant 1 : index
    %c0_33 = arith.constant 0 : index
    %c0_34 = arith.constant 0 : index
    %109 = vector.load %arg4[%c1_32, %c0_33, %c0_34] : memref<3x16x72xf32, #tpu.memory_space<vmem>>, vector<1x16x72xf32>
    %110 = vector.shape_cast %109 : vector<1x16x72xf32> to vector<16x72xf32>
    %cst_35 = arith.constant dense<0.000000e+00> : vector<16x484xf32>
    %111 = tpu.matmul %110, %108, %cst_35 {dimension_numbers = #tpu.dot_dimension_numbers<[1], [0], [0], [1], [0, 0, 1, 1], [], []>} : vector<16x72xf32>, vector<72x484xf32>, vector<16x484xf32> -> vector<16x484xf32>
    %112 = arith.addf %104, %111 : vector<16x484xf32>
    %113 = vector.extract_strided_slice %97 {offsets = [0, 40], sizes = [24, 484], strides = [1, 1]} : vector<24x526xf32> to vector<24x484xf32>
    %114 = vector.extract_strided_slice %97 {offsets = [0, 41], sizes = [24, 484], strides = [1, 1]} : vector<24x526xf32> to vector<24x484xf32>
    %115 = vector.extract_strided_slice %97 {offsets = [0, 42], sizes = [24, 484], strides = [1, 1]} : vector<24x526xf32> to vector<24x484xf32>
    %116 = tpu.concatenate %113, %114, %115 in 0 : vector<24x484xf32>, vector<24x484xf32>, vector<24x484xf32> -> vector<72x484xf32>
    %c2_36 = arith.constant 2 : index
    %c0_37 = arith.constant 0 : index
    %c0_38 = arith.constant 0 : index
    %117 = vector.load %arg4[%c2_36, %c0_37, %c0_38] : memref<3x16x72xf32, #tpu.memory_space<vmem>>, vector<1x16x72xf32>
    %118 = vector.shape_cast %117 : vector<1x16x72xf32> to vector<16x72xf32>
    %cst_39 = arith.constant dense<0.000000e+00> : vector<16x484xf32>
    %119 = tpu.matmul %118, %116, %cst_39 {dimension_numbers = #tpu.dot_dimension_numbers<[1], [0], [0], [1], [0, 0, 1, 1], [], []>} : vector<16x72xf32>, vector<72x484xf32>, vector<16x484xf32> -> vector<16x484xf32>
    %120 = arith.addf %112, %119 : vector<16x484xf32>
    %c0_40 = arith.constant 0 : index
    %c0_41 = arith.constant 0 : index
    %121 = vector.load %arg5[%c0_40, %c0_41] : memref<16x1xf32, #tpu.memory_space<vmem>>, vector<16x1xf32>
    %122 = vector.broadcast %121 : vector<16x1xf32> to vector<16x484xf32>
    %123 = arith.addf %120, %122 : vector<16x484xf32>
    %cst_42 = arith.constant 0.000000e+00 : f32
    %124 = vector.broadcast %cst_42 : f32 to vector<16x484xf32>
    %125 = arith.cmpf oge, %123, %124 : vector<16x484xf32>
    %cst_43 = arith.constant 1.000000e-03 : f32
    %126 = vector.broadcast %cst_43 : f32 to vector<16x484xf32>
    %127 = arith.mulf %123, %126 : vector<16x484xf32>
    %128 = arith.select %125, %123, %127 : vector<16x484xi1>, vector<16x484xf32>
    %129 = vector.broadcast %38 : vector<1x484xf32> to vector<16x484xf32>
    %130 = arith.mulf %128, %129 : vector<16x484xf32>
    %131 = vector.extract_strided_slice %130 {offsets = [0, 0], sizes = [16, 400], strides = [1, 1]} : vector<16x484xf32> to vector<16x400xf32>
    %132 = vector.extract_strided_slice %130 {offsets = [0, 1], sizes = [16, 400], strides = [1, 1]} : vector<16x484xf32> to vector<16x400xf32>
    %133 = vector.extract_strided_slice %130 {offsets = [0, 2], sizes = [16, 400], strides = [1, 1]} : vector<16x484xf32> to vector<16x400xf32>
    %134 = vector.extract_strided_slice %130 {offsets = [0, 3], sizes = [16, 400], strides = [1, 1]} : vector<16x484xf32> to vector<16x400xf32>
    %135 = vector.extract_strided_slice %130 {offsets = [0, 4], sizes = [16, 400], strides = [1, 1]} : vector<16x484xf32> to vector<16x400xf32>
    %136 = tpu.concatenate %131, %132, %133, %134, %135 in 0 : vector<16x400xf32>, vector<16x400xf32>, vector<16x400xf32>, vector<16x400xf32>, vector<16x400xf32> -> vector<80x400xf32>
    %c0_44 = arith.constant 0 : index
    %c0_45 = arith.constant 0 : index
    %c0_46 = arith.constant 0 : index
    %137 = vector.load %arg6[%c0_44, %c0_45, %c0_46] : memref<5x8x80xf32, #tpu.memory_space<vmem>>, vector<1x8x80xf32>
    %138 = vector.shape_cast %137 : vector<1x8x80xf32> to vector<8x80xf32>
    %cst_47 = arith.constant dense<0.000000e+00> : vector<8x400xf32>
    %139 = tpu.matmul %138, %136, %cst_47 {dimension_numbers = #tpu.dot_dimension_numbers<[1], [0], [0], [1], [0, 0, 1, 1], [], []>} : vector<8x80xf32>, vector<80x400xf32>, vector<8x400xf32> -> vector<8x400xf32>
    %140 = vector.extract_strided_slice %130 {offsets = [0, 20], sizes = [16, 400], strides = [1, 1]} : vector<16x484xf32> to vector<16x400xf32>
    %141 = vector.extract_strided_slice %130 {offsets = [0, 21], sizes = [16, 400], strides = [1, 1]} : vector<16x484xf32> to vector<16x400xf32>
    %142 = vector.extract_strided_slice %130 {offsets = [0, 22], sizes = [16, 400], strides = [1, 1]} : vector<16x484xf32> to vector<16x400xf32>
    %143 = vector.extract_strided_slice %130 {offsets = [0, 23], sizes = [16, 400], strides = [1, 1]} : vector<16x484xf32> to vector<16x400xf32>
    %144 = vector.extract_strided_slice %130 {offsets = [0, 24], sizes = [16, 400], strides = [1, 1]} : vector<16x484xf32> to vector<16x400xf32>
    %145 = tpu.concatenate %140, %141, %142, %143, %144 in 0 : vector<16x400xf32>, vector<16x400xf32>, vector<16x400xf32>, vector<16x400xf32>, vector<16x400xf32> -> vector<80x400xf32>
    %c1_48 = arith.constant 1 : index
    %c0_49 = arith.constant 0 : index
    %c0_50 = arith.constant 0 : index
    %146 = vector.load %arg6[%c1_48, %c0_49, %c0_50] : memref<5x8x80xf32, #tpu.memory_space<vmem>>, vector<1x8x80xf32>
    %147 = vector.shape_cast %146 : vector<1x8x80xf32> to vector<8x80xf32>
    %cst_51 = arith.constant dense<0.000000e+00> : vector<8x400xf32>
    %148 = tpu.matmul %147, %145, %cst_51 {dimension_numbers = #tpu.dot_dimension_numbers<[1], [0], [0], [1], [0, 0, 1, 1], [], []>} : vector<8x80xf32>, vector<80x400xf32>, vector<8x400xf32> -> vector<8x400xf32>
    %149 = arith.addf %139, %148 : vector<8x400xf32>
    %150 = vector.extract_strided_slice %130 {offsets = [0, 40], sizes = [16, 400], strides = [1, 1]} : vector<16x484xf32> to vector<16x400xf32>
    %151 = vector.extract_strided_slice %130 {offsets = [0, 41], sizes = [16, 400], strides = [1, 1]} : vector<16x484xf32> to vector<16x400xf32>
    %152 = vector.extract_strided_slice %130 {offsets = [0, 42], sizes = [16, 400], strides = [1, 1]} : vector<16x484xf32> to vector<16x400xf32>
    %153 = vector.extract_strided_slice %130 {offsets = [0, 43], sizes = [16, 400], strides = [1, 1]} : vector<16x484xf32> to vector<16x400xf32>
    %154 = vector.extract_strided_slice %130 {offsets = [0, 44], sizes = [16, 400], strides = [1, 1]} : vector<16x484xf32> to vector<16x400xf32>
    %155 = tpu.concatenate %150, %151, %152, %153, %154 in 0 : vector<16x400xf32>, vector<16x400xf32>, vector<16x400xf32>, vector<16x400xf32>, vector<16x400xf32> -> vector<80x400xf32>
    %c2_52 = arith.constant 2 : index
    %c0_53 = arith.constant 0 : index
    %c0_54 = arith.constant 0 : index
    %156 = vector.load %arg6[%c2_52, %c0_53, %c0_54] : memref<5x8x80xf32, #tpu.memory_space<vmem>>, vector<1x8x80xf32>
    %157 = vector.shape_cast %156 : vector<1x8x80xf32> to vector<8x80xf32>
    %cst_55 = arith.constant dense<0.000000e+00> : vector<8x400xf32>
    %158 = tpu.matmul %157, %155, %cst_55 {dimension_numbers = #tpu.dot_dimension_numbers<[1], [0], [0], [1], [0, 0, 1, 1], [], []>} : vector<8x80xf32>, vector<80x400xf32>, vector<8x400xf32> -> vector<8x400xf32>
    %159 = arith.addf %149, %158 : vector<8x400xf32>
    %160 = vector.extract_strided_slice %130 {offsets = [0, 60], sizes = [16, 400], strides = [1, 1]} : vector<16x484xf32> to vector<16x400xf32>
    %161 = vector.extract_strided_slice %130 {offsets = [0, 61], sizes = [16, 400], strides = [1, 1]} : vector<16x484xf32> to vector<16x400xf32>
    %162 = vector.extract_strided_slice %130 {offsets = [0, 62], sizes = [16, 400], strides = [1, 1]} : vector<16x484xf32> to vector<16x400xf32>
    %163 = vector.extract_strided_slice %130 {offsets = [0, 63], sizes = [16, 400], strides = [1, 1]} : vector<16x484xf32> to vector<16x400xf32>
    %164 = vector.extract_strided_slice %130 {offsets = [0, 64], sizes = [16, 400], strides = [1, 1]} : vector<16x484xf32> to vector<16x400xf32>
    %165 = tpu.concatenate %160, %161, %162, %163, %164 in 0 : vector<16x400xf32>, vector<16x400xf32>, vector<16x400xf32>, vector<16x400xf32>, vector<16x400xf32> -> vector<80x400xf32>
    %c3_56 = arith.constant 3 : index
    %c0_57 = arith.constant 0 : index
    %c0_58 = arith.constant 0 : index
    %166 = vector.load %arg6[%c3_56, %c0_57, %c0_58] : memref<5x8x80xf32, #tpu.memory_space<vmem>>, vector<1x8x80xf32>
    %167 = vector.shape_cast %166 : vector<1x8x80xf32> to vector<8x80xf32>
    %cst_59 = arith.constant dense<0.000000e+00> : vector<8x400xf32>
    %168 = tpu.matmul %167, %165, %cst_59 {dimension_numbers = #tpu.dot_dimension_numbers<[1], [0], [0], [1], [0, 0, 1, 1], [], []>} : vector<8x80xf32>, vector<80x400xf32>, vector<8x400xf32> -> vector<8x400xf32>
    %169 = arith.addf %159, %168 : vector<8x400xf32>
    %170 = vector.extract_strided_slice %130 {offsets = [0, 80], sizes = [16, 400], strides = [1, 1]} : vector<16x484xf32> to vector<16x400xf32>
    %171 = vector.extract_strided_slice %130 {offsets = [0, 81], sizes = [16, 400], strides = [1, 1]} : vector<16x484xf32> to vector<16x400xf32>
    %172 = vector.extract_strided_slice %130 {offsets = [0, 82], sizes = [16, 400], strides = [1, 1]} : vector<16x484xf32> to vector<16x400xf32>
    %173 = vector.extract_strided_slice %130 {offsets = [0, 83], sizes = [16, 400], strides = [1, 1]} : vector<16x484xf32> to vector<16x400xf32>
    %174 = vector.extract_strided_slice %130 {offsets = [0, 84], sizes = [16, 400], strides = [1, 1]} : vector<16x484xf32> to vector<16x400xf32>
    %175 = tpu.concatenate %170, %171, %172, %173, %174 in 0 : vector<16x400xf32>, vector<16x400xf32>, vector<16x400xf32>, vector<16x400xf32>, vector<16x400xf32> -> vector<80x400xf32>
    %c4_60 = arith.constant 4 : index
    %c0_61 = arith.constant 0 : index
    %c0_62 = arith.constant 0 : index
    %176 = vector.load %arg6[%c4_60, %c0_61, %c0_62] : memref<5x8x80xf32, #tpu.memory_space<vmem>>, vector<1x8x80xf32>
    %177 = vector.shape_cast %176 : vector<1x8x80xf32> to vector<8x80xf32>
    %cst_63 = arith.constant dense<0.000000e+00> : vector<8x400xf32>
    %178 = tpu.matmul %177, %175, %cst_63 {dimension_numbers = #tpu.dot_dimension_numbers<[1], [0], [0], [1], [0, 0, 1, 1], [], []>} : vector<8x80xf32>, vector<80x400xf32>, vector<8x400xf32> -> vector<8x400xf32>
    %179 = arith.addf %169, %178 : vector<8x400xf32>
    %c0_64 = arith.constant 0 : index
    %c0_65 = arith.constant 0 : index
    %180 = vector.load %arg7[%c0_64, %c0_65] : memref<8x1xf32, #tpu.memory_space<vmem>>, vector<8x1xf32>
    %181 = vector.broadcast %180 : vector<8x1xf32> to vector<8x400xf32>
    %182 = arith.addf %179, %181 : vector<8x400xf32>
    %c0_66 = arith.constant 0 : index
    %c0_67 = arith.constant 0 : index
    %c0_68 = arith.constant 0 : index
    %183 = vector.load %arg8[%c0_66, %c0_67, %c0_68] : memref<1x8x400xf32, #tpu.memory_space<vmem>>, vector<1x8x400xf32>
    %184 = vector.shape_cast %183 : vector<1x8x400xf32> to vector<8x400xf32>
    %185 = vector.shape_cast %182 : vector<8x400xf32> to vector<1x8x400xf32>
    tpu.vector_store %arg8[%c0_66, %c0_67, %c0_68], %185 {strides = array<i32>} : memref<1x8x400xf32, #tpu.memory_space<vmem>>, vector<1x8x400xf32>,
    return
  }
  func.func @transform_0(%arg0: i32) -> (i32, i32, i32) {
    %c0_i32 = arith.constant 0 : i32
    %c0_i32_0 = arith.constant 0 : i32
    %c0_i32_1 = arith.constant 0 : i32
    return %arg0, %c0_i32, %c0_i32_0 : i32, i32, i32
  }
  func.func @transform_1(%arg0: i32) -> (i32, i32, i32) {
    %c0_i32 = arith.constant 0 : i32
    %c0_i32_0 = arith.constant 0 : i32
    %c0_i32_1 = arith.constant 0 : i32
    %c0_i32_2 = arith.constant 0 : i32
    return %c0_i32, %c0_i32_0, %c0_i32_1 : i32, i32, i32
  }
  func.func @transform_2(%arg0: i32) -> (i32, i32) {
    %c0_i32 = arith.constant 0 : i32
    %c0_i32_0 = arith.constant 0 : i32
    %c0_i32_1 = arith.constant 0 : i32
    return %c0_i32, %c0_i32_0 : i32, i32
  }
  func.func @transform_3(%arg0: i32) -> (i32, i32, i32) {
    %c0_i32 = arith.constant 0 : i32
    %c0_i32_0 = arith.constant 0 : i32
    %c0_i32_1 = arith.constant 0 : i32
    %c0_i32_2 = arith.constant 0 : i32
    return %c0_i32, %c0_i32_0, %c0_i32_1 : i32, i32, i32
  }
  func.func @transform_4(%arg0: i32) -> (i32, i32) {
    %c0_i32 = arith.constant 0 : i32
    %c0_i32_0 = arith.constant 0 : i32
    %c0_i32_1 = arith.constant 0 : i32
    return %c0_i32, %c0_i32_0 : i32, i32
  }
  func.func @transform_5(%arg0: i32) -> (i32, i32, i32) {
    %c0_i32 = arith.constant 0 : i32
    %c0_i32_0 = arith.constant 0 : i32
    %c0_i32_1 = arith.constant 0 : i32
    %c0_i32_2 = arith.constant 0 : i32
    return %c0_i32, %c0_i32_0, %c0_i32_1 : i32, i32, i32
  }
  func.func @transform_6(%arg0: i32) -> (i32, i32) {
    %c0_i32 = arith.constant 0 : i32
    %c0_i32_0 = arith.constant 0 : i32
    %c0_i32_1 = arith.constant 0 : i32
    return %c0_i32, %c0_i32_0 : i32, i32
  }
  func.func @transform_7(%arg0: i32) -> (i32, i32, i32) {
    %c0_i32 = arith.constant 0 : i32
    %c0_i32_0 = arith.constant 0 : i32
    %c0_i32_1 = arith.constant 0 : i32
    return %arg0, %c0_i32, %c0_i32_0 : i32, i32, i32
  }
}

</mosaic_0001>

<bundles_post_ra>
// kernel: network_forward.1
= control target key start
LH: loop header
LB: loop body
LE: loop exit
PB: predicated region body
PF: predicated region fallthrough
CT: control target
= control target key end

     0   :  { %s5292_s24 = smov 0   ;;  %s8293_s0 = inlined_call_operand.vmem [shape: f32[2,8,640], index: 0, kind: input, shape index: {}]   ;;  %s8294_s1 = inlined_call_operand.vmem [shape: f32[5,24,40], index: 1, kind: input, shape index: {}]   ;;  %s8295_s2 = inlined_call_operand.vmem [shape: f32[24,1], index: 2, kind: input, shape index: {}]   ;;  %s8296_s3 = inlined_call_operand.vmem [shape: f32[3,16,72], index: 3, kind: input, shape index: {}]   ;;  %s8297_s4 = inlined_call_operand.vmem [shape: f32[16,1], index: 4, kind: input, shape index: {}]   ;;  %s8298_s5 = inlined_call_operand.vmem [shape: f32[5,8,80], index: 5, kind: input, shape index: {}]   ;;  %s8299_s6 = inlined_call_operand.vmem [shape: f32[8,1], index: 6, kind: input, shape index: {}]   ;;  %s8300_s7 = inlined_call_operand.vmem [shape: f32[2,8,400], index: 7, kind: output, shape index: {}]  }
   0x1 LB: > { %s5298_s25 = sadd.s32 4294967295, %s5232_s24   ;;  %p4937_p0 = scmp.ge.s32.totalorder %s5232_s24, 1  ;;  %s5232_s24 = sphi %s5292_s24, %s17_s24  }
   0x2   : > { %p237_p1 = scmp.lt.s32.totalorder %s5232_s24, 3 }
   0x4   : > { %p238_p2 = pnand %p4937_p0, %p237_p1 }
   0x6   : > { %241 = sbr.rel (%p238_p2) target bundleno = 2017 (0x7e1), region = 48 }
   0xb   : > { %p269_p3 = scmp.lt.s32.totalorder %s5298_s25, 1  ;;  %s5234_s8 = smov 124   ;;  %vm8302_vm0 = vcmask 1014784   ;;  %vm8301_vm1 = vcmask 1022976   ;;  %vm8304_vm2 = vcmask 1031168   ;;  %vm8303_vm3 = vcmask 1039360  }
   0xc   : > { %s5235_s9 = smov 125   ;;  %s5236_s10 = smov 126   ;;  %v8311_v39 = vmov 0.0   ;;  %vm515_vm4 = vcmask 760832   ;;  %vm867_vm5 = vcmask 924672   ;;  %vm8309_vm6 = vcmask 326656  }
   0xd   : > { %s5304_s26 = scalar_select %p269_p3, %s5298_s25, 1  ;;  %635 = vmatprep.mubr.f32.mxu0 %v8311_v39  ;;  %718 = vmatprep.mubr.f32.mxu1 %v8311_v39  ;;  %vm8305_vm7 = vmmov 0   ;;  %vm1222_vm8 = vcmask 596992   ;;  %vm8310_vm9 = vcmask 433152  }
   0xe   : > { %s5237_s11 = smov 127   ;;  %s5238_s12 = smov 93  }
   0xf   : > { %s5167_s27 = smul.u32 40, %s5304_s26  ;;  %s5239_s13 = smov 113  }
  0x10   : > { %s5241_s14 = smov 73   ;;  %s5242_s15 = smov 53  }
  0x11   : > { %s273_s30 = scalar_lea.vmem %s8293_s0, %s5167_s27  ;;  %s5243_s22 = smov 33  }
  0x12   : > { %v5310_v0 = vld [vmem:[%s273_s30 + $0x18] sm:$0xff]  ;;  %v5312_v1 = vld [vmem:[%s273_s30 + $0x8] sm:$0xff]  ;;  %v5318_v2 = vld [vmem:[%s273_s30 + $0x20] sm:$0xff]  ;;  %s325_s21 = smul.u32 20, %s5298_s25  ;;  %s5250_s29 = smov 68  }
  0x13   : > { %449 = vrot.lane.b32.xlu1 %v5310_v0, %s5234_s8  ;;  %445 = vrot.lane.b32.xlu0 %v5312_v1, %s5234_s8  ;;  %v5320_v3 = vld [vmem:[%s273_s30 + $0x10] sm:$0xff]  ;;  %v5326_v4 = vld [vmem:[%s273_s30] sm:$0xff]  ;;  %s5031_s18 = sshll.u32 %s5304_s26, 5 }
  0x14   : > { %s4941_s23 = sadd.s32 4294967290, %s325_s21  ;;  %s278_s21 = scalar_lea.vmem %s8300_s7, %s5031_s18 }
  0x17   : > { %451 = vrot.lane.b32.xlu1 %v5318_v2, %s5234_s8  ;;  %447 = vrot.lane.b32.xlu0 %v5320_v3, %s5234_s8 }
  0x1b   : > { %430 = vrot.lane.b32.xlu1 %v5312_v1, %s5235_s9  ;;  %443 = vrot.lane.b32.xlu0 %v5326_v4, %s5234_s8 }
  0x1f   : > { %434 = vrot.lane.b32.xlu1 %v5310_v0, %s5235_s9  ;;  %432 = vrot.lane.b32.xlu0 %v5320_v3, %s5235_s9 }
  0x23   : > { %428 = vrot.lane.b32.xlu1 %v5326_v4, %s5235_s9  ;;  %436 = vrot.lane.b32.xlu0 %v5318_v2, %s5235_s9 }
  0x27   : > { %417 = vrot.lane.b32.xlu1 %v5320_v3, %s5236_s10  ;;  %415 = vrot.lane.b32.xlu0 %v5312_v1, %s5236_s10 }
  0x2b   : > { %421 = vrot.lane.b32.xlu1 %v5318_v2, %s5236_s10  ;;  %419 = vrot.lane.b32.xlu0 %v5310_v0, %s5236_s10 }
  0x2f   : > { %400 = vrot.lane.b32.xlu1 %v5312_v1, %s5237_s11  ;;  %413 = vrot.lane.b32.xlu0 %v5326_v4, %s5236_s10 }
  0x33   : > { %404 = vrot.lane.b32.xlu1 %v5310_v0, %s5237_s11  ;;  %402 = vrot.lane.b32.xlu0 %v5320_v3, %s5237_s11 }
  0x37   : > { %406 = vrot.lane.b32.xlu0 %v5318_v2, %s5237_s11  ;;  %398 = vrot.lane.b32.xlu1 %v5326_v4, %s5237_s11 }
  0x3b   : > { %467 = vrot.lane.b32.xlu0 %v5312_v1, %s5238_s12  ;;  %469 = vrot.lane.b32.xlu1 %v5320_v3, %s5238_s12 }
  0x3f   : > { %471 = vrot.lane.b32.xlu0 %v5310_v0, %s5238_s12  ;;  %473 = vrot.lane.b32.xlu1 %v5318_v2, %s5238_s12 }
  0x43   : > { %465 = vrot.lane.b32.xlu0 %v5326_v4, %s5238_s12  ;;  %819 = vrot.lane.b32.xlu1 %v5312_v1, %s5239_s13 }
  0x47   : > { %821 = vrot.lane.b32.xlu0 %v5320_v3, %s5239_s13  ;;  %817 = vrot.lane.b32.xlu1 %v5326_v4, %s5239_s13 }
  0x85   : > { %v450_v5 = vpop.permute.xlu1 %449  ;;  %v446_v6 = vpop.permute.xlu0 %445 }
  0x89   : > { %v5376_v7 = vpop.permute.xlu1 %451  ;;  %v448_v8 = vpop.permute.xlu0 %447 }
  0x8a   : > { %513 = vrot.lane.b32.xlu1 %v5376_v7, %s5238_s12  ;;  %v5393_v21 = vsel %vm8302_vm0, %v448_v8, %v450_v5  ;;  %v5402_v23 = vsel %vm8302_vm0, %v446_v6, %v448_v8  ;;  %v5417_v26 = vsel %vm8302_vm0, %v450_v5, %v5376_v7 }
  0x8d   : > { %v431_v9 = vpop.permute.xlu1 %430  ;;  %v444_v10 = vpop.permute.xlu0 %443 }
  0x8e   : > { %v5424_v27 = vsel %vm8302_vm0, %v444_v10, %v446_v6 }
  0x91   : > { %v435_v11 = vpop.permute.xlu1 %434  ;;  %v433_v12 = vpop.permute.xlu0 %432 }
  0x92   : > { %v5405_v24 = vsel %vm8301_vm1, %v431_v9, %v433_v12  ;;  %v5434_v30 = vsel %vm8301_vm1, %v433_v12, %v435_v11 }
  0x95   : > { %v429_v13 = vpop.permute.xlu1 %428  ;;  %v5380_v14 = vpop.permute.xlu0 %436 }
  0x96   : > { %503 = vrot.lane.b32.xlu0 %v5380_v14, %s5238_s12  ;;  %v5413_v25 = vsel %vm8301_vm1, %v435_v11, %v5380_v14  ;;  %v5427_v28 = vsel %vm8301_vm1, %v429_v13, %v431_v9 }
  0x99   : > { %v418_v15 = vpop.permute.xlu1 %417  ;;  %v416_v16 = vpop.permute.xlu0 %415 }
  0x9a   : > { %v5444_v33 = vsel %vm8304_vm2, %v416_v16, %v418_v15 }
  0x9d   : > { %v5384_v17 = vpop.permute.xlu1 %421  ;;  %v420_v18 = vpop.permute.xlu0 %419 }
  0x9e   : > { %493 = vrot.lane.b32.xlu1 %v5384_v17, %s5238_s12  ;;  %v5437_v31 = vsel %vm8304_vm2, %v418_v15, %v420_v18  ;;  %v5455_v36 = vsel %vm8304_vm2, %v420_v18, %v5384_v17 }
  0xa1   : > { %v414_v19 = vpop.permute.xlu0 %413  ;;  %v401_v29 = vpop.permute.xlu1 %400 }
  0xa2   : > { %865 = vrot.lane.b32.xlu1 %v5376_v7, %s5239_s13  ;;  %v5471_v40 = vsel %vm8304_vm2, %v414_v19, %v416_v16 }
  0xa5   : > { %v403_v20 = vpop.permute.xlu0 %402  ;;  %v405_v32 = vpop.permute.xlu1 %404 }
  0xa6   : > { %855 = vrot.lane.b32.xlu1 %v5380_v14, %s5239_s13  ;;  %v5447_v34 = vsel %vm8303_vm3, %v401_v29, %v403_v20  ;;  %v5478_v41 = vsel %vm8303_vm3, %v403_v20, %v405_v32 }
  0xa9   : > { %v5395_v22 = vpop.permute.xlu0 %406  ;;  %v399_v35 = vpop.permute.xlu1 %398 }
  0xaa   : > { %509 = vrot.lane.b32.xlu1 %v5393_v21, %s5238_s12  ;;  %483 = vrot.lane.b32.xlu0 %v5395_v22, %s5238_s12  ;;  %v5459_v37 = vsel %vm8303_vm3, %v405_v32, %v5395_v22  ;;  %v5466_v38 = vsel %vm8303_vm3, %v399_v35, %v401_v29 }
  0xad   : > { %v5524_v42 = vpop.permute.xlu1 %469  ;;  %v5542_v45 = vpop.permute.xlu0 %467 }
  0xae   : > { %497 = vrot.lane.b32.xlu1 %v5405_v24, %s5238_s12  ;;  %507 = vrot.lane.b32.xlu0 %v5402_v23, %s5238_s12 }
  0xb1   : > { %v5530_v43 = vpop.permute.xlu1 %473  ;;  %v5550_v47 = vpop.permute.xlu0 %471 }
  0xb2   : > { %501 = vrot.lane.b32.xlu1 %v5413_v25, %s5238_s12  ;;  %511 = vrot.lane.b32.xlu0 %v5417_v26, %s5238_s12 }
  0xb5   : > { %v5540_v44 = vpop.permute.xlu1 %819  ;;  %v5562_v49 = vpop.permute.xlu0 %465 }
  0xb6   : > { %495 = vrot.lane.b32.xlu1 %v5427_v28, %s5238_s12  ;;  %505 = vrot.lane.b32.xlu0 %v5424_v27, %s5238_s12 }
  0xb9   : > { %v5548_v46 = vpop.permute.xlu1 %817  ;;  %v5570_v51 = vpop.permute.xlu0 %821 }
  0xba   : > { %489 = vrot.lane.b32.xlu1 %v5437_v31, %s5238_s12  ;;  %499 = vrot.lane.b32.xlu0 %v5434_v30, %s5238_s12 }
  0xbe   : > { %477 = vrot.lane.b32.xlu1 %v5447_v34, %s5238_s12  ;;  %487 = vrot.lane.b32.xlu0 %v5444_v33, %s5238_s12 }
  0xc2   : > { %481 = vrot.lane.b32.xlu1 %v5459_v37, %s5238_s12  ;;  %491 = vrot.lane.b32.xlu0 %v5455_v36, %s5238_s12 }
  0xc6   : > { %475 = vrot.lane.b32.xlu1 %v5466_v38, %s5238_s12  ;;  %485 = vrot.lane.b32.xlu0 %v5471_v40, %s5238_s12 }
  0xca   : > { %859 = vrot.lane.b32.xlu1 %v5402_v23, %s5239_s13  ;;  %479 = vrot.lane.b32.xlu0 %v5478_v41, %s5238_s12  ;;  %s5246_s12 = smov 71  }
  0xce   : > { %857 = vrot.lane.b32.xlu1 %v5424_v27, %s5239_s13  ;;  %861 = vrot.lane.b32.xlu0 %v5393_v21, %s5239_s13 }
  0xd2   : > { %851 = vrot.lane.b32.xlu1 %v5434_v30, %s5239_s13  ;;  %849 = vrot.lane.b32.xlu0 %v5405_v24, %s5239_s13 }
  0xd6   : > { %839 = vrot.lane.b32.xlu1 %v5444_v33, %s5239_s13  ;;  %847 = vrot.lane.b32.xlu0 %v5427_v28, %s5239_s13 }
  0xda   : > { %837 = vrot.lane.b32.xlu1 %v5471_v40, %s5239_s13  ;;  %841 = vrot.lane.b32.xlu0 %v5437_v31, %s5239_s13 }
  0xde   : > { %831 = vrot.lane.b32.xlu1 %v5478_v41, %s5239_s13  ;;  %829 = vrot.lane.b32.xlu0 %v5447_v34, %s5239_s13 }
  0xe2   : > { %845 = vrot.lane.b32.xlu1 %v5384_v17, %s5239_s13  ;;  %827 = vrot.lane.b32.xlu0 %v5466_v38, %s5239_s13 }
  0xe6   : > { %835 = vrot.lane.b32.xlu1 %v5395_v22, %s5239_s13  ;;  %863 = vrot.lane.b32.xlu0 %v5417_v26, %s5239_s13 }
  0xea   : > { %825 = vrot.lane.b32.xlu1 %v5318_v2, %s5239_s13  ;;  %853 = vrot.lane.b32.xlu0 %v5413_v25, %s5239_s13 }
  0xee   : > { %1216 = vrot.lane.b32.xlu1 %v5393_v21, %s5241_s14  ;;  %843 = vrot.lane.b32.xlu0 %v5455_v36, %s5239_s13 }
  0xf2   : > { %1220 = vrot.lane.b32.xlu1 %v5376_v7, %s5241_s14  ;;  %833 = vrot.lane.b32.xlu0 %v5459_v37, %s5239_s13 }
  0xf6   : > { %1204 = vrot.lane.b32.xlu1 %v5405_v24, %s5241_s14  ;;  %823 = vrot.lane.b32.xlu0 %v5310_v0, %s5239_s13 }
  0xfa   : > { %1208 = vrot.lane.b32.xlu1 %v5413_v25, %s5241_s14  ;;  %1214 = vrot.lane.b32.xlu0 %v5402_v23, %s5241_s14 }
  0xfc   : > { %v5560_v48 = vpop.permute.xlu1 %513 }
  0xfe   : > { %1202 = vrot.lane.b32.xlu1 %v5427_v28, %s5241_s14  ;;  %1218 = vrot.lane.b32.xlu0 %v5417_v26, %s5241_s14 }
 0x102   : > { %1196 = vrot.lane.b32.xlu1 %v5437_v31, %s5241_s14  ;;  %1212 = vrot.lane.b32.xlu0 %v5424_v27, %s5241_s14 }
 0x106   : > { %1200 = vrot.lane.b32.xlu1 %v5384_v17, %s5241_s14  ;;  %1206 = vrot.lane.b32.xlu0 %v5434_v30, %s5241_s14 }
 0x108   : > { %v5582_v53 = vpop.permute.xlu0 %503 }
 0x10a   : > { %1184 = vrot.lane.b32.xlu1 %v5447_v34, %s5241_s14  ;;  %1210 = vrot.lane.b32.xlu0 %v5380_v14, %s5241_s14 }
 0x10e   : > { %1188 = vrot.lane.b32.xlu1 %v5459_v37, %s5241_s14  ;;  %1194 = vrot.lane.b32.xlu0 %v5444_v33, %s5241_s14 }
 0x110   : > { %v5568_v50 = vpop.permute.xlu1 %493 }
 0x112   : > { %1182 = vrot.lane.b32.xlu1 %v5466_v38, %s5241_s14  ;;  %1198 = vrot.lane.b32.xlu0 %v5455_v36, %s5241_s14 }
 0x114   : > { %v5576_v52 = vpop.permute.xlu1 %865 }
 0x116   : > { %1176 = vrot.lane.b32.xlu1 %v5320_v3, %s5241_s14  ;;  %1192 = vrot.lane.b32.xlu0 %v5471_v40, %s5241_s14 }
 0x118   : > { %v5584_v54 = vpop.permute.xlu1 %855 }
 0x11a   : > { %1180 = vrot.lane.b32.xlu1 %v5318_v2, %s5241_s14  ;;  %1186 = vrot.lane.b32.xlu0 %v5478_v41, %s5241_s14 }
 0x11c   : > { %v510_v55 = vpop.permute.xlu1 %509  ;;  %v5590_v56 = vpop.permute.xlu0 %483 }
 0x11e   : > { %1584 = vrot.lane.b32.xlu1 %v5402_v23, %s5242_s15  ;;  %1190 = vrot.lane.b32.xlu0 %v5395_v22, %s5241_s14 }
 0x120   : > { %v498_v57 = vpop.permute.xlu1 %497  ;;  %v508_v58 = vpop.permute.xlu0 %507 }
 0x121   : > { %v533_v59 = vsel %vm515_vm4, %v508_v58, %v510_v55 }
 0x122   : > { %1582 = vrot.lane.b32.xlu1 %v5424_v27, %s5242_s15  ;;  %1174 = vrot.lane.b32.xlu0 %v5312_v1, %s5241_s14 }
 0x123   : > { %593 = vmatprep.subr.mxu0 %v533_v59 }
 0x124   : > { %v502_v60 = vpop.permute.xlu1 %501  ;;  %v512_v61 = vpop.permute.xlu0 %511 }
 0x125   : > { %v535_v62 = vsel %vm515_vm4, %v512_v61, %v5560_v48  ;;  %v534_v63 = vsel %vm515_vm4, %v510_v55, %v512_v61  ;;  %v531_v6 = vsel %vm515_vm4, %v502_v60, %v5582_v53 }
 0x126   : > { %1576 = vrot.lane.b32.xlu1 %v5434_v30, %s5242_s15  ;;  %1178 = vrot.lane.b32.xlu0 %v5310_v0, %s5241_s14 }
 0x127   : > { %676 = vmatprep.subr.mxu1 %v535_v62 }
 0x128   : > { %677 = vmatpush1.msra.mxu1 %v534_v63  ;;  %v496_v5 = vpop.permute.xlu1 %495  ;;  %v506_v8 = vpop.permute.xlu0 %505 }
 0x129   : > { %678 = vmatprep.subr.mxu1 %v531_v6  ;;  %v532_v9 = vsel %vm515_vm4, %v506_v8, %v508_v58  ;;  %v528_v15 = vsel %vm515_vm4, %v496_v5, %v498_v57  ;;  %v519_v6 = vsel %vm515_vm4, %v5550_v47, %v5530_v43 }
 0x12a   : > { %1564 = vrot.lane.b32.xlu1 %v5444_v33, %s5242_s15  ;;  %1172 = vrot.lane.b32.xlu0 %v5326_v4, %s5241_s14 }
 0x12b   : > { %594 = vmatpush1.msra.mxu0 %v532_v9  ;;  %v517_v9 = vsel %vm515_vm4, %v5542_v45, %v5524_v42 }
 0x12c   : > { %v490_v10 = vpop.permute.xlu1 %489  ;;  %v500_v11 = vpop.permute.xlu0 %499 }
 0x12d   : > { %v529_v12 = vsel %vm515_vm4, %v498_v57, %v500_v11  ;;  %v530_v13 = vsel %vm515_vm4, %v500_v11, %v502_v60 }
 0x12e   : > { %1562 = vrot.lane.b32.xlu1 %v5471_v40, %s5242_s15  ;;  %1586 = vrot.lane.b32.xlu0 %v5393_v21, %s5242_s15 }
 0x12f   : > { %595 = vmatprep.subr.mxu0 %v529_v12  ;;  %679 = vmatpush1.msra.mxu1 %v530_v13  ;;  %v516_v12 = vsel %vm515_vm4, %v5562_v49, %v5542_v45 }
 0x130   : > { %596 = vmatpush1.msra.mxu0 %v528_v15  ;;  %v478_v16 = vpop.permute.xlu1 %477  ;;  %v488_v18 = vpop.permute.xlu0 %487  ;;  %v5667_v15 = vld [vmem:[%s8294_s1 + $0x18] sm:$0xff] }
 0x131   : > { %v525_v19 = vsel %vm515_vm4, %v488_v18, %v490_v10 }
 0x132   : > { %1556 = vrot.lane.b32.xlu1 %v5478_v41, %s5242_s15  ;;  %1574 = vrot.lane.b32.xlu0 %v5405_v24, %s5242_s15 }
 0x133   : > { %597 = vmatprep.subr.mxu0 %v525_v19 }
 0x134   : > { %v482_v20 = vpop.permute.xlu1 %481  ;;  %v492_v29 = vpop.permute.xlu0 %491 }
 0x135   : > { %v527_v32 = vsel %vm515_vm4, %v492_v29, %v5568_v50  ;;  %v526_v35 = vsel %vm515_vm4, %v490_v10, %v492_v29  ;;  %v523_v57 = vsel %vm515_vm4, %v482_v20, %v5590_v56  ;;  %v518_v10 = vsel %vm515_vm4, %v5524_v42, %v5550_v47 }
 0x136   : > { %1544 = vrot.lane.b32.xlu1 %v5312_v1, %s5242_s15  ;;  %1572 = vrot.lane.b32.xlu0 %v5427_v28, %s5242_s15 }
 0x137   : > { %680 = vmatprep.subr.mxu1 %v527_v32 }
 0x138   : > { %681 = vmatpush1.msra.mxu1 %v526_v35  ;;  %v476_v55 = vpop.permute.xlu1 %475  ;;  %v486_v58 = vpop.permute.xlu0 %485  ;;  %v5729_v35 = vld [vmem:[%s8294_s1 + $0x28] sm:$0xff] }
 0x139   : > { %682 = vmatprep.subr.mxu1 %v523_v57  ;;  %v524_v59 = vsel %vm515_vm4, %v486_v58, %v488_v18  ;;  %v520_v5 = vsel %vm515_vm4, %v476_v55, %v478_v16 }
 0x13a   : > { %1542 = vrot.lane.b32.xlu1 %v5326_v4, %s5242_s15  ;;  %1566 = vrot.lane.b32.xlu0 %v5437_v31, %s5242_s15 }
 0x13b   : > { %598 = vmatpush1.msra.mxu0 %v524_v59  ;;  %v5750_v59 = vld [vmem:[%s8294_s1] sm:$0xff] }
 0x13c   : > { %v860_v60 = vpop.permute.xlu1 %859  ;;  %v480_v61 = vpop.permute.xlu0 %479 }
 0x13d   : > { %v521_v62 = vsel %vm515_vm4, %v478_v16, %v480_v61  ;;  %v522_v63 = vsel %vm515_vm4, %v480_v61, %v482_v20 }
 0x13e   : > { %1590 = vrot.lane.b32.xlu1 %v5376_v7, %s5242_s15  ;;  %1554 = vrot.lane.b32.xlu0 %v5447_v34, %s5242_s15 }
 0x13f   : > { %599 = vmatprep.subr.mxu0 %v521_v62  ;;  %683 = vmatpush1.msra.mxu1 %v522_v63 }
 0x140   : > { %600 = vmatpush1.msra.mxu0 %v520_v5  ;;  %684 = vmatprep.subr.mxu1 %v519_v6  ;;  %v858_v8 = vpop.permute.xlu1 %857  ;;  %v5657_v11 = vpop.permute.xlu0 %861 }
 0x141   : > { %601 = vmatprep.subr.mxu0 %v517_v9  ;;  %685 = vmatpush1.msra.mxu1 %v518_v10  ;;  %v885_v13 = vsel %vm867_vm5, %v860_v60, %v5657_v11  ;;  %v884_v42 = vsel %vm867_vm5, %v858_v8, %v860_v60  ;;  %v868_v60 = vsel %vm867_vm5, %v5548_v46, %v5540_v44  ;;  %v459_v9 = vld [vmem:[%s8294_s1 + $0x8] sm:$0xff] }
 0x142   : > { %602 = vmatpush1.msra.mxu0 %v516_v12  ;;  %1580 = vrot.lane.b32.xlu1 %v5380_v14, %s5242_s15 }
 0x143   : > { %1552 = vrot.lane.b32.xlu0 %v5466_v38, %s5242_s15  ;;  %5072 = vmatprep.subr.mxu0 %v8311_v39 }
 0x144   : > { %944 = vmatprep.subr.mxu1 %v885_v13  ;;  %4945 = vmatmul.mubr.msk.f32.vlgmr.msra.gmra.mxu0 %vm8309_vm6, %v5667_v15  ;;  %v5677_v45 = vpop.permute.xlu1 %851  ;;  %v850_v47 = vpop.permute.xlu0 %849 }
 0x145   : > { %4948 = vmatmul.mubr.msk.f32.vlgmr.msra.gmra.mxu1 %vm8309_vm6, %v5667_v15  ;;  %5073 = vmatpush3.msra.mxu0 %v5560_v48  ;;  %v881_v49 = vsel %vm867_vm5, %v850_v47, %v5677_v45 }
 0x146   : > { %945 = vmatpush1.msra.mxu1 %v884_v42  ;;  %5074 = vmatprep.subr.mxu0 %v8311_v39 }
 0x147   : > { %5075 = vmatpush3.msra.mxu0 %v5582_v53  ;;  %1570 = vrot.lane.b32.xlu1 %v5384_v17, %s5242_s15 }
 0x148   : > { %1546 = vrot.lane.b32.xlu0 %v5320_v3, %s5242_s15  ;;  %5076 = vmatprep.subr.mxu0 %v8311_v39  ;;  %v840_v16 = vpop.permute.xlu1 %839  ;;  %v848_v18 = vpop.permute.xlu0 %847 }
 0x149   : > { %946 = vmatprep.subr.mxu1 %v881_v49  ;;  %5077 = vmatpush3.msra.mxu0 %v5568_v50  ;;  %v880_v48 = vsel %vm867_vm5, %v848_v18, %v850_v47 }
 0x14a   : > { %5078 = vmatprep.subr.mxu0 %v8311_v39  ;;  %947 = vmatpush1.msra.mxu1 %v880_v48 }
 0x14b   : > { %5079 = vmatpush3.msra.mxu0 %v5590_v56  ;;  %1560 = vrot.lane.b32.xlu1 %v5395_v22, %s5242_s15  ;;  %v5710_v56 = vld [vmem:[%s8294_s1 + $0x20] sm:$0xff] }
 0x14c   : > { %1588 = vrot.lane.b32.xlu0 %v5417_v26, %s5242_s15  ;;  %5080 = vmatprep.subr.mxu0 %v8311_v39  ;;  %v838_v53 = vpop.permute.xlu1 %837  ;;  %v5700_v19 = vpop.permute.xlu0 %841 }
 0x14d   : > { %5081 = vmatpush3.msra.mxu0 %v5530_v43  ;;  %v876_v50 = vsel %vm867_vm5, %v838_v53, %v840_v16  ;;  %v877_v20 = vsel %vm867_vm5, %v840_v16, %v5700_v19  ;;  %724 = vmatprep.mubr.f32.mxu1 %v8311_v39 }
 0x14e   : > { %948 = vmatprep.subr.mxu1 %v877_v20  ;;  %641 = vmatprep.mubr.f32.mxu0 %v8311_v39 }
 0x14f   : > { %1550 = vrot.lane.b32.xlu1 %v5318_v2, %s5242_s15  ;;  %949 = vmatpush1.msra.mxu1 %v876_v50 }
 0x150   : > { %1578 = vrot.lane.b32.xlu0 %v5413_v25, %s5242_s15  ;;  %v5717_v43 = vpop.permute.xlu1 %831  ;;  %v830_v29 = vpop.permute.xlu0 %829  ;;  %4949 = vmatmul.mubr.msk.f32.gmra.mxu1 %vm8309_vm6, %v5710_v56 }
 0x151   : > { %v873_v32 = vsel %vm867_vm5, %v830_v29, %v5717_v43  ;;  %4946 = vmatmul.mubr.msk.f32.gmra.mxu0 %vm8309_vm6, %v5710_v56  ;;  %730 = vmatprep.mubr.f32.mxu1 %v8311_v39 }
 0x152   : > { %950 = vmatprep.subr.mxu1 %v873_v32  ;;  %647 = vmatprep.mubr.f32.mxu0 %v8311_v39 }
 0x153   : > { %1956 = vrot.lane.b32.xlu1 %v5393_v21, %s5243_s22  ;;  %v869_v21 = vsel %vm867_vm5, %v5540_v44, %v5570_v51 }
 0x154   : > { %1568 = vrot.lane.b32.xlu0 %v5455_v36, %s5242_s15  ;;  %v846_v55 = vpop.permute.xlu1 %845  ;;  %v828_v57 = vpop.permute.xlu0 %827  ;;  %4950 = vmatmul.mubr.msk.f32.gmra.mxu1 %vm8309_vm6, %v5729_v35 }
 0x155   : > { %v872_v58 = vsel %vm867_vm5, %v828_v57, %v830_v29  ;;  %4947 = vmatmul.mubr.msk.f32.gmra.mxu0 %vm8309_vm6, %v5729_v35  ;;  %986 = vmatprep.mubr.f32.mxu1 %v8311_v39 }
 0x156   : > { %951 = vmatpush1.msra.mxu1 %v872_v58  ;;  %5082 = vmatprep.mubr.msk.f32.mxu0 %vm8305_vm7, %v8311_v39 }
 0x157   : > { %1960 = vrot.lane.b32.xlu1 %v5376_v7, %s5243_s22  ;;  %952 = vmatprep.subr.mxu1 %v869_v21 }
 0x158   : > { %1558 = vrot.lane.b32.xlu0 %v5459_v37, %s5242_s15  ;;  %v836_v61 = vpop.permute.xlu1 %835  ;;  %953 = vmatpush1.msra.mxu1 %v868_v60  ;;  %v864_v62 = vpop.permute.xlu0 %863 }
 0x159   : > { %5091 = vmatprep.subr.mxu1 %v8311_v39  ;;  %4954 = vmatmul.mubr.msk.f32.vlgmr.msra.gmra.mxu1 %vm8309_vm6, %v5750_v59  ;;  %v887_v63 = vsel %vm867_vm5, %v864_v62, %v5576_v52  ;;  %v886_v44 = vsel %vm867_vm5, %v5657_v11, %v864_v62 }
 0x15a   : > { %1027 = vmatprep.subr.mxu0 %v887_v63  ;;  %5092 = vmatpush3.msra.mxu1 %v5576_v52  ;;  %v2280_v63 = vld [vmem:[%s8295_s2 + $0x10] sm:$0xff] }
 0x15b   : > { %1944 = vrot.lane.b32.xlu1 %v5405_v24, %s5243_s22  ;;  %5083 = vmatmul.mubr.msk.f32.vlgmr.msra.gmra.mxu0 %vm8309_vm6, %v5667_v15 }
 0x15c   : > { %1548 = vrot.lane.b32.xlu0 %v5310_v0, %s5242_s15  ;;  %1028 = vmatpush1.msra.mxu0 %v886_v44  ;;  %v826_v7 = vpop.permute.xlu1 %825  ;;  %v854_v46 = vpop.permute.xlu0 %853  ;;  %v284_v44 = vlaneseq }
 0x15d   : > { %5093 = vmatprep.subr.mxu1 %v8311_v39  ;;  %v883_v5 = vsel %vm867_vm5, %v854_v46, %v5584_v54  ;;  %992 = vmatprep.mubr.f32.mxu1 %v8311_v39  ;;  %v882_v24 = vsel %vm867_vm5, %v5677_v45, %v854_v46  ;;  %v2279_v46 = vld [vmem:[%s8295_s2 + $0x8] sm:$0xff] }
 0x15e   : > { %5094 = vmatpush3.msra.mxu1 %v5584_v54  ;;  %1029 = vmatprep.subr.mxu0 %v883_v5  ;;  %v5917_v5 = vld [vmem:[%s8294_s1 + $0x30] sm:$0xff] }
 0x15f   : > { %5095 = vmatprep.subr.mxu1 %v8311_v39  ;;  %1948 = vrot.lane.b32.xlu1 %v5413_v25, %s5243_s22 }
 0x160   : > { %1954 = vrot.lane.b32.xlu0 %v5402_v23, %s5243_s22  ;;  %5096 = vmatpush3.msra.mxu1 %v846_v55  ;;  %v1217_v52 = vpop.permute.xlu1 %1216  ;;  %v844_v6 = vpop.permute.xlu0 %843 }
 0x161   : > { %1030 = vmatpush1.msra.mxu0 %v882_v24  ;;  %5097 = vmatprep.subr.mxu1 %v8311_v39  ;;  %v879_v54 = vsel %vm867_vm5, %v844_v6, %v846_v55  ;;  %v878_v8 = vsel %vm867_vm5, %v5700_v19, %v844_v6  ;;  %v5919_v24 = vand.u32 127, %v284_v44 }
 0x162   : > { %5098 = vmatpush3.msra.mxu1 %v836_v61  ;;  %1031 = vmatprep.subr.mxu0 %v879_v54 }
 0x163   : > { %1942 = vrot.lane.b32.xlu1 %v5427_v28, %s5243_s22  ;;  %1032 = vmatpush1.msra.mxu0 %v878_v8  ;;  %v460_v28 = vld [vmem:[%s8294_s1 + $0x10] sm:$0xff]  ;;  %v5930_v8 = vld [vmem:[%s8294_s1 + $0x38] sm:$0xff] }
 0x164   : > { %1958 = vrot.lane.b32.xlu0 %v5417_v26, %s5243_s22  ;;  %v5796_v23 = vpop.permute.xlu1 %1220  ;;  %v834_v25 = vpop.permute.xlu0 %833  ;;  %4955 = vmatmul.mubr.msk.f32.gmra.mxu1 %vm8309_vm6, %v459_v9 }
 0x165   : > { %v875_v10 = vsel %vm867_vm5, %v834_v25, %v836_v61  ;;  %v874_v11 = vsel %vm867_vm5, %v5717_v43, %v834_v25  ;;  %5085 = vmatprep.mubr.msk.f32.mxu0 %vm8305_vm7, %v8311_v39  ;;  %998 = vmatprep.mubr.f32.mxu1 %v8311_v39  ;;  %v5936_v25 = vadd.s32 256, %v5919_v24 }
 0x166   : > { %1033 = vmatprep.subr.mxu0 %v875_v10  ;;  %5086 = vmatmul.mubr.msk.f32.gmra.mxu0 %vm8309_vm6, %v5710_v56  ;;  %v5939_v10 = vadd.s32 384, %v5919_v24 }
 0x167   : > { %1936 = vrot.lane.b32.xlu1 %v5437_v31, %s5243_s22  ;;  %1034 = vmatpush1.msra.mxu0 %v874_v11  ;;  %v5942_v11 = vadd.s32 512, %v5919_v24 }
 0x168   : > { %1952 = vrot.lane.b32.xlu0 %v5424_v27, %s5243_s22  ;;  %v1205_v26 = vpop.permute.xlu1 %1204  ;;  %v824_v12 = vpop.permute.xlu0 %823  ;;  %4956 = vmatmul.mubr.msk.f32.gmra.mxu1 %vm8309_vm6, %v460_v28 }
 0x169   : > { %v871_v13 = vsel %vm867_vm5, %v824_v12, %v826_v7  ;;  %v870_v15 = vsel %vm867_vm5, %v5570_v51, %v824_v12  ;;  %5099 = vmatprep.subr.mxu1 %v8311_v39  ;;  %5088 = vmatprep.mubr.msk.f32.mxu0 %vm8305_vm7, %v8311_v39  ;;  %v293_v12 = vcvt.s32.f32 %v5939_v10 }
 0x16a   : > { %1035 = vmatprep.subr.mxu0 %v871_v13  ;;  %5100 = vmatpush3.msra.mxu1 %v826_v7  ;;  %v5245_v7 = vmov 0  }
 0x16b   : > { %1940 = vrot.lane.b32.xlu1 %v5384_v17, %s5243_s22  ;;  %1036 = vmatpush1.msra.mxu0 %v870_v15 }
 0x16c   : > { %1946 = vrot.lane.b32.xlu0 %v5434_v30, %s5243_s22  ;;  %v1209_v27 = vpop.permute.xlu1 %1208  ;;  %v1215_v31 = vpop.permute.xlu0 %1214  ;;  %5089 = vmatmul.mubr.msk.f32.gmra.mxu0 %vm8309_vm6, %v5729_v35 }
 0x16d   : > { %v1240_v51 = vsel %vm1222_vm8, %v1215_v31, %v1217_v52  ;;  %5101 = vmatprep.mubr.msk.f32.mxu1 %vm8305_vm7, %v8311_v39  ;;  %1069 = vmatprep.mubr.f32.mxu0 %v8311_v39 }
 0x16e   : > { %1299 = vmatprep.subr.mxu0 %v1240_v51  ;;  %5102 = vmatmul.mubr.msk.f32.vlgmr.msra.gmra.mxu1 %vm8309_vm6, %v5750_v59 }
 0x16f   : > { %1924 = vrot.lane.b32.xlu1 %v5447_v34, %s5243_s22  ;;  %5104 = vmatprep.mubr.msk.f32.mxu1 %vm8305_vm7, %v8311_v39 }
 0x170   : > { %1950 = vrot.lane.b32.xlu0 %v5380_v14, %s5243_s22  ;;  %v1203_v17 = vpop.permute.xlu1 %1202  ;;  %v1219_v30 = vpop.permute.xlu0 %1218  ;;  %4957 = vmatmul.mubr.msk.f32.vlgmr.msra.gmra.mxu0 %vm8309_vm6, %v5750_v59 }
 0x171   : > { %v1242_v42 = vsel %vm1222_vm8, %v1219_v30, %v5796_v23  ;;  %v1241_v45 = vsel %vm1222_vm8, %v1217_v52, %v1219_v30  ;;  %1075 = vmatprep.mubr.f32.mxu0 %v8311_v39  ;;  %v1235_v16 = vsel %vm1222_vm8, %v1203_v17, %v1205_v26  ;;  %5204 = vset.pattern.permute.xlu1 %v5245_v7 }
 0x172   : > { %1382 = vmatprep.subr.mxu1 %v1242_v42  ;;  %5105 = vmatmul.mubr.msk.f32.gmra.mxu1 %vm8309_vm6, %v459_v9  ;;  %v298_v42 = vadd.f32 0.5, %v293_v12 }
 0x173   : > { %1928 = vrot.lane.b32.xlu1 %v5459_v37, %s5243_s22  ;;  %1383 = vmatpush1.msra.mxu1 %v1241_v45 }
 0x174   : > { %1934 = vrot.lane.b32.xlu0 %v5444_v33, %s5243_s22  ;;  %v1197_v14 = vpop.permute.xlu1 %1196  ;;  %v1213_v34 = vpop.permute.xlu0 %1212  ;;  %4958 = vmatmul.mubr.msk.f32.gmra.mxu0 %vm8309_vm6, %v459_v9  ;;  %v5933_v9 = vadd.s32 128, %v5919_v24 }
 0x175   : > { %v1239_v47 = vsel %vm1222_vm8, %v1213_v34, %v1215_v31  ;;  %1081 = vmatprep.mubr.f32.mxu0 %v8311_v39  ;;  %5107 = vmatprep.mubr.msk.f32.mxu1 %vm8305_vm7, %v8311_v39  ;;  %v290_v31 = vcvt.s32.f32 %v5919_v24 }
 0x176   : > { %1300 = vmatpush1.msra.mxu0 %v1239_v47  ;;  %5108 = vmatmul.mubr.msk.f32.gmra.mxu1 %vm8309_vm6, %v460_v28 }
 0x177   : > { %1922 = vrot.lane.b32.xlu1 %v5466_v38, %s5243_s22  ;;  %1424 = vmatprep.mubr.f32.mxu1 %v8311_v39 }
 0x178   : > { %1938 = vrot.lane.b32.xlu0 %v5455_v36, %s5243_s22  ;;  %v5861_v33 = vpop.permute.xlu1 %1200  ;;  %v1207_v37 = vpop.permute.xlu0 %1206  ;;  %4959 = vmatmul.mubr.msk.f32.gmra.mxu0 %vm8309_vm6, %v460_v28  ;;  %v291_v28 = vcvt.s32.f32 %v5933_v9 }
 0x179   : > { %v1236_v49 = vsel %vm1222_vm8, %v1205_v26, %v1207_v37  ;;  %1341 = vmatprep.mubr.f32.mxu0 %v8311_v39  ;;  %v1237_v48 = vsel %vm1222_vm8, %v1207_v37, %v1209_v27  ;;  %5205 = vset.pattern.permute.xlu0 %v5245_v7  ;;  %v292_v26 = vcvt.s32.f32 %v5936_v25 }
 0x17a   : > { %1301 = vmatprep.subr.mxu0 %v1236_v49  ;;  %v296_v17 = vadd.f32 0.5, %v291_v28  ;;  %v5974_v49 = vld [vmem:[%s8294_s1 + $0x40] sm:$0xff] }
 0x17b   : > { %1302 = vmatpush1.msra.mxu0 %v1235_v16  ;;  %1916 = vrot.lane.b32.xlu1 %v5320_v3, %s5243_s22  ;;  %v297_v30 = vadd.f32 0.5, %v292_v26  ;;  %v303_v16 = vmul.f32 0.05, %v298_v42 }
 0x17c   : > { %1932 = vrot.lane.b32.xlu0 %v5471_v40, %s5243_s22  ;;  %v1185_v36 = vpop.permute.xlu1 %1184  ;;  %v5871_v38 = vpop.permute.xlu0 %1210 }
 0x17d   : > { %v1238_v18 = vsel %vm1222_vm8, %v1209_v27, %v5871_v38  ;;  %v294_v27 = vcvt.s32.f32 %v5942_v11  ;;  %v302_v34 = vmul.f32 0.05, %v297_v30 }
 0x17e   : > { %1384 = vmatprep.subr.mxu1 %v1238_v18 }
 0x17f   : > { %1385 = vmatpush1.msra.mxu1 %v1237_v48  ;;  %1920 = vrot.lane.b32.xlu1 %v5318_v2, %s5243_s22  ;;  %v299_v45 = vadd.f32 0.5, %v294_v27  ;;  %v307_v48 = vfloor.f32 %v302_v34 }
 0x180   : > { %1926 = vrot.lane.b32.xlu0 %v5478_v41, %s5243_s22  ;;  %v1189_v3 = vpop.permute.xlu1 %1188  ;;  %v1195_v53 = vpop.permute.xlu0 %1194 }
 0x181   : > { %v1232_v40 = vsel %vm1222_vm8, %v1195_v53, %v1197_v14 }
 0x182   : > { %1303 = vmatprep.subr.mxu0 %v1232_v40 }
 0x183   : > { %2293 = vperm.xlu1 %5204, %v2280_v63  }
 0x184   : > { %1930 = vrot.lane.b32.xlu0 %v5395_v22, %s5243_s22  ;;  %v1183_v19 = vpop.permute.xlu1 %1182  ;;  %v1199_v50 = vpop.permute.xlu0 %1198 }
 0x185   : > { %v1234_v20 = vsel %vm1222_vm8, %v1199_v50, %v5861_v33  ;;  %v1233_v56 = vsel %vm1222_vm8, %v1197_v14, %v1199_v50  ;;  %v1227_v35 = vsel %vm1222_vm8, %v1183_v19, %v1185_v36  ;;  %v301_v14 = vmul.f32 0.05, %v296_v17 }
 0x186   : > { %1386 = vmatprep.subr.mxu1 %v1234_v20  ;;  %v5172_v19 = vtrunc.f32 %v307_v48 }
 0x187   : > { %1387 = vmatpush1.msra.mxu1 %v1233_v56  ;;  %v2278_v56 = vld [vmem:[%s8295_s2] sm:$0xff] }
 0x188   : > { %1914 = vrot.lane.b32.xlu0 %v5312_v1, %s5243_s22  ;;  %v1177_v2 = vpop.permute.xlu1 %1176  ;;  %v1193_v41 = vpop.permute.xlu0 %1192  ;;  %2283 = vperm.xlu1 %5204, %v2278_v56  }
 0x189   : > { %v1231_v43 = vsel %vm1222_vm8, %v1193_v41, %v1195_v53 }
 0x18a   : > { %1304 = vmatpush1.msra.mxu0 %v1231_v43 }
 0x18c   : > { %1918 = vrot.lane.b32.xlu0 %v5310_v0, %s5243_s22  ;;  %v5891_v22 = vpop.permute.xlu1 %1180  ;;  %v1187_v29 = vpop.permute.xlu0 %1186 }
 0x18d   : > { %v1228_v32 = vsel %vm1222_vm8, %v1185_v36, %v1187_v29  ;;  %v1229_v0 = vsel %vm1222_vm8, %v1187_v29, %v1189_v3  ;;  %v304_v36 = vmul.f32 0.05, %v299_v45 }
 0x18e   : > { %1305 = vmatprep.subr.mxu0 %v1228_v32 }
 0x18f   : > { %1306 = vmatpush1.msra.mxu0 %v1227_v35  ;;  %v309_v53 = vfloor.f32 %v304_v36 }
 0x190   : > { %1912 = vrot.lane.b32.xlu0 %v5326_v4, %s5243_s22  ;;  %v1585_v1 = vpop.permute.xlu1 %1584  ;;  %v5897_v55 = vpop.permute.xlu0 %1190  ;;  %s5247_s22 = smov 108  }
 0x191   : > { %v1230_v57 = vsel %vm1222_vm8, %v1189_v3, %v5897_v55  ;;  %v308_v3 = vfloor.f32 %v303_v16  ;;  %v5176_v35 = vtrunc.f32 %v309_v53 }
 0x192   : > { %1388 = vmatprep.subr.mxu1 %v1230_v57 }
 0x193   : > { %1389 = vmatpush1.msra.mxu1 %v1229_v0  ;;  %v5174_v41 = vtrunc.f32 %v308_v3  ;;  %v5177_v7 = vcvt.f32.s32 %v5176_v35 }
 0x194   : > { %v1583_v58 = vpop.permute.xlu1 %1582  ;;  %v1175_v21 = vpop.permute.xlu0 %1174  ;;  %2288 = vperm.xlu0 %5205, %v2279_v46  }
 0x195   : > { %v1224_v59 = vsel %vm1222_vm8, %v1175_v21, %v1177_v2 }
 0x196   : > { %1307 = vmatprep.subr.mxu0 %v1224_v59 }
 0x198   : > { %v5903_v60 = vpop.permute.xlu1 %1576  ;;  %v1179_v61 = vpop.permute.xlu0 %1178 }
 0x199   : > { %v1226_v4 = vsel %vm1222_vm8, %v1179_v61, %v5891_v22  ;;  %v1225_v62 = vsel %vm1222_vm8, %v1177_v2, %v1179_v61  ;;  %v5992_v2 = vstv %s4941_s23  ;;  %v5175_v61 = vcvt.f32.s32 %v5174_v41  ;;  %s5248_s23 = smov 88  }
 0x19a   : > { %1390 = vmatprep.subr.mxu1 %v1226_v4 }
 0x19b   : > { %1391 = vmatpush1.msra.mxu1 %v1225_v62  ;;  %v331_v28 = vadd.s32 %v5175_v61, %v5992_v2 }
 0x19c   : > { %v5921_v52 = vpop.permute.xlu1 %1564  ;;  %v1173_v6 = vpop.permute.xlu0 %1172  ;;  %4969 = vmatmul.mubr.msk.f32.vlgmr.msra.gmra.mxu1 %vm8309_vm6, %v5917_v5 }
 0x19d   : > { %v1223_v54 = vsel %vm1222_vm8, %v1173_v6, %v1175_v21  ;;  %1430 = vmatprep.mubr.f32.mxu1 %v8311_v39  ;;  %v8410_v6 = vmov 0  ;;  %vm336_vm2 = vcmp.ge.s32.totalorder %v331_v28, 2 }
 0x19e   : > { %1308 = vmatpush1.msra.mxu0 %v1223_v54 }
 0x19f   : > { %5110 = vmatprep.subr.mxu0 %v8311_v39  ;;  %4966 = vmatmul.mubr.msk.f32.vlgmr.msra.gmra.mxu0 %vm8309_vm6, %v5917_v5 }
 0x1a0   : > { %v5950_v13 = vpop.permute.xlu1 %1562  ;;  %5111 = vmatpush3.msra.mxu0 %v5796_v23  ;;  %v5953_v15 = vpop.permute.xlu0 %1586  ;;  %4970 = vmatmul.mubr.msk.f32.gmra.mxu1 %vm8309_vm6, %v5930_v8  ;;  %v1609_v23 = vsel %vm8310_vm9, %v1583_v58, %v1585_v1 }
 0x1a1   : > { %5112 = vmatprep.subr.mxu0 %v8311_v39  ;;  %v1610_v51 = vsel %vm8310_vm9, %v1585_v1, %v5953_v15  ;;  %1347 = vmatprep.mubr.f32.mxu0 %v8311_v39  ;;  %v1601_v58 = vsel %vm8310_vm9, %v5950_v13, %v5921_v52  ;;  %v318_v13 = vmul.u32 20, %v5175_v61 }
 0x1a2   : > { %5113 = vmatpush3.msra.mxu0 %v5871_v38  ;;  %1669 = vmatprep.subr.mxu1 %v1610_v51  ;;  %v295_v38 = vadd.f32 0.5, %v290_v31  ;;  %v319_v31 = vmul.u32 20, %v5177_v7 }
 0x1a3   : > { %5114 = vmatprep.subr.mxu0 %v8311_v39  ;;  %1670 = vmatpush1.msra.mxu1 %v1609_v23  ;;  %v323_v23 = vsub.s32 %v5939_v10, %v318_v13 }
 0x1a4   : > { %v5967_v47 = vpop.permute.xlu1 %1556  ;;  %5115 = vmatpush3.msra.mxu0 %v5861_v33  ;;  %v1575_v37 = vpop.permute.xlu0 %1574  ;;  %1436 = vmatprep.mubr.f32.mxu1 %v8311_v39  ;;  %v306_v33 = vfloor.f32 %v301_v14  ;;  %v300_v43 = vmul.f32 0.05, %v295_v38  ;;  %v324_v14 = vsub.s32 %v5942_v11, %v319_v31  ;;  %v6098_v38 = vld [vmem:[%s8294_s1 + $0x48] sm:$0xff] }
 0x1a5   : > { %5116 = vmatprep.subr.mxu0 %v8311_v39  ;;  %v1606_v18 = vsel %vm8310_vm9, %v1575_v37, %v5903_v60  ;;  %4967 = vmatmul.mubr.msk.f32.gmra.mxu0 %vm8309_vm6, %v5930_v8 }
 0x1a6   : > { %5117 = vmatpush3.msra.mxu0 %v5897_v55  ;;  %1671 = vmatprep.subr.mxu1 %v1606_v18  ;;  %v5170_v40 = vtrunc.f32 %v306_v33  ;;  %v305_v4 = vfloor.f32 %v300_v43  ;;  %v4977_v43 = vld [vmem:[%s8294_s1 + $0x58] sm:$0xff] }
 0x1a7   : > { %5118 = vmatprep.subr.mxu0 %v8311_v39  ;;  %4971 = vmatmul.mubr.msk.f32.gmra.mxu1 %vm8309_vm6, %v5974_v49 }
 0x1a8   : > { %v5985_v50 = vpop.permute.xlu1 %1544  ;;  %5119 = vmatpush3.msra.mxu0 %v5891_v22  ;;  %v1573_v20 = vpop.permute.xlu0 %1572  ;;  %1353 = vmatprep.mubr.f32.mxu0 %v8311_v39  ;;  %v5171_v32 = vcvt.f32.s32 %v5170_v40  ;;  %v5173_v22 = vcvt.f32.s32 %v5172_v19  ;;  %v5168_v26 = vtrunc.f32 %v305_v4 }
 0x1a9   : > { %v1605_v29 = vsel %vm8310_vm9, %v1573_v20, %v1575_v37  ;;  %4968 = vmatmul.mubr.msk.f32.gmra.mxu0 %vm8309_vm6, %v5974_v49  ;;  %1711 = vmatprep.mubr.f32.mxu1 %v8311_v39  ;;  %v6135_v20 = vld [vmem:[%s8294_s1 + $0x50] sm:$0xff] }
 0x1aa   : > { %1672 = vmatpush1.msra.mxu1 %v1605_v29  ;;  %5120 = vmatprep.mubr.msk.f32.mxu0 %vm8305_vm7, %v8311_v39  ;;  %v316_v1 = vmul.u32 20, %v5171_v32  ;;  %v317_v55 = vmul.u32 20, %v5173_v22  ;;  %v329_v57 = vadd.s32 %v5171_v32, %v5992_v2  ;;  %v330_v0 = vadd.s32 %v5173_v22, %v5992_v2 }
 0x1ab   : > { %v5169_v17 = vcvt.f32.s32 %v5168_v26 }
 0x1ac   : > { %v6005_v21 = vpop.permute.xlu1 %1542  ;;  %v6007_v59 = vpop.permute.xlu0 %1566  ;;  %v321_v63 = vsub.s32 %v5933_v9, %v316_v1  ;;  %v322_v44 = vsub.s32 %v5936_v25, %v317_v55  ;;  %vm334_vm10 = vcmp.ge.s32.totalorder %v329_v57, 2  ;;  %vm335_vm11 = vcmp.ge.s32.totalorder %v330_v0, 2 }
 0x1ad   : > { %v1602_v62 = vsel %vm8310_vm9, %v5921_v52, %v6007_v59  ;;  %5121 = vmatmul.mubr.msk.f32.vlgmr.msra.gmra.mxu0 %vm8309_vm6, %v5917_v5  ;;  %vm339_vm12 = vcmp.lt.s32.totalorder %v329_v57, 18  ;;  %vm340_vm13 = vcmp.lt.s32.totalorder %v330_v0, 18  ;;  %vm349_vm15 = vcmp.ge.s32.totalorder %v329_v57, 22 }
 0x1ae   : > { %1673 = vmatprep.subr.mxu1 %v1602_v62  ;;  %5123 = vmatprep.mubr.msk.f32.mxu0 %vm8305_vm7, %v8311_v39  ;;  %vm6018_vm14 = vmand %vm334_vm10, %vm339_vm12  ;;  %vm350_vm4 = vcmp.ge.s32.totalorder %v330_v0, 22  ;;  %vm354_vm5 = vcmp.lt.s32.totalorder %v329_v57, 38  ;;  %vm355_vm8 = vcmp.lt.s32.totalorder %v330_v0, 38  ;;  %v8414_v25 = vmov 0 }
 0x1af   : > { %1674 = vmatpush1.msra.mxu1 %v1601_v58  ;;  %vm6024_vm1 = vmand %vm335_vm11, %vm340_vm13  ;;  %vm369_vm11 = vcmp.ge.s32.totalorder %v321_v63, 2  ;;  %vm374_vm13 = vcmp.lt.s32.totalorder %v321_v63, 18  ;;  %vm375_vm0 = vcmp.lt.s32.totalorder %v322_v44, 18  ;;  %v315_v11 = vmul.u32 20, %v5169_v17 }
 0x1b0   : > { %v6022_v5 = vpop.permute.xlu1 %1590  ;;  %v1555_v52 = vpop.permute.xlu0 %1554  ;;  %v8411_v6 = vsel %vm6024_vm1, 4294967295, %v8410_v6  ;;  %vm6032_vm10 = vmand %vm349_vm15, %vm354_vm5  ;;  %vm370_vm5 = vcmp.ge.s32.totalorder %v322_v44, 2  ;;  %v328_v48 = vadd.s32 %v5169_v17, %v5992_v2 }
 0x1b1   : > { %v1598_v54 = vsel %vm8310_vm9, %v1555_v52, %v5967_v47  ;;  %5124 = vmatmul.mubr.msk.f32.gmra.mxu0 %vm8309_vm6, %v5930_v8  ;;  %vm6038_vm12 = vmand %vm350_vm4, %vm355_vm8  ;;  %v332_v8 = vadd.s32 %v5177_v7, %v5992_v2  ;;  %v320_v40 = vsub.s32 %v5919_v24, %v315_v11 }
 0x1b2   : > { %1675 = vmatprep.subr.mxu1 %v1598_v54  ;;  %5126 = vmatprep.mubr.msk.f32.mxu0 %vm8305_vm7, %v8311_v39  ;;  %v8415_v25 = vsel %vm6038_vm12, 4294967295, %v8414_v25  ;;  %vm364_vm15 = vmor %vm6018_vm14, %vm6032_vm10  ;;  %vm341_vm7 = vcmp.lt.s32.totalorder %v331_v28, 18 }
 0x1b3   : > { %vm379_vm8 = vmand %vm369_vm11, %vm374_vm13  ;;  %vm337_vm12 = vcmp.ge.s32.totalorder %v332_v8, 2  ;;  %vm342_vm1 = vcmp.lt.s32.totalorder %v332_v8, 18  ;;  %vm8416_vm11 = vnez %v8411_v6  ;;  %vm8417_vm13 = vnez %v8415_v25 }
 0x1b4   : > { %v6048_v12 = vpop.permute.xlu1 %1580  ;;  %vm380_vm3 = vmand %vm370_vm5, %vm375_vm0  ;;  %vm351_vm0 = vcmp.ge.s32.totalorder %v331_v28, 22  ;;  %vm356_vm5 = vcmp.lt.s32.totalorder %v331_v28, 38  ;;  %vm352_vm10 = vcmp.ge.s32.totalorder %v332_v8, 22 }
 0x1b5   : > { %v1553_v27 = vpop.permute.xlu0 %1552  ;;  %5127 = vmatmul.mubr.msk.f32.gmra.mxu0 %vm8309_vm6, %v5974_v49  ;;  %vm384_vm4 = vmand %vm364_vm15, %vm379_vm8  ;;  %vm357_vm15 = vcmp.lt.s32.totalorder %v332_v8, 38  ;;  %vm372_vm8 = vcmp.ge.s32.totalorder %v324_v14, 2 }
 0x1b6   : > { %v1597_v51 = vsel %vm8310_vm9, %v1553_v27, %v1555_v52  ;;  %1794 = vmatprep.mubr.f32.mxu0 %v8311_v39  ;;  %vm8418_vm6 = vmor %vm8416_vm11, %vm8417_vm13  ;;  %v389_v30 = vsel %vm384_vm4, 1.0, %v8311_v39  ;;  %vm377_vm11 = vcmp.lt.s32.totalorder %v324_v14, 18  ;;  %vm8429_vm13 = vcmask 326656  }
 0x1b7   : > { %1676 = vmatpush1.msra.mxu1 %v1597_v51  ;;  %vm385_vm9 = vmand %vm8418_vm6, %vm380_vm3  ;;  %vm8421_vm3 = vcmask 433152  }
 0x1b8   : > { %v390_v45 = vsel %vm385_vm9, 1.0, %v8311_v39  ;;  %vm6075_vm14 = vmand %vm336_vm2, %vm341_vm7  ;;  %v1593_v37 = vsel %vm8421_vm3, %v6005_v21, %v5985_v50  ;;  %vm371_vm9 = vcmp.ge.s32.totalorder %v323_v23, 2 }
 0x1b9   : > { %v6070_v42 = vpop.permute.xlu1 %1570  ;;  %v6084_v49 = vpack.i.bf16 %v390_v45, %v389_v30  ;;  %vm6088_vm6 = vmand %vm337_vm12, %vm342_vm1  ;;  %vm376_vm12 = vcmp.lt.s32.totalorder %v323_v23, 18 }
 0x1ba   : > { %v6082_v10 = vpop.permute.xlu0 %1546  ;;  %vm8424_vm2 = vmmov %vm8421_vm3 }
 0x1bb   : > { %v1594_v36 = vsel %vm8424_vm2, %v5985_v50, %v6082_v10  ;;  %vm6101_vm7 = vmand %vm351_vm0, %vm356_vm5  ;;  %5207 = vrot.lane.b32.xlu1 %v6084_v49, %s5246_s12  ;;  %vm353_vm0 = vcmp.lt.s32.totalorder %v328_v48, 38 }
 0x1bc   : > { %1677 = vmatprep.subr.mxu1 %v1594_v36  ;;  %vm6107_vm1 = vmand %vm352_vm10, %vm357_vm15 }
 0x1bd   : > { %1678 = vmatpush1.msra.mxu1 %v1593_v37  ;;  %v6112_v3 = vpop.permute.xlu1 %1560  ;;  %vm366_vm4 = vmor %vm6075_vm14, %vm6101_vm7  ;;  %vm8434_vm14 = vcmask 433152  }
 0x1be   : > { %5129 = vmatprep.subr.mxu1 %v8311_v39  ;;  %v1589_v53 = vpop.permute.xlu0 %1588  ;;  %4978 = vmatmul.mubr.msk.f32.vlgmr.msra.gmra.mxu1 %vm8429_vm13, %v6098_v38  ;;  %vm8430_vm5 = vmmov %vm8424_vm2  ;;  %vm338_vm13 = vcmp.lt.s32.totalorder %v328_v48, 18 }
 0x1bf   : > { %5130 = vmatpush3.msra.mxu1 %v6022_v5  ;;  %v1612_v19 = vsel %vm8430_vm5, %v1589_v53, %v6022_v5  ;;  %vm8431_vm10 = vmmov %vm8424_vm2  ;;  %1717 = vmatprep.mubr.f32.mxu1 %v8311_v39  ;;  %vm333_vm2 = vcmp.ge.s32.totalorder %v328_v48, 2 }
 0x1c0   : > { %v1611_v50 = vsel %vm8431_vm10, %v5953_v15, %v1589_v53  ;;  %vm381_vm15 = vmand %vm371_vm9, %vm376_vm12  ;;  %1752 = vmatprep.subr.mxu0 %v1612_v19  ;;  %5131 = vmatprep.subr.mxu1 %v8311_v39  ;;  %vm348_vm10 = vcmp.ge.s32.totalorder %v328_v48, 22  ;;  %vm8432_vm9 = vcmask 326656  }
 0x1c1   : > { %vm382_vm3 = vmand %vm372_vm8, %vm377_vm11  ;;  %1753 = vmatpush1.msra.mxu0 %v1611_v50  ;;  %5132 = vmatpush3.msra.mxu1 %v6048_v12  ;;  %v1551_v24 = vpop.permute.xlu1 %1550  ;;  %vm368_vm11 = vcmp.ge.s32.totalorder %v320_v40, 2 }
 0x1c2   : > { %vm386_vm5 = vmand %vm366_vm4, %vm381_vm15  ;;  %5133 = vmatprep.subr.mxu1 %v8311_v39  ;;  %v1579_v15 = vpop.permute.xlu0 %1578  ;;  %4979 = vmatmul.mubr.msk.f32.gmra.mxu1 %vm8432_vm9, %v6135_v20 }
 0x1c3   : > { %vm8433_vm12 = vmor %vm6088_vm6, %vm6107_vm1  ;;  %v391_v56 = vsel %vm386_vm5, 1.0, %v8311_v39  ;;  %5134 = vmatpush3.msra.mxu1 %v6070_v42  ;;  %v1608_v2 = vsel %vm8434_vm14, %v1579_v15, %v6048_v12  ;;  %1723 = vmatprep.mubr.f32.mxu1 %v8311_v39  ;;  %vm373_vm1 = vcmp.lt.s32.totalorder %v320_v40, 18 }
 0x1c4   : > { %vm387_vm8 = vmand %vm8433_vm12, %vm382_vm3  ;;  %1754 = vmatprep.subr.mxu0 %v1608_v2  ;;  %5135 = vmatprep.subr.mxu1 %v8311_v39  ;;  %v4988_v2 = vld [vmem:[%s8294_s1 + $0x68] sm:$0xff] }
 0x1c5   : > { %vm8435_vm7 = vmmov %vm8434_vm14  ;;  %v392_v29 = vsel %vm387_vm8, 1.0, %v8311_v39  ;;  %5136 = vmatpush3.msra.mxu1 %v6112_v3 }
 0x1c6   : > { %v1607_v41 = vsel %vm8435_vm7, %v5903_v60, %v1579_v15  ;;  %vm6168_vm6 = vmand %vm333_vm2, %vm338_vm13  ;;  %v6173_v22 = vpack.i.bf16 %v392_v29, %v391_v56  ;;  %v1957_v60 = vpop.permute.xlu1 %1956  ;;  %v1569_v35 = vpop.permute.xlu0 %1568  ;;  %5137 = vmatprep.subr.mxu1 %v8311_v39 }
 0x1c7   : > { %vm358_vm4 = vmand %vm348_vm10, %vm353_vm0  ;;  %1755 = vmatpush1.msra.mxu0 %v1607_v41  ;;  %5138 = vmatpush3.msra.mxu1 %v1551_v24  ;;  %vm8441_vm0 = vmmov 0   ;;  %v4989_v41 = vld [vmem:[%s8294_s1 + $0x70] sm:$0xff] }
 0x1c8   : > { %vm363_vm15 = vmor %vm6168_vm6, %vm358_vm4  ;;  %5212 = vrot.lane.b32.xlu0 %v6173_v22, %s5246_s12  ;;  %vm1962_vm6 = vcmask 269312  }
 0x1c9   : > { %vm8438_vm3 = vmmov %vm8432_vm9 }
 0x1ca   : > { %4980 = vmatmul.mubr.msk.f32.gmra.mxu1 %vm8438_vm3, %v4977_v43  ;;  %vm378_vm2 = vmand %vm368_vm11, %vm373_vm1  ;;  %v6194_v0 = vpop.permute.xlu1 %1960  ;;  %v1559_v58 = vpop.permute.xlu0 %1558 }
 0x1cb   : > { %vm8439_vm13 = vmmov %vm8435_vm7  ;;  %5139 = vmatprep.mubr.msk.f32.mxu1 %vm8441_vm0, %v8311_v39 }
 0x1cc   : > { %v1604_v1 = vsel %vm8439_vm13, %v1569_v35, %v6070_v42  ;;  %vm8440_vm5 = vmmov %vm8435_vm7 }
 0x1cd   : > { %v1603_v55 = vsel %vm8440_vm5, %v6007_v59, %v1569_v35  ;;  %vm383_vm10 = vmand %vm363_vm15, %vm378_vm2  ;;  %1756 = vmatprep.subr.mxu0 %v1604_v1 }
 0x1ce   : > { %v6192_v57 = vsel %vm383_vm10, 1.0, %v8311_v39  ;;  %1757 = vmatpush1.msra.mxu0 %v1603_v55  ;;  %vm8442_vm9 = vmmov %vm8438_vm3  ;;  %v1945_v61 = vpop.permute.xlu1 %1944  ;;  %v1549_v4 = vpop.permute.xlu0 %1548 }
 0x1cf   : > { %2361 = vrot.lane.b32.xlu1 %v6192_v57, %s5246_s12  ;;  %5140 = vmatmul.mubr.msk.f32.vlgmr.msra.gmra.mxu1 %vm8442_vm9, %v6098_v38  ;;  %vm8443_vm12 = vmmov %vm8440_vm5  ;;  %s5249_s12 = smov 50  }
 0x1d0   : > { %v1600_v21 = vsel %vm8443_vm12, %v1559_v58, %v6112_v3  ;;  %vm8444_vm8 = vmmov %vm8440_vm5  ;;  %5142 = vmatprep.mubr.msk.f32.mxu1 %vm8441_vm0, %v8311_v39 }
 0x1d1   : > { %v1599_v59 = vsel %vm8444_vm8, %v5967_v47, %v1559_v58  ;;  %1758 = vmatprep.subr.mxu0 %v1600_v21  ;;  %vm8445_vm11 = vmmov %vm8438_vm3 }
 0x1d2   : > { %1759 = vmatpush1.msra.mxu0 %v1599_v59  ;;  %vm8446_vm14 = vmmov %vm8440_vm5  ;;  %v1949_v47 = vpop.permute.xlu1 %1948  ;;  %v1955_v44 = vpop.permute.xlu0 %1954 }
 0x1d3   : > { %5143 = vmatmul.mubr.msk.f32.gmra.mxu1 %vm8445_vm11, %v6135_v20  ;;  %v1596_v62 = vsel %vm8446_vm14, %v1549_v4, %v1551_v24  ;;  %vm8447_vm7 = vmmov %vm8440_vm5  ;;  %v1980_v7 = vsel %vm1962_vm6, %v1955_v44, %v1957_v60  ;;  %v4987_v24 = vld [vmem:[%s8294_s1 + $0x60] sm:$0xff] }
 0x1d4   : > { %v1595_v63 = vsel %vm8447_vm7, %v6082_v10, %v1549_v4  ;;  %5145 = vmatprep.mubr.msk.f32.mxu1 %vm8441_vm0, %v8311_v39  ;;  %1760 = vmatprep.subr.mxu0 %v1596_v62  ;;  %vm8448_vm1 = vmmov %vm8438_vm3 }
 0x1d5   : > { %1761 = vmatpush1.msra.mxu0 %v1595_v63  ;;  %vm8449_vm4 = vmmov %vm8448_vm1 }
 0x1d6   : > { %4981 = vmatmul.mubr.msk.f32.vlgmr.msra.gmra.mxu0 %vm8448_vm1, %v6098_v38  ;;  %2039 = vmatprep.subr.mxu0 %v1980_v7  ;;  %v1943_v46 = vpop.permute.xlu1 %1942  ;;  %vm8450_vm15 = vmmov %vm8448_vm1  ;;  %v1959_v5 = vpop.permute.xlu0 %1958 }
 0x1d7   : > { %5146 = vmatmul.mubr.msk.f32.gmra.mxu1 %vm8449_vm4, %v4977_v43  ;;  %1800 = vmatprep.mubr.f32.mxu0 %v8311_v39  ;;  %v1982_v52 = vsel %vm1962_vm6, %v1959_v5, %v6194_v0  ;;  %v1981_v6 = vsel %vm1962_vm6, %v1957_v60, %v1959_v5  ;;  %vm8451_vm3 = vmmov %vm8448_vm1  ;;  %v1975_v12 = vsel %vm1962_vm6, %v1943_v46, %v1945_v61 }
 0x1d8   : > { %2164 = vmatprep.mubr.f32.mxu1 %v8311_v39  ;;  %2122 = vmatprep.subr.mxu1 %v1982_v52  ;;  %vm8452_vm2 = vmmov %vm8448_vm1 }
 0x1d9   : > { %2123 = vmatpush1.msra.mxu1 %v1981_v6  ;;  %vm8453_vm13 = vmmov %vm8448_vm1 }
 0x1da   : > { %4982 = vmatmul.mubr.msk.f32.gmra.mxu0 %vm8450_vm15, %v6135_v20  ;;  %v1937_v54 = vpop.permute.xlu1 %1936  ;;  %v1953_v9 = vpop.permute.xlu0 %1952  ;;  %vm8454_vm5 = vmmov %vm8448_vm1 }
 0x1db   : > { %1806 = vmatprep.mubr.f32.mxu0 %v8311_v39  ;;  %v1979_v25 = vsel %vm1962_vm6, %v1953_v9, %v1955_v44  ;;  %vm8455_vm10 = vmmov %vm8448_vm1 }
 0x1dc   : > { %2040 = vmatpush1.msra.mxu0 %v1979_v25  ;;  %vm8456_vm9 = vmmov %vm8448_vm1 }
 0x1dd   : > { %vm8457_vm12 = vmmov %vm8448_vm1 }
 0x1de   : > { %4983 = vmatmul.mubr.msk.f32.gmra.mxu0 %vm8451_vm3, %v4977_v43  ;;  %v1947_v28 = vpop.permute.xlu0 %1946  ;;  %v6228_v26 = vpop.permute.xlu1 %1940  ;;  %vm8458_vm8 = vmmov %vm8448_vm1 }
 0x1df   : > { %2081 = vmatprep.mubr.f32.mxu0 %v8311_v39  ;;  %v1976_v8 = vsel %vm1962_vm6, %v1945_v61, %v1947_v28  ;;  %v1977_v31 = vsel %vm1962_vm6, %v1947_v28, %v1949_v47  ;;  %vm8459_vm11 = vmmov %vm8448_vm1 }
 0x1e0   : > { %2041 = vmatprep.subr.mxu0 %v1976_v8  ;;  %vm8460_vm14 = vmmov %vm8448_vm1 }
 0x1e1   : > { %2042 = vmatpush1.msra.mxu0 %v1975_v12 }
 0x1e2   : > { %v1951_v13 = vpop.permute.xlu0 %1950  ;;  %v1925_v51 = vpop.permute.xlu1 %1924 }
 0x1e3   : > { %v1978_v27 = vsel %vm1962_vm6, %v1949_v47, %v1951_v13 }
 0x1e4   : > { %2124 = vmatprep.subr.mxu1 %v1978_v27 }
 0x1e5   : > { %2125 = vmatpush1.msra.mxu1 %v1977_v31 }
 0x1e6   : > { %v1935_v17 = vpop.permute.xlu0 %1934  ;;  %v1929_v42 = vpop.permute.xlu1 %1928 }
 0x1e7   : > { %v1972_v30 = vsel %vm1962_vm6, %v1935_v17, %v1937_v54 }
 0x1e8   : > { %2043 = vmatprep.subr.mxu0 %v1972_v30 }
 0x1ea   : > { %v1939_v23 = vpop.permute.xlu0 %1938  ;;  %v1923_v10 = vpop.permute.xlu1 %1922 }
 0x1eb   : > { %v1974_v45 = vsel %vm1962_vm6, %v1939_v23, %v6228_v26  ;;  %v1973_v14 = vsel %vm1962_vm6, %v1937_v54, %v1939_v23  ;;  %v1967_v36 = vsel %vm1962_vm6, %v1923_v10, %v1925_v51 }
 0x1ec   : > { %2126 = vmatprep.subr.mxu1 %v1974_v45 }
 0x1ed   : > { %2127 = vmatpush1.msra.mxu1 %v1973_v14 }
 0x1ee   : > { %v1933_v34 = vpop.permute.xlu0 %1932  ;;  %v1917_v18 = vpop.permute.xlu1 %1916 }
 0x1ef   : > { %v1971_v37 = vsel %vm1962_vm6, %v1933_v34, %v1935_v17 }
 0x1f0   : > { %2044 = vmatpush1.msra.mxu0 %v1971_v37 }
 0x1f2   : > { %v1927_v16 = vpop.permute.xlu0 %1926  ;;  %v1921_v40 = vpop.permute.xlu1 %1920 }
 0x1f3   : > { %v1968_v11 = vsel %vm1962_vm6, %v1925_v51, %v1927_v16  ;;  %v1969_v48 = vsel %vm1962_vm6, %v1927_v16, %v1929_v42 }
 0x1f4   : > { %2045 = vmatprep.subr.mxu0 %v1968_v11 }
 0x1f5   : > { %2046 = vmatpush1.msra.mxu0 %v1967_v36 }
 0x1f6   : > { %v1931_v38 = vpop.permute.xlu0 %1930 }
 0x1f7   : > { %v1970_v33 = vsel %vm1962_vm6, %v1929_v42, %v1931_v38 }
 0x1f8   : > { %2128 = vmatprep.subr.mxu1 %v1970_v33 }
 0x1f9   : > { %2129 = vmatpush1.msra.mxu1 %v1969_v48 }
 0x1fa   : > { %v1915_v3 = vpop.permute.xlu0 %1914 }
 0x1fb   : > { %v1964_v53 = vsel %vm1962_vm6, %v1915_v3, %v1917_v18 }
 0x1fc   : > { %2047 = vmatprep.subr.mxu0 %v1964_v53 }
 0x1fe   : > { %v1919_v19 = vpop.permute.xlu0 %1918 }
 0x1ff   : > { %v1966_v50 = vsel %vm1962_vm6, %v1919_v19, %v1921_v40  ;;  %v1965_v20 = vsel %vm1962_vm6, %v1917_v18, %v1919_v19 }
 0x200   : > { %2130 = vmatprep.subr.mxu1 %v1966_v50 }
 0x201   : > { %2131 = vmatpush1.msra.mxu1 %v1965_v20 }
 0x202   : > { %4993 = vmatmul.mubr.msk.f32.vlgmr.msra.gmra.mxu1 %vm8452_vm2, %v4987_v24  ;;  %v1913_v15 = vpop.permute.xlu0 %1912 }
 0x203   : > { %v1963_v56 = vsel %vm1962_vm6, %v1913_v15, %v1915_v3  ;;  %2170 = vmatprep.mubr.f32.mxu1 %v8311_v39 }
 0x204   : > { %2048 = vmatpush1.msra.mxu0 %v1963_v56  ;;  %v637_v29 = vpop.f32.mrf.mxu0 }
 0x205   : > { %4990 = vmatmul.mubr.msk.f32.vlgmr.msra.gmra.mxu0 %vm8453_vm13, %v4987_v24  ;;  %5148 = vmatprep.subr.mxu0 %v8311_v39  ;;  %v720_v43 = vpop.f32.mrf.mxu1 }
 0x206   : > { %4994 = vmatmul.mubr.msk.f32.gmra.mxu1 %vm8454_vm5, %v4988_v2  ;;  %5149 = vmatpush3.msra.mxu0 %v6194_v0  ;;  %v639_v60 = vpop.f32.mrf.mxu0 }
 0x207   : > { %5150 = vmatprep.subr.mxu0 %v8311_v39  ;;  %2087 = vmatprep.mubr.f32.mxu0 %v8311_v39  ;;  %v722_v32 = vpop.f32.mrf.mxu1 }
 0x208   : > { %5151 = vmatpush3.msra.mxu0 %v1951_v13  ;;  %2176 = vmatprep.mubr.f32.mxu1 %v8311_v39 }
 0x209   : > { %4991 = vmatmul.mubr.msk.f32.gmra.mxu0 %vm8455_vm10, %v4988_v2  ;;  %5152 = vmatprep.subr.mxu0 %v8311_v39 }
 0x20a   : > { %4995 = vmatmul.mubr.msk.f32.gmra.mxu1 %vm8456_vm9, %v4989_v41  ;;  %5153 = vmatpush3.msra.mxu0 %v6228_v26 }
 0x20b   : > { %5154 = vmatprep.subr.mxu0 %v8311_v39  ;;  %2093 = vmatprep.mubr.f32.mxu0 %v8311_v39 }
 0x20c   : > { %5155 = vmatpush3.msra.mxu0 %v1931_v38  ;;  %2710 = vmatprep.mubr.f32.mxu1 %v8311_v39 }
 0x20d   : > { %4992 = vmatmul.mubr.msk.f32.gmra.mxu0 %vm8457_vm12, %v4989_v41  ;;  %5156 = vmatprep.subr.mxu0 %v8311_v39 }
 0x20e   : > { %5157 = vmatpush3.msra.mxu0 %v1921_v40  ;;  %5158 = vmatprep.mubr.msk.f32.mxu0 %vm8441_vm0, %v8311_v39 }
 0x210   : > { %v726_v35 = vpop.f32.mrf.mxu1 }
 0x211   : > { %5159 = vmatmul.mubr.msk.f32.vlgmr.msra.gmra.mxu0 %vm8458_vm8, %v4987_v24  ;;  %v643_v1 = vpop.f32.mrf.mxu0 }
 0x212   : > { %5161 = vmatprep.mubr.msk.f32.mxu0 %vm8441_vm0, %v8311_v39  ;;  %v728_v55 = vpop.f32.mrf.mxu1 }
 0x213   : > { %v645_v0 = vpop.f32.mrf.mxu0 }
 0x214   : > { %v732_v58 = vpop.f32.mrf.mxu1 }
 0x215   : > { %5162 = vmatmul.mubr.msk.f32.gmra.mxu0 %vm8459_vm11, %v4988_v2  ;;  %v649_v21 = vpop.f32.mrf.mxu0 }
 0x216   : > { %5164 = vmatprep.mubr.msk.f32.mxu0 %vm8441_vm0, %v8311_v39  ;;  %v734_v59 = vpop.f32.mrf.mxu1  ;;  %vm2371_vm0 = vcmask 580608  }
 0x217   : > { %v651_v61 = vpop.f32.mrf.mxu0 }
 0x219   : > { %5165 = vmatmul.mubr.msk.f32.gmra.mxu0 %vm8460_vm14, %v4989_v41  ;;  %v988_v4 = vpop.f32.mrf.mxu1 }
 0x21a   : > { %v989_v62 = vadd.f32 %v988_v4, %v637_v29  ;;  %2787 = vmatprep.mubr.f32.mxu0 %v8311_v39 }
 0x21b   : > { %v990_v63 = vpop.f32.mrf.mxu1  ;;  %v803_v47 = vpop.f32.mrf.mxu0 }
 0x21c   : > { %v991_v44 = vadd.f32 %v990_v63, %v639_v60 }
 0x21d   : > { %v5084_v7 = vpop.f32.mrf.mxu0 }
 0x224   : > { %v994_v46 = vpop.f32.mrf.mxu1 }
 0x225   : > { %v995_v5 = vadd.f32 %v994_v46, %v643_v1 }
 0x226   : > { %v996_v52 = vpop.f32.mrf.mxu1  ;;  %v808_v6 = vpop.f32.mrf.mxu0 }
 0x227   : > { %v997_v54 = vadd.f32 %v996_v52, %v645_v0 }
 0x228   : > { %v1000_v9 = vpop.f32.mrf.mxu1  ;;  %v5087_v25 = vpop.f32.mrf.mxu0 }
 0x229   : > { %v1001_v28 = vadd.f32 %v1000_v9, %v649_v21 }
 0x22a   : > { %v1002_v26 = vpop.f32.mrf.mxu1 }
 0x22b   : > { %v1003_v8 = vadd.f32 %v1002_v26, %v651_v61 }
 0x22c   : > { %v813_v12 = vpop.f32.mrf.mxu0 }
 0x22e   : > { %v1154_v13 = vpop.f32.mrf.mxu1  ;;  %v5090_v27 = vpop.f32.mrf.mxu0 }
 0x22f   : > { %v1155_v31 = vadd.f32 %v1154_v13, %v803_v47 }
 0x230   : > { %v5103_v51 = vpop.f32.mrf.mxu1  ;;  %v1071_v17 = vpop.f32.mrf.mxu0 }
 0x231   : > { %v1072_v30 = vadd.f32 %v1071_v17, %v720_v43 }
 0x232   : > { %v1159_v23 = vpop.f32.mrf.mxu1  ;;  %v1073_v42 = vpop.f32.mrf.mxu0 }
 0x233   : > { %v1160_v45 = vadd.f32 %v1159_v23, %v808_v6  ;;  %v1074_v14 = vadd.f32 %v1073_v42, %v722_v32 }
 0x234   : > { %v5106_v34 = vpop.f32.mrf.mxu1  ;;  %v1077_v37 = vpop.f32.mrf.mxu0 }
 0x235   : > { %v1078_v10 = vadd.f32 %v1077_v37, %v726_v35 }
 0x236   : > { %v1164_v16 = vpop.f32.mrf.mxu1  ;;  %v1079_v11 = vpop.f32.mrf.mxu0 }
 0x237   : > { %v1165_v36 = vadd.f32 %v1164_v16, %v813_v12  ;;  %v1080_v38 = vadd.f32 %v1079_v11, %v728_v55 }
 0x238   : > { %v5109_v18 = vpop.f32.mrf.mxu1  ;;  %v1083_v33 = vpop.f32.mrf.mxu0 }
 0x239   : > { %v1084_v48 = vadd.f32 %v1083_v33, %v732_v58 }
 0x23a   : > { %v1085_v3 = vpop.f32.mrf.mxu0 }
 0x23b   : > { %v1086_v53 = vadd.f32 %v1085_v3, %v734_v59 }
 0x25c   : > { %v1426_v40 = vpop.f32.mrf.mxu1 }
 0x25d   : > { %v6284_v19 = vadd.f32 %v1426_v40, %v1072_v30 }
 0x25e   : > { %v1428_v50 = vpop.f32.mrf.mxu1 }
 0x25f   : > { %v6286_v20 = vadd.f32 %v1428_v50, %v1074_v14  ;;  %v1343_v24 = vpop.f32.mrf.mxu0  ;;  %v6314_v50 = vpop.permute.xlu1 %2293 }
 0x260   : > { %v1432_v15 = vpop.f32.mrf.mxu1  ;;  %v1523_v56 = vadd.f32 %v1343_v24, %v989_v62 }
 0x261   : > { %v6288_v2 = vadd.f32 %v1432_v15, %v1078_v10  ;;  %v1345_v41 = vpop.f32.mrf.mxu0  ;;  %v6318_v15 = vpop.permute.xlu0 %2288 }
 0x262   : > { %v1434_v43 = vpop.f32.mrf.mxu1  ;;  %v1524_v29 = vadd.f32 %v1345_v41, %v991_v44 }
 0x263   : > { %v6290_v32 = vadd.f32 %v1434_v43, %v1080_v38  ;;  %v6316_v24 = vpop.permute.xlu1 %2283 }
 0x265   : > { %v1349_v60 = vpop.f32.mrf.mxu0 }
 0x266   : > { %v1528_v35 = vadd.f32 %v1349_v60, %v995_v5 }
 0x267   : > { %v1438_v1 = vpop.f32.mrf.mxu1  ;;  %v1351_v55 = vpop.f32.mrf.mxu0 }
 0x268   : > { %v6292_v0 = vadd.f32 %v1438_v1, %v1084_v48  ;;  %v1529_v58 = vadd.f32 %v1351_v55, %v997_v54  ;;  %v5213_v55 = vpop.permute.xlu0 %5212 }
 0x269   : > { %v1440_v21 = vpop.f32.mrf.mxu1  ;;  %v1355_v59 = vpop.f32.mrf.mxu0 }
 0x26a   : > { %v1536_v61 = vadd.f32 %v1440_v21, %v1086_v53  ;;  %v1533_v4 = vadd.f32 %v1355_v59, %v1001_v28 }
 0x26b   : > { %v1357_v63 = vpop.f32.mrf.mxu0 }
 0x26c   : > { %v1534_v62 = vadd.f32 %v1357_v63, %v1003_v8 }
 0x26d   : > { %v1509_v47 = vpop.f32.mrf.mxu0 }
 0x26e   : > { %v1527_v7 = vadd.f32 %v1509_v47, %v1155_v31 }
 0x26f   : > { %v5122_v46 = vpop.f32.mrf.mxu0 }
 0x271   : > { %v1514_v52 = vpop.f32.mrf.mxu0 }
 0x272   : > { %v1532_v44 = vadd.f32 %v1514_v52, %v1160_v45 }
 0x273   : > { %v5125_v6 = vpop.f32.mrf.mxu0 }
 0x275   : > { %v1519_v9 = vpop.f32.mrf.mxu0 }
 0x276   : > { %v1537_v25 = vadd.f32 %v1519_v9, %v1165_v36 }
 0x277   : > { %v5128_v5 = vpop.f32.mrf.mxu0 }
 0x27e   : > { %v1713_v26 = vpop.f32.mrf.mxu1 }
 0x27f   : > { %v1893_v12 = vadd.f32 %v1713_v26, %v1523_v56 }
 0x280   : > { %v1715_v13 = vpop.f32.mrf.mxu1 }
 0x281   : > { %v1894_v27 = vadd.f32 %v1715_v13, %v1524_v29  ;;  %v5208_v29 = vpop.permute.xlu1 %5207 }
 0x282   : > { %v1719_v54 = vpop.f32.mrf.mxu1 }
 0x283   : > { %v6294_v51 = vadd.f32 %v1719_v54, %v1528_v35 }
 0x284   : > { %v1721_v17 = vpop.f32.mrf.mxu1 }
 0x285   : > { %v6296_v28 = vadd.f32 %v1721_v17, %v1529_v58  ;;  %v2362_v46 = vpop.permute.xlu1 %2361 }
 0x28a   : > { %v1725_v8 = vpop.f32.mrf.mxu1 }
 0x28b   : > { %v6298_v30 = vadd.f32 %v1725_v8, %v1533_v4  ;;  %v5209_v4 = vunpack.i.l.bf16 %v5208_v29 }
 0x28c   : > { %v1727_v31 = vpop.f32.mrf.mxu1 }
 0x28d   : > { %v6300_v23 = vadd.f32 %v1727_v31, %v1534_v62  ;;  %v6326_v5 = vsel %vm2371_vm0, %v2362_v46, %v5209_v4 }
 0x28f   : > { %v1879_v42 = vpop.f32.mrf.mxu1 }
 0x290   : > { %v6302_v45 = vadd.f32 %v1879_v42, %v1527_v7  ;;  %v5214_v7 = vunpack.i.l.bf16 %v5213_v55 }
 0x291   : > { %v5141_v14 = vpop.f32.mrf.mxu1 }
 0x292   : > { %v6346_v14 = vunpack.i.h.bf16 %v5213_v55 }
 0x293   : > { %v1884_v34 = vpop.f32.mrf.mxu1 }
 0x294   : > { %v6304_v37 = vadd.f32 %v1884_v34, %v1532_v44 }
 0x295   : > { %v5144_v10 = vpop.f32.mrf.mxu1 }
 0x296   : > { %v1796_v16 = vpop.f32.mrf.mxu0 }
 0x297   : > { %v1889_v11 = vpop.f32.mrf.mxu1  ;;  %v1895_v56 = vadd.f32 %v1796_v16, %v6284_v19 }
 0x298   : > { %v6306_v36 = vadd.f32 %v1889_v11, %v1537_v25  ;;  %v1798_v38 = vpop.f32.mrf.mxu0 }
 0x299   : > { %v5147_v18 = vpop.f32.mrf.mxu1  ;;  %v1896_v62 = vadd.f32 %v1798_v38, %v6286_v20 }
 0x29a   : > { %v1802_v33 = vpop.f32.mrf.mxu0 }
 0x29c   : > { %v6308_v48 = vpop.f32.mrf.mxu0 }
 0x29e   : > { %v6310_v3 = vpop.f32.mrf.mxu0 }
 0x2a0   : > { %v1810_v53 = vpop.f32.mrf.mxu0 }
 0x2a1   : > { %v6312_v40 = vadd.f32 %v1810_v53, %v1536_v61  ;;  %v5210_v61 = vunpack.i.h.bf16 %v5208_v29  ;;  %v6365_v29 = vsel %vm2371_vm0, %v5214_v7, %v6346_v14 }
 0x2a3   : > { %v6349_v16 = vsel %vm2371_vm0, %v5209_v4, %v5210_v61 }
 0x2c2   : > { %v2166_v41 = vpop.f32.mrf.mxu1 }
 0x2c3   : > { %v2265_v43 = vadd.f32 %v2166_v41, %v1895_v56  ;;  %v1900_v41 = vadd.f32 %v1802_v33, %v6288_v2 }
 0x2c4   : > { %v2168_v21 = vpop.f32.mrf.mxu1 }
 0x2c5   : > { %v2298_v60 = vadd.f32 %v6316_v24, %v2265_v43  ;;  %v2083_v35 = vpop.f32.mrf.mxu0  ;;  %v2266_v44 = vadd.f32 %v2168_v21, %v1896_v62 }
 0x2c6   : > { %v2263_v1 = vadd.f32 %v2083_v35, %v1893_v12  ;;  %v6329_v12 = vsel %vm2371_vm0, %v5210_v61, %v5214_v7  ;;  %v2172_v18 = vpop.f32.mrf.mxu1  ;;  %vm8473_vm0 = vcmask 1031168  }
 0x2c7   : > { %v2085_v58 = vpop.f32.mrf.mxu0  ;;  %v2328_v47 = vmul.f32 0.001, %v2298_v60  ;;  %vm2313_vm7 = vcmp.ge.f32.partialorder %v2298_v60, 0.0 }
 0x2c8   : > { %v2296_v59 = vadd.f32 %v6316_v24, %v2263_v1  ;;  %v2264_v63 = vadd.f32 %v2085_v58, %v1894_v27  ;;  %v2299_v27 = vadd.f32 %v6316_v24, %v2266_v44 }
 0x2c9   : > { %v2089_v19 = vpop.f32.mrf.mxu0  ;;  %v2343_v26 = vsel %vm2313_vm7, %v2298_v60, %v2328_v47  ;;  %v2270_v60 = vadd.f32 %v2172_v18, %v1900_v41  ;;  %vm8474_vm7 = vmmov %vm8473_vm0 }
 0x2ca   : > { %vm2311_vm6 = vcmp.ge.f32.partialorder %v2296_v59, 0.0  ;;  %v2326_v52 = vmul.f32 0.001, %v2296_v59  ;;  %v2297_v6 = vadd.f32 %v6316_v24, %v2264_v63  ;;  %v6342_v8 = vmul.f32 %v6329_v12, %v2343_v26 }
 0x2cb   : > { %v2091_v9 = vpop.f32.mrf.mxu0  ;;  %v2329_v42 = vmul.f32 0.001, %v2299_v27  ;;  %vm2314_vm4 = vcmp.ge.f32.partialorder %v2299_v27, 0.0  ;;  %v2268_v2 = vadd.f32 %v2089_v19, %v6294_v51  ;;  %v2303_v55 = vadd.f32 %v6318_v15, %v2270_v60 }
 0x2cc   : > { %v2341_v25 = vsel %vm2311_vm6, %v2296_v59, %v2326_v52  ;;  %v2327_v54 = vmul.f32 0.001, %v2297_v6  ;;  %vm2312_vm1 = vcmp.ge.f32.partialorder %v2297_v6, 0.0  ;;  %8462 = vst [vmem:[#allocation3_spill] sm:$0xff] %v6342_v8  ;;  %2457 = vrot.lane.b32.xlu1 %v6342_v8, %s5236_s10  ;;  %v2269_v21 = vadd.f32 %v2091_v9, %v6296_v28  ;;  %v2174_v59 = vpop.f32.mrf.mxu1 }
 0x2cd   : > { %v6332_v20 = vmul.f32 %v6326_v5, %v2341_v25  ;;  %v6334_v13 = vpop.f32.mrf.mxu0  ;;  %v2344_v43 = vsel %vm2314_vm4, %v2299_v27, %v2329_v42  ;;  %v2301_v58 = vadd.f32 %v6318_v15, %v2268_v2  ;;  %v1901_v51 = vadd.f32 %v6308_v48, %v6290_v32  ;;  %vm8479_vm4 = vmmov %vm8473_vm0 }
 0x2ce   : > { %v2342_v34 = vsel %vm2312_vm1, %v2297_v6, %v2327_v54  ;;  %v6372_v1 = vmul.f32 %v6365_v29, %v2344_v43  ;;  %vm2318_vm15 = vcmp.ge.f32.partialorder %v2303_v55, 0.0  ;;  %v2302_v63 = vadd.f32 %v6318_v15, %v2269_v21  ;;  %v2178_v6 = vpop.f32.mrf.mxu1 }
 0x2cf   : > { %8461 = vst [vmem:[#allocation2_spill] sm:$0xff] %v6332_v20  ;;  %2503 = vrot.lane.b32.xlu0 %v6332_v20, %s5247_s22  ;;  %v6339_v17 = vpop.f32.mrf.mxu0  ;;  %v6357_v53 = vmul.f32 %v6349_v16, %v2342_v34  ;;  %v2271_v61 = vadd.f32 %v2174_v59, %v1901_v51  ;;  %v2331_v4 = vmul.f32 0.001, %v2301_v58  ;;  %vm2316_vm3 = vcmp.ge.f32.partialorder %v2301_v58, 0.0 }
 0x2d0   : > { %2453 = vrot.lane.b32.xlu1 %v6332_v20, %s5236_s10  ;;  %8464 = vst [vmem:[#allocation5_spill] sm:$0xff] %v6372_v1  ;;  %v2332_v48 = vmul.f32 0.001, %v2302_v63  ;;  %vm2317_vm2 = vcmp.ge.f32.partialorder %v2302_v63, 0.0  ;;  %v1905_v25 = vadd.f32 %v6310_v3, %v6292_v0  ;;  %v2273_v26 = vadd.f32 %v6334_v13, %v6298_v30  ;;  %v2180_v3 = vpop.f32.mrf.mxu1 }
 0x2d1   : > { %v2249_v31 = vpop.f32.mrf.mxu0  ;;  %8463 = vst [vmem:[#allocation4_spill] sm:$0xff] %v6357_v53  ;;  %v2304_v62 = vadd.f32 %v6318_v15, %v2271_v61  ;;  %v2346_v32 = vsel %vm2316_vm3, %v2301_v58, %v2331_v4  ;;  %v2274_v30 = vadd.f32 %v6339_v17, %v6300_v23  ;;  %v2276_v42 = vadd.f32 %v2180_v3, %v6312_v40  ;;  %vm8482_vm3 = vmmov %vm8473_vm0 }
 0x2d2   : > { %v6352_v11 = vadd.f32 %v2249_v31, %v6302_v45  ;;  %v6403_v7 = vmul.f32 %v6326_v5, %v2346_v32  ;;  %v2347_v46 = vsel %vm2317_vm2, %v2302_v63, %v2332_v48  ;;  %v2275_v27 = vadd.f32 %v2178_v6, %v1905_v25  ;;  %vm8483_vm2 = vmmov %vm8473_vm0 }
 0x2d3   : > { %v5160_v10 = vpop.f32.mrf.mxu0  ;;  %2455 = vrot.lane.b32.xlu0 %v6357_v53, %s5236_s10  ;;  %v2334_v19 = vmul.f32 0.001, %v2304_v62  ;;  %vm2319_vm13 = vcmp.ge.f32.partialorder %v2304_v62, 0.0  ;;  %v6410_v52 = vmul.f32 %v6349_v16, %v2347_v46  ;;  %v2306_v54 = vadd.f32 %v6314_v50, %v2273_v26 }
 0x2d4   : > { %2412 = vrot.lane.b32.xlu1 %v6342_v8, %s5237_s11  ;;  %8466 = vst [vmem:[#allocation7_spill] sm:$0xff] %v6403_v7  ;;  %v2308_v31 = vadd.f32 %v6314_v50, %v2275_v27  ;;  %v2307_v10 = vadd.f32 %v6314_v50, %v2274_v30  ;;  %v2309_v17 = vadd.f32 %v6314_v50, %v2276_v42  ;;  %vm8475_vm6 = vcmask 1039360  }
 0x2d5   : > { %v2254_v38 = vpop.f32.mrf.mxu0  ;;  %8467 = vst [vmem:[#allocation8_spill] sm:$0xff] %v6410_v52  ;;  %v2349_v44 = vsel %vm2319_vm13, %v2304_v62, %v2334_v19  ;;  %v2336_v0 = vmul.f32 0.001, %v2306_v54  ;;  %vm2321_vm5 = vcmp.ge.f32.partialorder %v2306_v54, 0.0  ;;  %vm8477_vm1 = vmmov %vm8475_vm6 }
 0x2d6   : > { %v6360_v56 = vadd.f32 %v2254_v38, %v6304_v37  ;;  %v6419_v9 = vmul.f32 %v6365_v29, %v2349_v44  ;;  %v2338_v13 = vmul.f32 0.001, %v2308_v31  ;;  %vm2323_vm10 = vcmp.ge.f32.partialorder %v2308_v31, 0.0  ;;  %vm8484_vm13 = vmmov %vm8477_vm1 }
 0x2d7   : > { %v5163_v45 = vpop.f32.mrf.mxu0  ;;  %2459 = vrot.lane.b32.xlu0 %v6372_v1, %s5236_s10  ;;  %v2351_v34 = vsel %vm2321_vm5, %v2306_v54, %v2336_v0  ;;  %v2337_v18 = vmul.f32 0.001, %v2307_v10  ;;  %vm2322_vm9 = vcmp.ge.f32.partialorder %v2307_v10, 0.0  ;;  %v2339_v40 = vmul.f32 0.001, %v2309_v17  ;;  %vm8485_vm5 = vmmov %vm8477_vm1 }
 0x2d8   : > { %2408 = vrot.lane.b32.xlu1 %v6332_v20, %s5237_s11  ;;  %8468 = vst [vmem:[#allocation9_spill] sm:$0xff] %v6419_v9  ;;  %v2353_v38 = vsel %vm2323_vm10, %v2308_v31, %v2338_v13  ;;  %v6446_v23 = vmul.f32 %v6326_v5, %v2351_v34  ;;  %vm2324_vm12 = vcmp.ge.f32.partialorder %v2309_v17, 0.0  ;;  %v2305_v60 = vadd.f32 %v6318_v15, %v6360_v56  ;;  %vm8487_vm10 = vmmov %vm8473_vm0 }
 0x2d9   : > { %v2259_v35 = vpop.f32.mrf.mxu0  ;;  %v6452_v41 = vmul.f32 %v6329_v12, %v2353_v38  ;;  %v2352_v5 = vsel %vm2322_vm9, %v2307_v10, %v2337_v18  ;;  %vm8489_vm9 = vmmov %vm8477_vm1 }
 0x2da   : > { %v6375_v37 = vadd.f32 %v2259_v35, %v6306_v36  ;;  %v2333_v36 = vmul.f32 0.001, %v2303_v55  ;;  %8469 = vst [vmem:[#allocation10_spill] sm:$0xff] %v6446_v23  ;;  %v6461_v43 = vmul.f32 %v6349_v16, %v2352_v5  ;;  %v2300_v16 = vadd.f32 %v6316_v24, %v6352_v11 }
 0x2db   : > { %v5166_v33 = vpop.f32.mrf.mxu0  ;;  %2410 = vrot.lane.b32.xlu0 %v6357_v53, %s5237_s11  ;;  %8470 = vst [vmem:[#allocation11_spill] sm:$0xff] %v6452_v41  ;;  %v2335_v2 = vmul.f32 0.001, %v2305_v60  ;;  %vm2320_vm11 = vcmp.ge.f32.partialorder %v2305_v60, 0.0 }
 0x2dc   : > { %2507 = vrot.lane.b32.xlu1 %v6342_v8, %s5247_s22  ;;  %v2348_v28 = vsel %vm2318_vm15, %v2303_v55, %v2333_v36  ;;  %8471 = vst [vmem:[#allocation12_spill] sm:$0xff] %v6461_v43  ;;  %vm2315_vm8 = vcmp.ge.f32.partialorder %v2300_v16, 0.0  ;;  %v2310_v24 = vadd.f32 %v6314_v50, %v6375_v37  ;;  %vm8480_vm15 = vmmov %vm8477_vm1 }
 0x2dd   : > { %v6400_v47 = vmul.f32 %v6329_v12, %v2348_v28  ;;  %v2354_v12 = vsel %vm2324_vm12, %v2309_v17, %v2339_v40  ;;  %v2350_v11 = vsel %vm2320_vm11, %v2305_v60, %v2335_v2  ;;  %vm8490_vm12 = vmmov %vm8473_vm0 }
 0x2de   : > { %v6468_v45 = vmul.f32 %v6365_v29, %v2354_v12  ;;  %v2330_v29 = vmul.f32 0.001, %v2300_v16  ;;  %v2340_v56 = vmul.f32 0.001, %v2310_v24  ;;  %vm2325_vm14 = vcmp.ge.f32.partialorder %v2310_v24, 0.0  ;;  %vm8492_vm11 = vmmov %vm8477_vm1 }
 0x2df   : > { %2414 = vrot.lane.b32.xlu0 %v6372_v1, %s5237_s11  ;;  %8465 = vst [vmem:[#allocation6_spill] sm:$0xff] %v6400_v47  ;;  %v6504_v50 = vmul.f32 %v6346_v14, %v2350_v11 }
 0x2e0   : > { %2509 = vrot.lane.b32.xlu1 %v6372_v1, %s5247_s22  ;;  %8472 = vst [vmem:[#allocation13_spill] sm:$0xff] %v6468_v45  ;;  %v2345_v35 = vsel %vm2315_vm8, %v2300_v16, %v2330_v29  ;;  %v2355_v37 = vsel %vm2325_vm14, %v2310_v24, %v2340_v56  ;;  %vm8491_vm8 = vmmov %vm8473_vm0 }
 0x2e1   : > { %v6497_v15 = vmul.f32 %v6346_v14, %v2345_v35  ;;  %v2395_v33 = vmul.f32 %v6346_v14, %v2355_v37  ;;  %vm8493_vm14 = vmmov %vm8477_vm1 }
 0x2e3   : > { %2505 = vrot.lane.b32.xlu0 %v6357_v53, %s5247_s22 }
 0x2e4   : > { %2465 = vrot.lane.b32.xlu1 %v6400_v47, %s5236_s10 }
 0x2e7   : > { %2511 = vrot.lane.b32.xlu0 %v6403_v7, %s5247_s22 }
 0x2e8   : > { %2461 = vrot.lane.b32.xlu1 %v6403_v7, %s5236_s10 }
 0x2eb   : > { %2463 = vrot.lane.b32.xlu0 %v6410_v52, %s5236_s10 }
 0x2ec   : > { %2420 = vrot.lane.b32.xlu1 %v6400_v47, %s5237_s11 }
 0x2ef   : > { %2467 = vrot.lane.b32.xlu0 %v6419_v9, %s5236_s10 }
 0x2f0   : > { %2416 = vrot.lane.b32.xlu1 %v6403_v7, %s5237_s11 }
 0x2f3   : > { %2418 = vrot.lane.b32.xlu0 %v6410_v52, %s5237_s11 }
 0x2f4   : > { %2515 = vrot.lane.b32.xlu1 %v6400_v47, %s5247_s22 }
 0x2f7   : > { %2422 = vrot.lane.b32.xlu0 %v6419_v9, %s5237_s11 }
 0x2f8   : > { %2517 = vrot.lane.b32.xlu1 %v6419_v9, %s5247_s22 }
 0x2fb   : > { %2513 = vrot.lane.b32.xlu0 %v6410_v52, %s5247_s22 }
 0x2fc   : > { %2996 = vrot.lane.b32.xlu1 %v6410_v52, %s5248_s23 }
 0x2ff   : > { %2519 = vrot.lane.b32.xlu0 %v6446_v23, %s5247_s22 }
 0x300   : > { %2473 = vrot.lane.b32.xlu1 %v6452_v41, %s5236_s10 }
 0x303   : > { %3004 = vrot.lane.b32.xlu0 %v6446_v23, %s5248_s23 }
 0x304   : > { %2469 = vrot.lane.b32.xlu1 %v6446_v23, %s5236_s10 }
 0x307   : > { %2471 = vrot.lane.b32.xlu0 %v6461_v43, %s5236_s10 }
 0x308   : > { %2428 = vrot.lane.b32.xlu1 %v6452_v41, %s5237_s11 }
 0x30b   : > { %2475 = vrot.lane.b32.xlu0 %v6468_v45, %s5236_s10 }
 0x30c   : > { %2424 = vrot.lane.b32.xlu1 %v6446_v23, %s5237_s11 }
 0x30f   : > { %2426 = vrot.lane.b32.xlu0 %v6461_v43, %s5237_s11 }
 0x310   : > { %2523 = vrot.lane.b32.xlu1 %v6452_v41, %s5247_s22 }
 0x313   : > { %2430 = vrot.lane.b32.xlu0 %v6468_v45, %s5237_s11 }
 0x314   : > { %3008 = vrot.lane.b32.xlu1 %v6452_v41, %s5248_s23 }
 0x317   : > { %2521 = vrot.lane.b32.xlu0 %v6461_v43, %s5247_s22 }
 0x318   : > { %2525 = vrot.lane.b32.xlu1 %v6468_v45, %s5247_s22 }
 0x31b   : > { %3006 = vrot.lane.b32.xlu0 %v6461_v43, %s5248_s23 }
 0x31c   : > { %2963 = vrot.lane.b32.xlu1 %v6497_v15, %s5237_s11 }
 0x31f   : > { %3010 = vrot.lane.b32.xlu0 %v6468_v45, %s5248_s23 }
 0x320   : > { %2974 = vrot.lane.b32.xlu1 %v6504_v50, %s5236_s10 }
 0x323   : > { %2972 = vrot.lane.b32.xlu0 %v6497_v15, %s5236_s10 }
 0x324   : > { %2967 = vrot.lane.b32.xlu1 %v2395_v33, %s5237_s11 }
 0x327   : > { %2965 = vrot.lane.b32.xlu0 %v6504_v50, %s5237_s11 }
 0x328   : > { %3012 = vrot.lane.b32.xlu1 %v2395_v33, %s5248_s23 }
 0x32b   : > { %2976 = vrot.lane.b32.xlu0 %v2395_v33, %s5236_s10 }
 0x33e   : > { %v2458_v55 = vpop.permute.xlu1 %2457 }
 0x341   : > { %v6516_v58 = vpop.permute.xlu0 %2503 }
 0x342   : > { %v2454_v21 = vpop.permute.xlu1 %2453 }
 0x345   : > { %v2456_v59 = vpop.permute.xlu0 %2455 }
 0x346   : > { %v6519_v51 = vsel %vm8473_vm0, %v2456_v59, %v2458_v55  ;;  %v2413_v36 = vpop.permute.xlu1 %2412  ;;  %v6528_v61 = vsel %vm8474_vm7, %v2454_v21, %v2456_v59  ;;  %vm8496_vm7 = vmmov %vm8477_vm1 }
 0x347   : > { %2553 = vrot.lane.b32.xlu0 %v6519_v51, %s5247_s22 }
 0x349   : > { %v6523_v14 = vpop.permute.xlu0 %2459 }
 0x34a   : > { %2557 = vrot.lane.b32.xlu1 %v6523_v14, %s5247_s22  ;;  %v2409_v4 = vpop.permute.xlu1 %2408  ;;  %v6554_v44 = vsel %vm8479_vm4, %v2458_v55, %v6523_v14  ;;  %vm8499_vm4 = vmmov %vm8477_vm1 }
 0x34b   : > { %2551 = vrot.lane.b32.xlu0 %v6528_v61, %s5247_s22 }
 0x34d   : > { %v2411_v63 = vpop.permute.xlu0 %2410 }
 0x34e   : > { %v6533_v28 = vsel %vm8475_vm6, %v2411_v63, %v2413_v36  ;;  %v6535_v62 = vpop.permute.xlu1 %2507  ;;  %v6544_v48 = vsel %vm8477_vm1, %v2409_v4, %v2411_v63  ;;  %vm8498_vm6 = vmmov %vm8473_vm0 }
 0x34f   : > { %8476 = vst [vmem:[#allocation14_spill] sm:$0xff] %v6533_v28  ;;  %2529 = vrot.lane.b32.xlu0 %v6533_v28, %s5247_s22  ;;  %8478 = vst [vmem:[#allocation15_spill] sm:$0xff] %v6544_v48 }
 0x351   : > { %v6539_v32 = vpop.permute.xlu0 %2414 }
 0x352   : > { %2533 = vrot.lane.b32.xlu1 %v6539_v32, %s5247_s22  ;;  %v6546_v19 = vpop.permute.xlu1 %2509  ;;  %v6564_v26 = vsel %vm8480_vm15, %v2413_v36, %v6539_v32  ;;  %vm8500_vm15 = vmmov %vm8473_vm0 }
 0x353   : > { %2527 = vrot.lane.b32.xlu0 %v6544_v48, %s5247_s22  ;;  %8481 = vst [vmem:[#allocation16_spill] sm:$0xff] %v6564_v26 }
 0x355   : > { %v6550_v46 = vpop.permute.xlu0 %2505 }
 0x356   : > { %2555 = vrot.lane.b32.xlu1 %v6554_v44, %s5247_s22  ;;  %v2466_v6 = vpop.permute.xlu1 %2465 }
 0x357   : > { %3046 = vrot.lane.b32.xlu0 %v6519_v51, %s5248_s23 }
 0x359   : > { %v6560_v25 = vpop.permute.xlu0 %2511 }
 0x35a   : > { %2531 = vrot.lane.b32.xlu1 %v6564_v26, %s5247_s22  ;;  %v2462_v27 = vpop.permute.xlu1 %2461 }
 0x35b   : > { %3044 = vrot.lane.b32.xlu0 %v6528_v61, %s5248_s23 }
 0x35d   : > { %v2464_v54 = vpop.permute.xlu0 %2463 }
 0x35e   : > { %3048 = vrot.lane.b32.xlu1 %v6554_v44, %s5248_s23  ;;  %v2421_v31 = vpop.permute.xlu1 %2420  ;;  %v6579_v30 = vsel %vm8482_vm3, %v2464_v54, %v2466_v6  ;;  %v6586_v42 = vsel %vm8483_vm2, %v2462_v27, %v2464_v54  ;;  %vm8501_vm3 = vmmov %vm8473_vm0 }
 0x35f   : > { %3018 = vrot.lane.b32.xlu0 %v6564_v26, %s5248_s23  ;;  %vm8502_vm2 = vmmov %vm8477_vm1 }
 0x361   : > { %v6574_v0 = vpop.permute.xlu0 %2467 }
 0x362   : > { %3016 = vrot.lane.b32.xlu1 %v6533_v28, %s5248_s23  ;;  %v2417_v3 = vpop.permute.xlu1 %2416  ;;  %v6618_v16 = vsel %vm8487_vm10, %v2466_v6, %v6574_v0  ;;  %vm3074_vm10 = vcmask 719872  }
 0x363   : > { %2561 = vrot.lane.b32.xlu0 %v6579_v30, %s5247_s22 }
 0x365   : > { %v2419_v13 = vpop.permute.xlu0 %2418 }
 0x366   : > { %3014 = vrot.lane.b32.xlu1 %v6544_v48, %s5248_s23  ;;  %v6588_v34 = vpop.permute.xlu1 %2515  ;;  %v6597_v38 = vsel %vm8484_vm13, %v2419_v13, %v2421_v31  ;;  %v6608_v40 = vsel %vm8485_vm5, %v2417_v3, %v2419_v13  ;;  %vm2575_vm13 = vcmask 883712   ;;  %vm2639_vm5 = vcmask 588800  }
 0x367   : > { %2559 = vrot.lane.b32.xlu0 %v6586_v42, %s5247_s22 }
 0x369   : > { %v6592_v10 = vpop.permute.xlu0 %2422 }
 0x36a   : > { %2565 = vrot.lane.b32.xlu1 %v6574_v0, %s5247_s22  ;;  %v6599_v17 = vpop.permute.xlu1 %2517  ;;  %v6628_v35 = vsel %vm8489_vm9, %v2421_v31, %v6592_v10  ;;  %vm3369_vm9 = vcmask 408576  }
 0x36b   : > { %2537 = vrot.lane.b32.xlu0 %v6597_v38, %s5247_s22 }
 0x36d   : > { %v6603_v18 = vpop.permute.xlu0 %2513 }
 0x36e   : > { %2541 = vrot.lane.b32.xlu1 %v6592_v10, %s5247_s22  ;;  %v6610_v5 = vpop.permute.xlu1 %2996 }
 0x36f   : > { %8486 = vst [vmem:[#allocation17_spill] sm:$0xff] %v6610_v5  ;;  %2535 = vrot.lane.b32.xlu0 %v6608_v40, %s5247_s22 }
 0x371   : > { %v6614_v12 = vpop.permute.xlu0 %2519 }
 0x372   : > { %2563 = vrot.lane.b32.xlu1 %v6618_v16, %s5247_s22  ;;  %v2474_v29 = vpop.permute.xlu1 %2473 }
 0x373   : > { %3058 = vrot.lane.b32.xlu0 %v6618_v16, %s5248_s23 }
 0x375   : > { %v6624_v60 = vpop.permute.xlu0 %3004 }
 0x376   : > { %8488 = vst [vmem:[#allocation18_spill] sm:$0xff] %v6624_v60  ;;  %2539 = vrot.lane.b32.xlu1 %v6628_v35, %s5247_s22  ;;  %v2470_v2 = vpop.permute.xlu1 %2469 }
 0x377   : > { %3026 = vrot.lane.b32.xlu0 %v6597_v38, %s5248_s23 }
 0x379   : > { %v2472_v24 = vpop.permute.xlu0 %2471 }
 0x37a   : > { %3056 = vrot.lane.b32.xlu1 %v6579_v30, %s5248_s23  ;;  %v2429_v11 = vpop.permute.xlu1 %2428  ;;  %v6643_v37 = vsel %vm8490_vm12, %v2472_v24, %v2474_v29  ;;  %v6650_v21 = vsel %vm8491_vm8, %v2470_v2, %v2472_v24 }
 0x37b   : > { %3024 = vrot.lane.b32.xlu0 %v6608_v40, %s5248_s23 }
 0x37d   : > { %v6638_v56 = vpop.permute.xlu0 %2475 }
 0x37e   : > { %3054 = vrot.lane.b32.xlu1 %v6586_v42, %s5248_s23  ;;  %v2425_v55 = vpop.permute.xlu1 %2424  ;;  %v6676_v27 = vsel %vm8473_vm0, %v2474_v29, %v6638_v56 }
 0x37f   : > { %2569 = vrot.lane.b32.xlu0 %v6643_v37, %s5247_s22 }
 0x381   : > { %v2427_v33 = vpop.permute.xlu0 %2426 }
 0x382   : > { %3028 = vrot.lane.b32.xlu1 %v6628_v35, %s5248_s23  ;;  %v6659_v36 = vsel %vm8492_vm11, %v2427_v33, %v2429_v11  ;;  %v6663_v4 = vpop.permute.xlu1 %2523  ;;  %v6670_v6 = vsel %vm8493_vm14, %v2425_v55, %v2427_v33 }
 0x383   : > { %2567 = vrot.lane.b32.xlu0 %v6650_v21, %s5247_s22 }
 0x385   : > { %v6654_v59 = vpop.permute.xlu0 %2430 }
 0x386   : > { %2573 = vrot.lane.b32.xlu1 %v6638_v56, %s5247_s22  ;;  %v6678_v54 = vpop.permute.xlu1 %3008  ;;  %v6688_v3 = vsel %vm8496_vm7, %v2429_v11, %v6654_v59 }
 0x387   : > { %2545 = vrot.lane.b32.xlu0 %v6659_v36, %s5247_s22  ;;  %8494 = vst [vmem:[#allocation19_spill] sm:$0xff] %v6678_v54 }
 0x389   : > { %v6665_v63 = vpop.permute.xlu0 %2521 }
 0x38a   : > { %2549 = vrot.lane.b32.xlu1 %v6654_v59, %s5247_s22  ;;  %v6694_v13 = vpop.permute.xlu1 %2525 }
 0x38b   : > { %2543 = vrot.lane.b32.xlu0 %v6670_v6, %s5247_s22 }
 0x38d   : > { %v6682_v31 = vpop.permute.xlu0 %3006 }
 0x38e   : > { %2571 = vrot.lane.b32.xlu1 %v6676_v27, %s5247_s22  ;;  %8495 = vst [vmem:[#allocation20_spill] sm:$0xff] %v6682_v31  ;;  %v2964_v2 = vpop.permute.xlu1 %2963 }
 0x38f   : > { %3066 = vrot.lane.b32.xlu0 %v6643_v37, %s5248_s23  ;;  %v2969_v39 = vsel %vm8477_vm1, %v6539_v32, %v2964_v2 }
 0x391   : > { %v6696_v29 = vpop.permute.xlu0 %3010 }
 0x392   : > { %2547 = vrot.lane.b32.xlu1 %v6688_v3, %s5247_s22  ;;  %8497 = vst [vmem:[#allocation21_spill] sm:$0xff] %v6696_v29  ;;  %v2975_v33 = vpop.permute.xlu1 %2974 }
 0x393   : > { %3064 = vrot.lane.b32.xlu0 %v6650_v21, %s5248_s23 }
 0x395   : > { %v2973_v24 = vpop.permute.xlu0 %2972 }
 0x396   : > { %3068 = vrot.lane.b32.xlu1 %v6676_v27, %s5248_s23  ;;  %v2978_v11 = vsel %vm8498_vm6, %v6523_v14, %v2973_v24  ;;  %v2968_v29 = vpop.permute.xlu1 %2967 }
 0x397   : > { %3038 = vrot.lane.b32.xlu0 %v6688_v3, %s5248_s23 }
 0x399   : > { %v2966_v55 = vpop.permute.xlu0 %2965 }
 0x39a   : > { %3036 = vrot.lane.b32.xlu1 %v6659_v36, %s5248_s23  ;;  %v2970_v5 = vsel %vm8499_vm4, %v6592_v10, %v2966_v55  ;;  %vm8563_vm4 = vcmask 1014784  }
 0x39b   : > { %3022 = vrot.lane.b32.xlu0 %v2964_v2, %s5248_s23 }
 0x39e   : > { %3034 = vrot.lane.b32.xlu1 %v6670_v6, %s5248_s23 }
 0x39f   : > { %3050 = vrot.lane.b32.xlu0 %v2978_v11, %s5248_s23  ;;  %v2977_v11 = vpop.permute.xlu0 %2976 }
 0x3a0   : > { %v2980_v2 = vsel %vm8501_vm3, %v6638_v56, %v2977_v11  ;;  %vm8565_vm3 = vcmask 1022976  }
 0x3a2   : > { %3052 = vrot.lane.b32.xlu1 %v2973_v24, %s5248_s23  ;;  %v2979_v24 = vsel %vm8500_vm15, %v6574_v0, %v2975_v33  ;;  %vm8564_vm15 = vmmov %vm8563_vm4 }
 0x3a3   : > { %3062 = vrot.lane.b32.xlu0 %v2975_v33, %s5248_s23  ;;  %v6740_v33 = vpop.permute.xlu1 %3012 }
 0x3a4   : > { %8503 = vst [vmem:[#allocation22_spill] sm:$0xff] %v6740_v33 }
 0x3a6   : > { %3020 = vrot.lane.b32.xlu1 %v2969_v39, %s5248_s23 }
 0x3a7   : > { %3030 = vrot.lane.b32.xlu0 %v2970_v5, %s5248_s23  ;;  %v2971_v5 = vsel %vm8502_vm2, %v6654_v59, %v2968_v29  ;;  %vm8566_vm2 = vmmov %vm8565_vm3 }
 0x3aa   : > { %3032 = vrot.lane.b32.xlu1 %v2966_v55, %s5248_s23 }
 0x3ab   : > { %3042 = vrot.lane.b32.xlu0 %v2968_v29, %s5248_s23 }
 0x3ae   : > { %3060 = vrot.lane.b32.xlu1 %v2979_v24, %s5248_s23  ;;  %v3315_v24 = vld [vmem:[%s8297_s4] sm:$0xff] }
 0x3af   : > { %3070 = vrot.lane.b32.xlu0 %v2980_v2, %s5248_s23 }
 0x3b2   : > { %3072 = vrot.lane.b32.xlu1 %v2977_v11, %s5248_s23 }
 0x3b3   : > { %2998 = vrot.lane.b32.xlu0 %v6400_v47, %s5248_s23 }
 0x3b6   : > { %3000 = vrot.lane.b32.xlu1 %v6419_v9, %s5248_s23 }
 0x3b7   : > { %3002 = vrot.lane.b32.xlu0 %v6504_v50, %s5248_s23 }
 0x3b9   : > { %v6733_v39 = vpop.permute.xlu0 %2553 }
 0x3ba   : > { %3040 = vrot.lane.b32.xlu1 %v2971_v5, %s5248_s23  ;;  %v3316_v5 = vld [vmem:[%s8297_s4 + $0x8] sm:$0xff] }
 0x3bb   : > { %2986 = vrot.lane.b32.xlu0 %v6357_v53, %s5248_s23 }
 0x3bc   : > { %v6748_v50 = vpop.permute.xlu1 %2557 }
 0x3bd   : > { %v6742_v55 = vpop.permute.xlu0 %2551 }
 0x3be   : > { %2994 = vrot.lane.b32.xlu1 %v6403_v7, %s5248_s23 }
 0x3bf   : > { %2990 = vrot.lane.b32.xlu0 %v6372_v1, %s5248_s23 }
 0x3c1   : > { %v6750_v11 = vpop.permute.xlu0 %2529 }
 0x3c2   : > { %2988 = vrot.lane.b32.xlu1 %v6342_v8, %s5248_s23 }
 0x3c3   : > { %2984 = vrot.lane.b32.xlu0 %v6332_v20, %s5248_s23 }
 0x3c4   : > { %v6756_v29 = vpop.permute.xlu1 %2533 }
 0x3c5   : > { %v6761_v2 = vpop.permute.xlu0 %2527 }
 0x3c6   : > { %2992 = vrot.lane.b32.xlu1 %v6497_v15, %s5248_s23 }
 0x3c7   : > { %3319 = vperm.xlu0 %5205, %v3315_v24  }
 0x3c8   : > { %v2556_v33 = vpop.permute.xlu1 %2555 }
 0x3c9   : > { %v6768_v60 = vpop.permute.xlu0 %3046 }
 0x3ca   : > { %8504 = vst [vmem:[#allocation23_spill] sm:$0xff] %v6768_v60  ;;  %3324 = vperm.xlu1 %5204, %v3316_v5  }
 0x3cb   : > { %5222 = vrot.lane.b32.xlu0 %v6173_v22, %s5249_s12 }
 0x3cc   : > { %v6771_v31 = vpop.permute.xlu1 %2531 }
 0x3cd   : > { %v6773_v54 = vpop.permute.xlu0 %3044 }
 0x3ce   : > { %8505 = vst [vmem:[#allocation24_spill] sm:$0xff] %v6773_v54  ;;  %5217 = vrot.lane.b32.xlu1 %v6084_v49, %s5249_s12 }
 0x3d0   : > { %v6776_v20 = vpop.permute.xlu1 %3048 }
 0x3d1   : > { %8506 = vst [vmem:[#allocation25_spill] sm:$0xff] %v6776_v20  ;;  %v6778_v15 = vpop.permute.xlu0 %3018 }
 0x3d2   : > { %8507 = vst [vmem:[#allocation26_spill] sm:$0xff] %v6778_v15  ;;  %3359 = vrot.lane.b32.xlu1 %v6192_v57, %s5249_s12 }
 0x3d4   : > { %v6781_v24 = vpop.permute.xlu1 %3016 }
 0x3d5   : > { %8508 = vst [vmem:[#allocation27_spill] sm:$0xff] %v6781_v24  ;;  %v2562_v8 = vpop.permute.xlu0 %2561 }
 0x3d8   : > { %v6783_v60 = vpop.permute.xlu1 %3014 }
 0x3d9   : > { %8509 = vst [vmem:[#allocation28_spill] sm:$0xff] %v6783_v60  ;;  %v2560_v5 = vpop.permute.xlu0 %2559 }
 0x3da   : > { %v2597_v26 = vsel %vm2575_vm13, %v2560_v5, %v2562_v8 }
 0x3dc   : > { %v2566_v53 = vpop.permute.xlu1 %2565 }
 0x3dd   : > { %v2538_v22 = vpop.permute.xlu0 %2537 }
 0x3e0   : > { %v2542_v1 = vpop.permute.xlu1 %2541 }
 0x3e1   : > { %v2536_v7 = vpop.permute.xlu0 %2535 }
 0x3e4   : > { %v2564_v47 = vpop.permute.xlu1 %2563 }
 0x3e5   : > { %v6785_v54 = vpop.permute.xlu0 %3058 }
 0x3e6   : > { %8510 = vst [vmem:[#allocation29_spill] sm:$0xff] %v6785_v54 }
 0x3e8   : > { %v2540_v49 = vpop.permute.xlu1 %2539 }
 0x3e9   : > { %v6787_v52 = vpop.permute.xlu0 %3026 }
 0x3ea   : > { %8511 = vst [vmem:[#allocation30_spill] sm:$0xff] %v6787_v52 }
 0x3ec   : > { %v6789_v20 = vpop.permute.xlu1 %3056 }
 0x3ed   : > { %8512 = vst [vmem:[#allocation31_spill] sm:$0xff] %v6789_v20  ;;  %v6791_v15 = vpop.permute.xlu0 %3024 }
 0x3ee   : > { %8513 = vst [vmem:[#allocation32_spill] sm:$0xff] %v6791_v15 }
 0x3f0   : > { %v6793_v57 = vpop.permute.xlu1 %3054 }
 0x3f1   : > { %8514 = vst [vmem:[#allocation33_spill] sm:$0xff] %v6793_v57  ;;  %v2570_v24 = vpop.permute.xlu0 %2569  ;;  %v2599_v57 = vsel %vm2575_vm13, %v2564_v47, %v2566_v53 }
 0x3f4   : > { %v6795_v9 = vpop.permute.xlu1 %3028 }
 0x3f5   : > { %8515 = vst [vmem:[#allocation34_spill] sm:$0xff] %v6795_v9  ;;  %v2568_v60 = vpop.permute.xlu0 %2567  ;;  %v2598_v9 = vsel %vm2575_vm13, %v2562_v8, %v2564_v47 }
 0x3f6   : > { %v2600_v15 = vsel %vm2575_vm13, %v2568_v60, %v2570_v24  ;;  %v2589_v60 = vsel %vm2575_vm13, %v2538_v22, %v2540_v49 }
 0x3f8   : > { %v2574_v23 = vpop.permute.xlu1 %2573 }
 0x3f9   : > { %v2546_v41 = vpop.permute.xlu0 %2545  ;;  %2737 = vmatprep.subr.mxu0 %v2574_v23 }
 0x3fc   : > { %v2550_v43 = vpop.permute.xlu1 %2549 }
 0x3fd   : > { %v2544_v45 = vpop.permute.xlu0 %2543 }
 0x400   : > { %v2572_v54 = vpop.permute.xlu1 %2571 }
 0x401   : > { %v6797_v48 = vpop.permute.xlu0 %3066  ;;  %v2601_v52 = vsel %vm2575_vm13, %v2570_v24, %v2572_v54  ;;  %v2602_v20 = vsel %vm2575_vm13, %v2572_v54, %v2574_v23  ;;  %v2590_v54 = vsel %vm2575_vm13, %v2540_v49, %v2542_v1 }
 0x402   : > { %8516 = vst [vmem:[#allocation35_spill] sm:$0xff] %v6797_v48  ;;  %2660 = vmatprep.subr.mxu1 %v2601_v52  ;;  %2738 = vmatpush1.msra.mxu0 %v2602_v20  ;;  %v2595_v52 = vsel %vm2575_vm13, %v6733_v39, %v2556_v33  ;;  %v2596_v20 = vsel %vm2575_vm13, %v2556_v33, %v6748_v50 }
 0x403   : > { %2661 = vmatpush1.msra.mxu1 %v2600_v15  ;;  %2739 = vmatprep.subr.mxu0 %v2566_v53  ;;  %v2594_v53 = vsel %vm2575_vm13, %v6742_v55, %v6733_v39  ;;  %v2588_v39 = vsel %vm2575_vm13, %v2536_v7, %v2538_v22  ;;  %v2582_v33 = vsel %vm2575_vm13, %v6614_v12, %v6665_v63 }
 0x404   : > { %2662 = vmatprep.subr.mxu1 %v2598_v9  ;;  %2740 = vmatpush1.msra.mxu0 %v2599_v57  ;;  %v2548_v28 = vpop.permute.xlu1 %2547  ;;  %v2591_v9 = vsel %vm2575_vm13, %v2544_v45, %v2546_v41  ;;  %v2585_v45 = vsel %vm2575_vm13, %v6761_v2, %v6750_v11  ;;  %v2580_v55 = vsel %vm2575_vm13, %v6603_v18, %v6588_v34 }
 0x405   : > { %v6805_v48 = vpop.permute.xlu0 %3064  ;;  %2663 = vmatpush1.msra.mxu1 %v2597_v26  ;;  %2741 = vmatprep.subr.mxu0 %v6748_v50  ;;  %v2592_v8 = vsel %vm2575_vm13, %v2546_v41, %v2548_v28  ;;  %v2593_v47 = vsel %vm2575_vm13, %v2548_v28, %v2550_v43  ;;  %v2586_v41 = vsel %vm2575_vm13, %v6750_v11, %v6771_v31  ;;  %v8531_v11 = vld [vmem:[#allocation3_spill] sm:$0xff] }
 0x406   : > { %2664 = vmatprep.subr.mxu1 %v2595_v52  ;;  %2742 = vmatpush1.msra.mxu0 %v2596_v20  ;;  %v2583_v28 = vsel %vm2575_vm13, %v6665_v63, %v6663_v4  ;;  %v2581_v50 = vsel %vm2575_vm13, %v6588_v34, %v6599_v17  ;;  %v2577_v63 = vsel %vm2575_vm13, %v6550_v46, %v6535_v62  ;;  %v2499_v52 = vld [vmem:[%s8296_s3 + $0x8] sm:$0xff]  ;;  %v8534_v20 = vld [vmem:[#allocation29_spill] sm:$0xff] }
 0x407   : > { %2665 = vmatpush1.msra.mxu1 %v2594_v53  ;;  %2743 = vmatprep.subr.mxu0 %v2550_v43  ;;  %v2587_v43 = vsel %vm2575_vm13, %v6771_v31, %v6756_v29  ;;  %v2584_v31 = vsel %vm2575_vm13, %v6663_v4, %v6694_v13  ;;  %v2578_v34 = vsel %vm2575_vm13, %v6535_v62, %v6546_v19  ;;  %v8535_v53 = vld [vmem:[#allocation31_spill] sm:$0xff] }
 0x408   : > { %2666 = vmatprep.subr.mxu1 %v2592_v8  ;;  %2744 = vmatpush1.msra.mxu0 %v2593_v47  ;;  %v6818_v23 = vpop.permute.xlu1 %3068  ;;  %v3104_v8 = vsel %vm3074_vm10, %v8535_v53, %v8534_v20 }
 0x409   : > { %v6820_v26 = vpop.permute.xlu0 %3038  ;;  %2667 = vmatpush1.msra.mxu1 %v2591_v9  ;;  %2745 = vmatprep.subr.mxu0 %v2542_v1  ;;  %v8533_v24 = vld [vmem:[#allocation35_spill] sm:$0xff] }
 0x40a   : > { %2668 = vmatprep.subr.mxu1 %v2589_v60  ;;  %2746 = vmatpush1.msra.mxu0 %v2590_v54  ;;  %v3108_v5 = vsel %vm3074_vm10, %v8533_v24, %v6818_v23  ;;  %v3107_v49 = vsel %vm3074_vm10, %v6805_v48, %v8533_v24 }
 0x40b   : > { %2669 = vmatpush1.msra.mxu1 %v2588_v39  ;;  %2747 = vmatprep.subr.mxu0 %v6756_v29  ;;  %v8532_v29 = vld [vmem:[#allocation2_spill] sm:$0xff]  ;;  %v8537_v39 = vld [vmem:[#allocation25_spill] sm:$0xff] }
 0x40c   : > { %2670 = vmatprep.subr.mxu1 %v2586_v41  ;;  %2748 = vmatpush1.msra.mxu0 %v2587_v43  ;;  %v6835_v1 = vpop.permute.xlu1 %3036  ;;  %v8538_v41 = vld [vmem:[#allocation23_spill] sm:$0xff] }
 0x40d   : > { %v6837_v7 = vpop.permute.xlu0 %3022  ;;  %2671 = vmatpush1.msra.mxu1 %v2585_v45  ;;  %2749 = vmatprep.subr.mxu0 %v6694_v13  ;;  %v2579_v13 = vsel %vm2575_vm13, %v6560_v25, %v6603_v18  ;;  %v2576_v25 = vsel %vm2575_vm13, %v6516_v58, %v6550_v46  ;;  %v8518_v46 = vld [vmem:[#allocation16_spill] sm:$0xff]  ;;  %v3100_v43 = vsel %vm3074_vm10, %v8538_v41, %v8537_v39 }
 0x40e   : > { %2672 = vmatprep.subr.mxu1 %v2583_v28  ;;  %2750 = vmatpush1.msra.mxu0 %v2584_v31  ;;  %v8539_v45 = vld [vmem:[#allocation24_spill] sm:$0xff] }
 0x40f   : > { %2673 = vmatpush1.msra.mxu1 %v2582_v33  ;;  %2751 = vmatprep.subr.mxu0 %v6599_v17  ;;  %v4999_v17 = vld [vmem:[%s8296_s3 + $0x10] sm:$0xff]  ;;  %v3099_v28 = vsel %vm3074_vm10, %v8539_v45, %v8538_v41 }
 0x410   : > { %2674 = vmatprep.subr.mxu1 %v2580_v55  ;;  %2752 = vmatpush1.msra.mxu0 %v2581_v50  ;;  %v6856_v4 = vpop.permute.xlu1 %3034 }
 0x411   : > { %v6861_v12 = vpop.permute.xlu0 %3050  ;;  %2675 = vmatpush1.msra.mxu1 %v2579_v13  ;;  %2753 = vmatprep.subr.mxu0 %v6546_v19  ;;  %v3096_v13 = vsel %vm3074_vm10, %v6835_v1, %v6820_v26 }
 0x412   : > { %2676 = vmatprep.subr.mxu1 %v2577_v63  ;;  %2754 = vmatpush1.msra.mxu0 %v2578_v34  ;;  %v3101_v50 = vsel %vm3074_vm10, %v8537_v39, %v6861_v12 }
 0x413   : > { %2677 = vmatpush1.msra.mxu1 %v2576_v25  ;;  %2897 = vmatprep.subr.mxu0 %v6638_v56  ;;  %v8540_v25 = vld [vmem:[#allocation34_spill] sm:$0xff] }
 0x414   : > { %5001 = vmatmul.mubr.msk.f32.vlgmr.msra.gmra.mxu1 %vm2639_vm5, %v4999_v17  ;;  %5003 = vmatmul.mubr.msk.f32.vlgmr.msra.gmra.mxu0 %vm2639_vm5, %v4999_v17  ;;  %v6879_v18 = vpop.permute.xlu1 %3052  ;;  %v3095_v17 = vsel %vm3074_vm10, %v6856_v4, %v6835_v1  ;;  %v8543_v1 = vld [vmem:[#allocation26_spill] sm:$0xff]  ;;  %v8544_v4 = vld [vmem:[#allocation27_spill] sm:$0xff] }
 0x415   : > { %2820 = vmatprep.subr.mxu1 %v6643_v37  ;;  %2898 = vmatpush1.msra.mxu0 %v6676_v27  ;;  %v6883_v62 = vpop.permute.xlu0 %3062  ;;  %v8526_v37 = vld [vmem:[#allocation8_spill] sm:$0xff]  ;;  %v2498_v27 = vld [vmem:[%s8296_s3] sm:$0xff]  ;;  %v3102_v31 = vsel %vm3074_vm10, %v6861_v12, %v6879_v18 }
 0x416   : > { %2821 = vmatpush1.msra.mxu1 %v6650_v21  ;;  %2899 = vmatprep.subr.mxu0 %v6574_v0  ;;  %v8520_v0 = vld [vmem:[#allocation13_spill] sm:$0xff]  ;;  %v8527_v21 = vld [vmem:[#allocation6_spill] sm:$0xff]  ;;  %v8542_v12 = vld [vmem:[#allocation32_spill] sm:$0xff] }
 0x417   : > { %2822 = vmatprep.subr.mxu1 %v6579_v30  ;;  %2900 = vmatpush1.msra.mxu0 %v6618_v16  ;;  %v8523_v16 = vld [vmem:[#allocation11_spill] sm:$0xff]  ;;  %v8541_v18 = vld [vmem:[#allocation30_spill] sm:$0xff] }
 0x418   : > { %2823 = vmatpush1.msra.mxu1 %v6586_v42  ;;  %2901 = vmatprep.subr.mxu0 %v6523_v14  ;;  %v6891_v58 = vpop.permute.xlu1 %3020  ;;  %v5000_v42 = vld [vmem:[%s8296_s3 + $0x18] sm:$0xff] }
 0x419   : > { %2824 = vmatprep.subr.mxu1 %v6519_v51  ;;  %2902 = vmatpush1.msra.mxu0 %v6554_v44  ;;  %v6895_v19 = vpop.permute.xlu0 %3030  ;;  %v8519_v44 = vld [vmem:[#allocation15_spill] sm:$0xff] }
 0x41a   : > { %2825 = vmatpush1.msra.mxu1 %v6528_v61  ;;  %2903 = vmatprep.subr.mxu0 %v6654_v59  ;;  %v8517_v61 = vld [vmem:[#allocation14_spill] sm:$0xff] }
 0x41b   : > { %2826 = vmatprep.subr.mxu1 %v6659_v36  ;;  %2904 = vmatpush1.msra.mxu0 %v6688_v3  ;;  %v8528_v36 = vld [vmem:[#allocation7_spill] sm:$0xff]  ;;  %v8530_v3 = vld [vmem:[#allocation4_spill] sm:$0xff] }
 0x41c   : > { %2827 = vmatpush1.msra.mxu1 %v6670_v6  ;;  %2905 = vmatprep.subr.mxu0 %v6592_v10  ;;  %v6903_v14 = vpop.permute.xlu1 %3032  ;;  %v8521_v10 = vmov 0.0   ;;  %v8529_v6 = vld [vmem:[#allocation5_spill] sm:$0xff] }
 0x41d   : > { %2828 = vmatprep.subr.mxu1 %v6597_v38  ;;  %2906 = vmatpush1.msra.mxu0 %v6628_v35  ;;  %v6907_v51 = vpop.permute.xlu0 %3042  ;;  %v8522_v38 = vld [vmem:[#allocation12_spill] sm:$0xff]  ;;  %v8525_v35 = vld [vmem:[#allocation9_spill] sm:$0xff] }
 0x41e   : > { %2829 = vmatpush1.msra.mxu1 %v6608_v40  ;;  %2907 = vmatprep.subr.mxu0 %v6539_v32  ;;  %v8524_v32 = vld [vmem:[#allocation10_spill] sm:$0xff] }
 0x41f   : > { %2830 = vmatprep.subr.mxu1 %v8517_v61  ;;  %2908 = vmatpush1.msra.mxu0 %v8518_v46  ;;  %v3088_v46 = vsel %vm3074_vm10, %v8544_v4, %v8543_v1 }
 0x420   : > { %2831 = vmatpush1.msra.mxu1 %v8519_v44  ;;  %2909 = vmatprep.subr.mxu0 %v8520_v0  ;;  %v3061_v30 = vpop.permute.xlu1 %3060  ;;  %v3093_v44 = vsel %vm3074_vm10, %v8540_v25, %v6895_v19  ;;  %v8545_v0 = vld [vmem:[#allocation28_spill] sm:$0xff] }
 0x421   : > { %2793 = vmatprep.mubr.f32.mxu0 %v8521_v10  ;;  %2832 = vmatprep.subr.mxu1 %v8522_v38  ;;  %v3071_v40 = vpop.permute.xlu0 %3070  ;;  %v3106_v48 = vsel %vm3074_vm10, %v3061_v30, %v6883_v62  ;;  %v3105_v54 = vsel %vm3074_vm10, %v8534_v20, %v3061_v30  ;;  %v3092_v62 = vsel %vm3074_vm10, %v8541_v18, %v8540_v25  ;;  %v8547_v38 = vld [vmem:[#allocation20_spill] sm:$0xff] }
 0x422   : > { %2910 = vmatpush1.msra.mxu0 %v8523_v16  ;;  %2716 = vmatprep.mubr.f32.mxu1 %v8521_v10  ;;  %v3109_v57 = vsel %vm3074_vm10, %v6818_v23, %v3071_v40  ;;  %v8536_v23 = vld [vmem:[#allocation33_spill] sm:$0xff]  ;;  %v3087_v30 = vsel %vm3074_vm10, %v8545_v0, %v8544_v4 }
 0x423   : > { %5004 = vmatmul.mubr.msk.f32.gmra.mxu0 %vm2639_vm5, %v5000_v42  ;;  %2833 = vmatpush1.msra.mxu1 %v8524_v32  ;;  %v3103_v60 = vsel %vm3074_vm10, %v8536_v23, %v8535_v53  ;;  %v8548_v32 = vld [vmem:[#allocation18_spill] sm:$0xff] }
 0x424   : > { %2911 = vmatprep.subr.mxu0 %v8525_v35  ;;  %5002 = vmatmul.mubr.msk.f32.gmra.mxu1 %vm2639_vm5, %v5000_v42  ;;  %v3073_v56 = vpop.permute.xlu1 %3072  ;;  %v8546_v42 = vld [vmem:[#allocation19_spill] sm:$0xff]  ;;  %v3083_v35 = vsel %vm3074_vm10, %v8548_v32, %v8547_v38 }
 0x425   : > { %2834 = vmatprep.subr.mxu1 %v8526_v37  ;;  %2912 = vmatpush1.msra.mxu0 %v8527_v21  ;;  %v6928_v59 = vpop.permute.xlu0 %2998  ;;  %v3110_v2 = vsel %vm3074_vm10, %v3071_v40, %v3073_v56  ;;  %v3084_v40 = vsel %vm3074_vm10, %v8547_v38, %v8546_v42  ;;  %v8549_v56 = vld [vmem:[#allocation22_spill] sm:$0xff]  ;;  %v8550_v37 = vld [vmem:[#allocation21_spill] sm:$0xff] }
 0x426   : > { %2835 = vmatpush1.msra.mxu1 %v8528_v36  ;;  %2913 = vmatprep.subr.mxu0 %v8529_v6  ;;  %v8551_v36 = vld [vmem:[#allocation17_spill] sm:$0xff] }
 0x427   : > { %2836 = vmatprep.subr.mxu1 %v8530_v3  ;;  %2914 = vmatpush1.msra.mxu0 %v8531_v11  ;;  %v3080_v6 = vsel %vm3074_vm10, %v8551_v36, %v6928_v59 }
 0x428   : > { %2947 = vmatprep.mubr.f32.mxu0 %v8521_v10  ;;  %2837 = vmatpush1.msra.mxu1 %v8532_v29  ;;  %v6940_v15 = vpop.permute.xlu1 %3000 }
 0x429   : > { %2870 = vmatprep.mubr.f32.mxu1 %v8521_v10  ;;  %5007 = vmatmul.mubr.msk.f32.vlgmr.msra.gmra.mxu0 %vm2639_vm5, %v2498_v27  ;;  %v6947_v22 = vpop.permute.xlu0 %3002 }
 0x42a   : > { %5005 = vmatmul.mubr.msk.f32.vlgmr.msra.gmra.mxu1 %vm2639_vm5, %v2498_v27  ;;  %3167 = vmatprep.subr.mxu1 %v3108_v5  ;;  %v3082_v29 = vsel %vm3074_vm10, %v6940_v15, %v6947_v22  ;;  %v3081_v5 = vsel %vm3074_vm10, %v6928_v59, %v6940_v15 }
 0x42b   : > { %3244 = vmatprep.subr.mxu0 %v3110_v2  ;;  %3168 = vmatpush1.msra.mxu1 %v3107_v49  ;;  %v5009_v2 = vld [vmem:[%s8296_s3 + $0x20] sm:$0xff]  ;;  %v5010_v49 = vld [vmem:[%s8296_s3 + $0x28] sm:$0xff] }
 0x42c   : > { %3245 = vmatpush1.msra.mxu0 %v3109_v57  ;;  %2953 = vmatprep.mubr.f32.mxu0 %v8521_v10  ;;  %v3041_v47 = vpop.permute.xlu1 %3040 }
 0x42d   : > { %3169 = vmatprep.subr.mxu1 %v3104_v8  ;;  %3246 = vmatprep.subr.mxu0 %v3106_v48  ;;  %v2987_v9 = vpop.permute.xlu0 %2986  ;;  %v3098_v33 = vsel %vm3074_vm10, %v3041_v47, %v6907_v51  ;;  %v3097_v63 = vsel %vm3074_vm10, %v6820_v26, %v3041_v47  ;;  %v3091_v51 = vsel %vm3074_vm10, %v8542_v12, %v8541_v18 }
 0x42e   : > { %2876 = vmatprep.mubr.f32.mxu1 %v8521_v10  ;;  %5008 = vmatmul.mubr.msk.f32.gmra.mxu0 %vm2639_vm5, %v2499_v52  ;;  %v3094_v26 = vsel %vm3074_vm10, %v6895_v19, %v6903_v14  ;;  %v3090_v14 = vsel %vm3074_vm10, %v6891_v58, %v6837_v7  ;;  %v3089_v19 = vsel %vm3074_vm10, %v8543_v1, %v6891_v58 }
 0x42f   : > { %3170 = vmatpush1.msra.mxu1 %v3103_v60  ;;  %3247 = vmatpush1.msra.mxu0 %v3105_v54  ;;  %v3086_v7 = vsel %vm3074_vm10, %v8550_v37, %v8549_v56  ;;  %v3085_v58 = vsel %vm3074_vm10, %v8546_v42, %v8550_v37 }
 0x430   : > { %5006 = vmatmul.mubr.msk.f32.gmra.mxu1 %vm2639_vm5, %v2499_v52  ;;  %3171 = vmatprep.subr.mxu1 %v3100_v43  ;;  %v2995_v55 = vpop.permute.xlu1 %2994 }
 0x431   : > { %3248 = vmatprep.subr.mxu0 %v3102_v31  ;;  %3172 = vmatpush1.msra.mxu1 %v3099_v28  ;;  %v2991_v34 = vpop.permute.xlu0 %2990  ;;  %v3079_v3 = vsel %vm3074_vm10, %v2995_v55, %v8551_v36 }
 0x432   : > { %3249 = vmatpush1.msra.mxu0 %v3101_v50  ;;  %3173 = vmatprep.subr.mxu1 %v3096_v13 }
 0x433   : > { %3174 = vmatpush1.msra.mxu1 %v3095_v17  ;;  %3250 = vmatprep.subr.mxu0 %v3098_v33 }
 0x434   : > { %3175 = vmatprep.subr.mxu1 %v3092_v62  ;;  %3251 = vmatpush1.msra.mxu0 %v3097_v63  ;;  %v2989_v61 = vpop.permute.xlu1 %2988 }
 0x435   : > { %3176 = vmatpush1.msra.mxu1 %v3091_v51  ;;  %3252 = vmatprep.subr.mxu0 %v3094_v26  ;;  %v2985_v16 = vpop.permute.xlu0 %2984  ;;  %v3076_v27 = vsel %vm3074_vm10, %v2987_v9, %v2989_v61  ;;  %v3077_v22 = vsel %vm3074_vm10, %v2989_v61, %v2991_v34 }
 0x436   : > { %3177 = vmatprep.subr.mxu1 %v3088_v46  ;;  %3253 = vmatpush1.msra.mxu0 %v3093_v44  ;;  %v3075_v11 = vsel %vm3074_vm10, %v2985_v16, %v2987_v9 }
 0x437   : > { %3178 = vmatpush1.msra.mxu1 %v3087_v30  ;;  %3254 = vmatprep.subr.mxu0 %v3090_v14 }
 0x438   : > { %3179 = vmatprep.subr.mxu1 %v3084_v40  ;;  %3255 = vmatpush1.msra.mxu0 %v3089_v19  ;;  %v2993_v21 = vpop.permute.xlu1 %2992 }
 0x439   : > { %3180 = vmatpush1.msra.mxu1 %v3083_v35  ;;  %3256 = vmatprep.subr.mxu0 %v3086_v7  ;;  %v3078_v24 = vsel %vm3074_vm10, %v2991_v34, %v2993_v21 }
 0x43a   : > { %3181 = vmatprep.subr.mxu1 %v3080_v6  ;;  %3257 = vmatpush1.msra.mxu0 %v3085_v58 }
 0x43b   : > { %3182 = vmatpush1.msra.mxu1 %v3079_v3  ;;  %3258 = vmatprep.subr.mxu0 %v3082_v29 }
 0x43c   : > { %3183 = vmatprep.subr.mxu1 %v3076_v27  ;;  %3217 = vmatprep.mubr.f32.mxu1 %v8521_v10 }
 0x43d   : > { %3184 = vmatpush1.msra.mxu1 %v3075_v11  ;;  %3259 = vmatpush1.msra.mxu0 %v3081_v5 }
 0x43e   : > { %5011 = vmatmul.mubr.msk.f32.vlgmr.msra.gmra.mxu1 %vm2639_vm5, %v5009_v2  ;;  %3260 = vmatprep.subr.mxu0 %v3078_v24 }
 0x43f   : > { %3223 = vmatprep.mubr.f32.mxu1 %v8521_v10  ;;  %3261 = vmatpush1.msra.mxu0 %v3077_v22 }
 0x440   : > { %3294 = vmatprep.mubr.f32.mxu0 %v8521_v10 }
 0x441   : > { %5013 = vmatmul.mubr.msk.f32.vlgmr.msra.gmra.mxu0 %vm2639_vm5, %v5009_v2 }
 0x442   : > { %5012 = vmatmul.mubr.msk.f32.gmra.mxu1 %vm2639_vm5, %v5010_v49  ;;  %3300 = vmatprep.mubr.f32.mxu0 %v8521_v10  ;;  %v3320_v55 = vpop.permute.xlu0 %3319 }
 0x443   : > { %3735 = vmatprep.mubr.f32.mxu1 %v8521_v10 }
 0x445   : > { %5014 = vmatmul.mubr.msk.f32.gmra.mxu0 %vm2639_vm5, %v5010_v49  ;;  %v7073_v31 = vpop.permute.xlu1 %3324  ;;  %vm8567_vm5 = vcmask 1031168  }
 0x446   : > { %3806 = vmatprep.mubr.f32.mxu0 %v8521_v10  ;;  %v5223_v18 = vpop.permute.xlu0 %5222 }
 0x447   : > { %v5224_v46 = vunpack.i.l.bf16 %v5223_v18  ;;  %v5225_v56 = vunpack.i.h.bf16 %v5223_v18 }
 0x449   : > { %v5218_v33 = vpop.permute.xlu1 %5217  ;;  %v3373_v36 = vsel %vm3369_vm9, %v5224_v46, %v5225_v56 }
 0x44a   : > { %v5219_v25 = vunpack.i.l.bf16 %v5218_v33  ;;  %v5220_v4 = vunpack.i.h.bf16 %v5218_v33 }
 0x44c   : > { %v7082_v16 = vsel %vm3369_vm9, %v5220_v4, %v5224_v46  ;;  %v3371_v29 = vsel %vm3369_vm9, %v5219_v25, %v5220_v4 }
 0x44d   : > { %v3360_v26 = vpop.permute.xlu1 %3359 }
 0x44e   : > { %v7076_v14 = vsel %vm3369_vm9, %v3360_v26, %v5219_v25  ;;  %vm8569_vm9 = vmmov %vm8567_vm5 }
 0x4d4   : > { %v2789_v59 = vpop.f32.mrf.mxu0  ;;  %v2712_v15 = vpop.f32.mrf.mxu1 }
 0x4d6   : > { %v2791_v57 = vpop.f32.mrf.mxu0  ;;  %v2714_v52 = vpop.f32.mrf.mxu1 }
 0x4e3   : > { %v7061_v20 = vpop.f32.mrf.mxu0 }
 0x4e4   : > { %v7063_v53 = vpop.f32.mrf.mxu1 }
 0x4e5   : > { %v2797_v8 = vpop.f32.mrf.mxu0 }
 0x4e6   : > { %v2720_v48 = vpop.f32.mrf.mxu1 }
 0x4e9   : > { %v2949_v47 = vpop.f32.mrf.mxu0 }
 0x4ea   : > { %v2872_v9 = vpop.f32.mrf.mxu1  ;;  %v2950_v34 = vadd.f32 %v2949_v47, %v2789_v59 }
 0x4eb   : > { %v2951_v23 = vpop.f32.mrf.mxu0  ;;  %v2873_v50 = vadd.f32 %v2872_v9, %v2712_v15 }
 0x4ec   : > { %v2874_v60 = vpop.f32.mrf.mxu1  ;;  %v2952_v12 = vadd.f32 %v2951_v23, %v2791_v57 }
 0x4ed   : > { %v2875_v21 = vadd.f32 %v2874_v60, %v2714_v52 }
 0x4ee   : > { %v7065_v54 = vpop.f32.mrf.mxu0 }
 0x4ef   : > { %v2956_v59 = vadd.f32 %v7065_v54, %v7061_v20 }
 0x4f0   : > { %v7067_v39 = vpop.f32.mrf.mxu1  ;;  %v2957_v41 = vpop.f32.mrf.mxu0 }
 0x4f1   : > { %v7069_v43 = vadd.f32 %v2957_v41, %v2797_v8  ;;  %v2879_v5 = vadd.f32 %v7067_v39, %v7063_v53 }
 0x4f2   : > { %v2880_v45 = vpop.f32.mrf.mxu1 }
 0x4f3   : > { %v7071_v28 = vadd.f32 %v2880_v45, %v2720_v48 }
 0x4fe   : > { %v3219_v13 = vpop.f32.mrf.mxu1 }
 0x4ff   : > { %v3307_v63 = vadd.f32 %v3219_v13, %v2873_v50 }
 0x500   : > { %v3221_v7 = vpop.f32.mrf.mxu1 }
 0x501   : > { %v3327_v17 = vadd.f32 %v3320_v55, %v3307_v63  ;;  %v3296_v62 = vpop.f32.mrf.mxu0  ;;  %v3308_v58 = vadd.f32 %v3221_v7, %v2875_v21 }
 0x502   : > { %v3309_v51 = vadd.f32 %v3296_v62, %v2950_v34  ;;  %v3225_v24 = vpop.f32.mrf.mxu1 }
 0x503   : > { %v3343_v61 = vmul.f32 0.001, %v3327_v17  ;;  %vm3335_vm12 = vcmp.ge.f32.partialorder %v3327_v17, 0.0  ;;  %v3298_v1 = vpop.f32.mrf.mxu0  ;;  %v3328_v27 = vadd.f32 %v3320_v55, %v3308_v58  ;;  %v3311_v22 = vadd.f32 %v3225_v24, %v2879_v5 }
 0x504   : > { %v3329_v44 = vadd.f32 %v3320_v55, %v3309_v51  ;;  %v3310_v0 = vadd.f32 %v3298_v1, %v2952_v12 }
 0x505   : > { %v3351_v30 = vsel %vm3335_vm12, %v3327_v17, %v3343_v61  ;;  %v3344_v3 = vmul.f32 0.001, %v3328_v27  ;;  %vm3336_vm14 = vcmp.ge.f32.partialorder %v3328_v27, 0.0  ;;  %v3302_v49 = vpop.f32.mrf.mxu0  ;;  %v3331_v57 = vadd.f32 %v7073_v31, %v3311_v22 }
 0x506   : > { %vm3337_vm8 = vcmp.ge.f32.partialorder %v3329_v44, 0.0  ;;  %v3345_v42 = vmul.f32 0.001, %v3329_v44  ;;  %v7079_v38 = vmul.f32 %v7076_v14, %v3351_v30  ;;  %v3330_v40 = vadd.f32 %v3320_v55, %v3310_v0 }
 0x507   : > { %v3352_v11 = vsel %vm3336_vm14, %v3328_v27, %v3344_v3  ;;  %v3313_v15 = vadd.f32 %v3302_v49, %v2956_v59  ;;  %v3347_v53 = vmul.f32 0.001, %v3331_v57  ;;  %vm3339_vm0 = vcmp.ge.f32.partialorder %v3331_v57, 0.0  ;;  %v3304_v20 = vpop.f32.mrf.mxu0  ;;  %vm8581_vm14 = vmmov %vm8566_vm2 }
 0x508   : > { %v3353_v19 = vsel %vm3337_vm8, %v3329_v44, %v3345_v42  ;;  %3517 = vrot.lane.b32.xlu0 %v7079_v38, %s5247_s22  ;;  %v3346_v35 = vmul.f32 0.001, %v3330_v40  ;;  %vm3338_vm11 = vcmp.ge.f32.partialorder %v3330_v40, 0.0  ;;  %v7117_v2 = vmul.f32 %v3371_v29, %v3352_v11 }
 0x509   : > { %v7087_v32 = vmul.f32 %v7082_v16, %v3353_v19  ;;  %v3333_v52 = vadd.f32 %v7073_v31, %v3313_v15  ;;  %v3355_v48 = vsel %vm3339_vm0, %v3331_v57, %v3347_v53  ;;  %v3314_v47 = vadd.f32 %v3304_v20, %v7069_v43  ;;  %v3227_v43 = vpop.f32.mrf.mxu1  ;;  %vm8583_vm0 = vmmov %vm8567_vm5 }
 0x50a   : > { %v3354_v37 = vsel %vm3338_vm11, %v3330_v40, %v3346_v35  ;;  %v7155_v9 = vmul.f32 %v7076_v14, %v3355_v48  ;;  %v3312_v33 = vadd.f32 %v3227_v43, %v7071_v28  ;;  %vm8573_vm12 = vcmask 1039360   ;;  %vm8580_vm11 = vmmov %vm8563_vm4 }
 0x50b   : > { %8552 = vst [vmem:[#allocation14_spill] sm:$0xff] %v7087_v32  ;;  %3488 = vrot.lane.b32.xlu1 %v7087_v32, %s5234_s8  ;;  %v7098_v6 = vmul.f32 %v3373_v36, %v3354_v37  ;;  %v3349_v8 = vmul.f32 0.001, %v3333_v52  ;;  %vm3341_vm7 = vcmp.ge.f32.partialorder %v3333_v52, 0.0  ;;  %v3334_v60 = vadd.f32 %v7073_v31, %v3314_v47  ;;  %vm8577_vm8 = vmmov %vm8573_vm12 }
 0x50c   : > { %3960 = vrot.lane.b32.xlu0 %v7079_v38, %s5248_s23  ;;  %8554 = vst [vmem:[#allocation15_spill] sm:$0xff] %v7155_v9  ;;  %v3332_v55 = vadd.f32 %v7073_v31, %v3312_v33 }
 0x50d   : > { %8553 = vst [vmem:[#allocation16_spill] sm:$0xff] %v7098_v6  ;;  %v3357_v23 = vsel %vm3341_vm7, %v3333_v52, %v3349_v8  ;;  %v3350_v39 = vmul.f32 0.001, %v3334_v60  ;;  %vm3342_vm6 = vcmp.ge.f32.partialorder %v3334_v60, 0.0  ;;  %vm8586_vm7 = vmmov %vm8577_vm8 }
 0x50e   : > { %v7163_v54 = vmul.f32 %v7082_v16, %v3357_v23  ;;  %v3348_v50 = vmul.f32 0.001, %v3332_v55  ;;  %vm3340_vm1 = vcmp.ge.f32.partialorder %v3332_v55, 0.0 }
 0x50f   : > { %3458 = vrot.lane.b32.xlu1 %v7087_v32, %s5235_s9  ;;  %v3358_v41 = vsel %vm3342_vm6, %v3334_v60, %v3350_v39  ;;  %vm8600_vm6 = vmmov %vm8563_vm4 }
 0x510   : > { %4261 = vrot.lane.b32.xlu0 %v7079_v38, %s5250_s29  ;;  %8555 = vst [vmem:[#allocation13_spill] sm:$0xff] %v7163_v54  ;;  %v7173_v45 = vmul.f32 %v3373_v36, %v3358_v41  ;;  %v3356_v28 = vsel %vm3340_vm1, %v3332_v55, %v3348_v50  ;;  %vm8602_vm1 = vmmov %vm8563_vm4 }
 0x511   : > { %v7193_v31 = vmul.f32 %v3371_v29, %v3356_v28 }
 0x512   : > { %8556 = vst [vmem:[#allocation12_spill] sm:$0xff] %v7173_v45 }
 0x513   : > { %3428 = vrot.lane.b32.xlu1 %v7087_v32, %s5236_s10  ;;  %8557 = vst [vmem:[#allocation11_spill] sm:$0xff] %v7193_v31 }
 0x514   : > { %3490 = vrot.lane.b32.xlu0 %v7098_v6, %s5234_s8 }
 0x517   : > { %3398 = vrot.lane.b32.xlu1 %v7087_v32, %s5237_s11 }
 0x518   : > { %3460 = vrot.lane.b32.xlu0 %v7098_v6, %s5235_s9 }
 0x51b   : > { %3521 = vrot.lane.b32.xlu1 %v7087_v32, %s5247_s22 }
 0x51c   : > { %3430 = vrot.lane.b32.xlu0 %v7098_v6, %s5236_s10 }
 0x51f   : > { %3964 = vrot.lane.b32.xlu1 %v7087_v32, %s5248_s23 }
 0x520   : > { %3400 = vrot.lane.b32.xlu0 %v7098_v6, %s5237_s11 }
 0x523   : > { %4265 = vrot.lane.b32.xlu1 %v7087_v32, %s5250_s29 }
 0x524   : > { %3486 = vrot.lane.b32.xlu0 %v7117_v2, %s5234_s8 }
 0x527   : > { %3484 = vrot.lane.b32.xlu1 %v7079_v38, %s5234_s8 }
 0x528   : > { %3456 = vrot.lane.b32.xlu0 %v7117_v2, %s5235_s9 }
 0x52b   : > { %3454 = vrot.lane.b32.xlu1 %v7079_v38, %s5235_s9 }
 0x52c   : > { %3426 = vrot.lane.b32.xlu0 %v7117_v2, %s5236_s10 }
 0x52f   : > { %3424 = vrot.lane.b32.xlu1 %v7079_v38, %s5236_s10 }
 0x530   : > { %3396 = vrot.lane.b32.xlu0 %v7117_v2, %s5237_s11 }
 0x533   : > { %3394 = vrot.lane.b32.xlu1 %v7079_v38, %s5237_s11 }
 0x534   : > { %3519 = vrot.lane.b32.xlu0 %v7117_v2, %s5247_s22 }
 0x537   : > { %3523 = vrot.lane.b32.xlu1 %v7098_v6, %s5247_s22 }
 0x538   : > { %3962 = vrot.lane.b32.xlu0 %v7117_v2, %s5248_s23 }
 0x53b   : > { %3966 = vrot.lane.b32.xlu1 %v7098_v6, %s5248_s23 }
 0x53c   : > { %4263 = vrot.lane.b32.xlu0 %v7117_v2, %s5250_s29 }
 0x53f   : > { %4267 = vrot.lane.b32.xlu1 %v7098_v6, %s5250_s29 }
 0x540   : > { %3525 = vrot.lane.b32.xlu0 %v7155_v9, %s5247_s22 }
 0x543   : > { %3496 = vrot.lane.b32.xlu1 %v7163_v54, %s5234_s8 }
 0x544   : > { %3968 = vrot.lane.b32.xlu0 %v7155_v9, %s5248_s23 }
 0x547   : > { %3466 = vrot.lane.b32.xlu1 %v7163_v54, %s5235_s9 }
 0x548   : > { %4269 = vrot.lane.b32.xlu0 %v7155_v9, %s5250_s29 }
 0x54b   : > { %3436 = vrot.lane.b32.xlu1 %v7163_v54, %s5236_s10 }
 0x54c   : > { %3498 = vrot.lane.b32.xlu0 %v7173_v45, %s5234_s8 }
 0x54f   : > { %3406 = vrot.lane.b32.xlu1 %v7163_v54, %s5237_s11 }
 0x550   : > { %3468 = vrot.lane.b32.xlu0 %v7173_v45, %s5235_s9 }
 0x553   : > { %3529 = vrot.lane.b32.xlu1 %v7163_v54, %s5247_s22 }
 0x554   : > { %3438 = vrot.lane.b32.xlu0 %v7173_v45, %s5236_s10 }
 0x557   : > { %3972 = vrot.lane.b32.xlu1 %v7163_v54, %s5248_s23 }
 0x558   : > { %3408 = vrot.lane.b32.xlu0 %v7173_v45, %s5237_s11 }
 0x55b   : > { %4273 = vrot.lane.b32.xlu1 %v7163_v54, %s5250_s29 }
 0x55c   : > { %3494 = vrot.lane.b32.xlu0 %v7193_v31, %s5234_s8 }
 0x55f   : > { %3492 = vrot.lane.b32.xlu1 %v7155_v9, %s5234_s8  ;;  %s5251_s8 = smov 48  }
 0x560   : > { %3464 = vrot.lane.b32.xlu0 %v7193_v31, %s5235_s9 }
 0x563   : > { %3462 = vrot.lane.b32.xlu1 %v7155_v9, %s5235_s9 }
 0x564   : > { %3434 = vrot.lane.b32.xlu0 %v7193_v31, %s5236_s10 }
 0x567   : > { %3432 = vrot.lane.b32.xlu1 %v7155_v9, %s5236_s10 }
 0x568   : > { %3404 = vrot.lane.b32.xlu0 %v7193_v31, %s5237_s11 }
 0x56b   : > { %3402 = vrot.lane.b32.xlu1 %v7155_v9, %s5237_s11 }
 0x56c   : > { %3527 = vrot.lane.b32.xlu0 %v7193_v31, %s5247_s22 }
 0x56f   : > { %3531 = vrot.lane.b32.xlu1 %v7173_v45, %s5247_s22 }
 0x570   : > { %3970 = vrot.lane.b32.xlu0 %v7193_v31, %s5248_s23 }
 0x573   : > { %3974 = vrot.lane.b32.xlu1 %v7173_v45, %s5248_s23 }
 0x574   : > { %4271 = vrot.lane.b32.xlu0 %v7193_v31, %s5250_s29 }
 0x577   : > { %4275 = vrot.lane.b32.xlu1 %v7173_v45, %s5250_s29 }
 0x57a   : > { %v7225_v13 = vpop.permute.xlu0 %3517 }
 0x57d   : > { %v7227_v63 = vpop.permute.xlu1 %3488 }
 0x57e   : > { %v7229_v34 = vpop.permute.xlu0 %3960 }
 0x57f   : > { %8558 = vst [vmem:[#allocation10_spill] sm:$0xff] %v7229_v34 }
 0x581   : > { %v7231_v17 = vpop.permute.xlu1 %3458 }
 0x582   : > { %v7233_v25 = vpop.permute.xlu0 %4261 }
 0x583   : > { %8559 = vst [vmem:[#allocation9_spill] sm:$0xff] %v7233_v25 }
 0x585   : > { %v7235_v18 = vpop.permute.xlu1 %3428 }
 0x586   : > { %v7237_v62 = vpop.permute.xlu0 %3490 }
 0x587   : > { %3587 = vrot.lane.b32.xlu1 %v7237_v62, %s5247_s22  ;;  %v7354_v53 = vsel %vm8580_vm11, %v7227_v63, %v7237_v62  ;;  %vm8620_vm11 = vmmov %vm8586_vm7 }
 0x589   : > { %v7241_v12 = vpop.permute.xlu1 %3398 }
 0x58a   : > { %v7243_v51 = vpop.permute.xlu0 %3460 }
 0x58b   : > { %3571 = vrot.lane.b32.xlu1 %v7243_v51, %s5247_s22  ;;  %v7365_v8 = vsel %vm8581_vm14, %v7231_v17, %v7243_v51  ;;  %vm8622_vm14 = vmmov %vm8586_vm7 }
 0x58d   : > { %v7247_v26 = vpop.permute.xlu1 %3521 }
 0x58e   : > { %v7249_v61 = vpop.permute.xlu0 %3430 }
 0x58f   : > { %3555 = vrot.lane.b32.xlu1 %v7249_v61, %s5247_s22  ;;  %v7378_v23 = vsel %vm8583_vm0, %v7235_v18, %v7249_v61 }
 0x590   : > { %8584 = vst [vmem:[#allocation24_spill] sm:$0xff] %v7378_v23 }
 0x591   : > { %v7253_v1 = vpop.permute.xlu1 %3964 }
 0x592   : > { %8560 = vst [vmem:[#allocation8_spill] sm:$0xff] %v7253_v1  ;;  %v7255_v4 = vpop.permute.xlu0 %3400 }
 0x593   : > { %8561 = vst [vmem:[#allocation6_spill] sm:$0xff] %v7255_v4  ;;  %3539 = vrot.lane.b32.xlu1 %v7255_v4, %s5247_s22  ;;  %v7391_v41 = vsel %vm8586_vm7, %v7241_v12, %v7255_v4 }
 0x594   : > { %8587 = vst [vmem:[#allocation30_spill] sm:$0xff] %v7391_v41 }
 0x595   : > { %v7259_v46 = vpop.permute.xlu1 %4265 }
 0x596   : > { %8562 = vst [vmem:[#allocation7_spill] sm:$0xff] %v7259_v46  ;;  %v3487_v44 = vpop.permute.xlu0 %3486 }
 0x597   : > { %v7263_v0 = vsel %vm8563_vm4, %v3487_v44, %v7227_v63  ;;  %4030 = vrot.lane.b32.xlu1 %v7237_v62, %s5248_s23  ;;  %vm8604_vm4 = vmmov %vm8566_vm2 }
 0x598   : > { %3583 = vrot.lane.b32.xlu0 %v7263_v0, %s5247_s22 }
 0x599   : > { %v3485_v30 = vpop.permute.xlu1 %3484 }
 0x59a   : > { %v3457_v14 = vpop.permute.xlu0 %3456  ;;  %v7270_v42 = vsel %vm8564_vm15, %v3485_v30, %v3487_v44  ;;  %vm8607_vm15 = vmmov %vm8566_vm2 }
 0x59b   : > { %4014 = vrot.lane.b32.xlu1 %v7243_v51, %s5248_s23  ;;  %v7278_v16 = vsel %vm8565_vm3, %v3457_v14, %v7231_v17  ;;  %vm8610_vm3 = vmmov %vm8602_vm1 }
 0x59c   : > { %3581 = vrot.lane.b32.xlu0 %v7270_v42, %s5247_s22 }
 0x59d   : > { %v3455_v40 = vpop.permute.xlu1 %3454 }
 0x59e   : > { %v3427_v19 = vpop.permute.xlu0 %3426  ;;  %v7285_v37 = vsel %vm8566_vm2, %v3455_v40, %v3457_v14  ;;  %vm8611_vm2 = vmmov %vm8583_vm0 }
 0x59f   : > { %3998 = vrot.lane.b32.xlu1 %v7249_v61, %s5248_s23  ;;  %v7295_v36 = vsel %vm8567_vm5, %v3427_v19, %v7235_v18  ;;  %vm8613_vm5 = vmmov %vm8604_vm4 }
 0x5a0   : > { %3567 = vrot.lane.b32.xlu0 %v7278_v16, %s5247_s22  ;;  %8568 = vst [vmem:[#allocation5_spill] sm:$0xff] %v7295_v36 }
 0x5a1   : > { %v3425_v35 = vpop.permute.xlu1 %3424 }
 0x5a2   : > { %v3397_v56 = vpop.permute.xlu0 %3396  ;;  %v7304_v27 = vsel %vm8569_vm9, %v3425_v35, %v3427_v19  ;;  %vm8614_vm9 = vmmov %vm8583_vm0 }
 0x5a3   : > { %3982 = vrot.lane.b32.xlu1 %v7255_v4, %s5248_s23  ;;  %8570 = vst [vmem:[#allocation4_spill] sm:$0xff] %v7304_v27  ;;  %v7316_v29 = vsel %vm8573_vm12, %v3397_v56, %v7241_v12  ;;  %vm8616_vm12 = vmmov %vm8583_vm0  ;;  %vm4341_vm0 = vcmask 556032  }
 0x5a4   : > { %3565 = vrot.lane.b32.xlu0 %v7285_v37, %s5247_s22  ;;  %8574 = vst [vmem:[#allocation35_spill] sm:$0xff] %v7316_v29 }
 0x5a5   : > { %v3395_v7 = vpop.permute.xlu1 %3394 }
 0x5a6   : > { %v7291_v21 = vpop.permute.xlu0 %3519  ;;  %v7327_v22 = vsel %vm8577_vm8, %v3395_v7, %v3397_v56  ;;  %vm8617_vm8 = vmmov %vm8586_vm7  ;;  %vm4643_vm7 = vcmask 392192  }
 0x5a7   : > { %4331 = vrot.lane.b32.xlu1 %v7237_v62, %s5250_s29  ;;  %8578 = vst [vmem:[#allocation33_spill] sm:$0xff] %v7327_v22 }
 0x5a8   : > { %3551 = vrot.lane.b32.xlu0 %v7295_v36, %s5247_s22 }
 0x5a9   : > { %v7301_v58 = vpop.permute.xlu1 %3523 }
 0x5aa   : > { %v7308_v3 = vpop.permute.xlu0 %3962 }
 0x5ab   : > { %4315 = vrot.lane.b32.xlu1 %v7243_v51, %s5250_s29  ;;  %8571 = vst [vmem:[#allocation3_spill] sm:$0xff] %v7308_v3 }
 0x5ac   : > { %3549 = vrot.lane.b32.xlu0 %v7304_v27, %s5247_s22 }
 0x5ad   : > { %v7312_v11 = vpop.permute.xlu1 %3966 }
 0x5ae   : > { %8572 = vst [vmem:[#allocation2_spill] sm:$0xff] %v7312_v11  ;;  %v7324_v5 = vpop.permute.xlu0 %4263 }
 0x5af   : > { %4299 = vrot.lane.b32.xlu1 %v7249_v61, %s5250_s29  ;;  %8576 = vst [vmem:[#allocation31_spill] sm:$0xff] %v7324_v5 }
 0x5b0   : > { %3535 = vrot.lane.b32.xlu0 %v7316_v29, %s5247_s22 }
 0x5b1   : > { %v7322_v24 = vpop.permute.xlu1 %4267 }
 0x5b2   : > { %8575 = vst [vmem:[#allocation29_spill] sm:$0xff] %v7322_v24  ;;  %v7337_v59 = vpop.permute.xlu0 %3525 }
 0x5b3   : > { %4283 = vrot.lane.b32.xlu1 %v7255_v4, %s5250_s29 }
 0x5b4   : > { %3533 = vrot.lane.b32.xlu0 %v7327_v22, %s5247_s22 }
 0x5b5   : > { %v7333_v49 = vpop.permute.xlu1 %3496 }
 0x5b6   : > { %v7349_v52 = vpop.permute.xlu0 %3968 }
 0x5b7   : > { %4633 = vrot.lane.b32.xlu1 %v7237_v62, %s5251_s8  ;;  %8579 = vst [vmem:[#allocation25_spill] sm:$0xff] %v7349_v52 }
 0x5b8   : > { %4026 = vrot.lane.b32.xlu0 %v7263_v0, %s5248_s23 }
 0x5b9   : > { %v7341_v15 = vpop.permute.xlu1 %3466 }
 0x5ba   : > { %v7369_v48 = vpop.permute.xlu0 %4269 }
 0x5bb   : > { %4617 = vrot.lane.b32.xlu1 %v7243_v51, %s5251_s8  ;;  %8582 = vst [vmem:[#allocation23_spill] sm:$0xff] %v7369_v48 }
 0x5bc   : > { %4024 = vrot.lane.b32.xlu0 %v7270_v42, %s5248_s23 }
 0x5bd   : > { %v7347_v57 = vpop.permute.xlu1 %3436 }
 0x5be   : > { %v7386_v39 = vpop.permute.xlu0 %3498 }
 0x5bf   : > { %3585 = vrot.lane.b32.xlu1 %v7354_v53, %s5247_s22 }
 0x5c0   : > { %4010 = vrot.lane.b32.xlu0 %v7278_v16, %s5248_s23 }
 0x5c1   : > { %v7360_v20 = vpop.permute.xlu1 %3406 }
 0x5c2   : > { %v7401_v33 = vpop.permute.xlu0 %3468 }
 0x5c3   : > { %3569 = vrot.lane.b32.xlu1 %v7365_v8, %s5247_s22 }
 0x5c4   : > { %4008 = vrot.lane.b32.xlu0 %v7285_v37, %s5248_s23 }
 0x5c5   : > { %v7373_v47 = vpop.permute.xlu1 %3529 }
 0x5c6   : > { %v7411_v50 = vpop.permute.xlu0 %3438 }
 0x5c7   : > { %3553 = vrot.lane.b32.xlu1 %v7378_v23, %s5247_s22 }
 0x5c8   : > { %3994 = vrot.lane.b32.xlu0 %v7295_v36, %s5248_s23 }
 0x5c9   : > { %v7384_v60 = vpop.permute.xlu1 %3972 }
 0x5ca   : > { %8585 = vst [vmem:[#allocation34_spill] sm:$0xff] %v7384_v60  ;;  %v7421_v63 = vpop.permute.xlu0 %3408 }
 0x5cb   : > { %3537 = vrot.lane.b32.xlu1 %v7391_v41, %s5247_s22  ;;  %8589 = vst [vmem:[#allocation26_spill] sm:$0xff] %v7421_v63 }
 0x5cc   : > { %3992 = vrot.lane.b32.xlu0 %v7304_v27, %s5248_s23 }
 0x5cd   : > { %v7397_v43 = vpop.permute.xlu1 %4273 }
 0x5ce   : > { %8588 = vst [vmem:[#allocation32_spill] sm:$0xff] %v7397_v43  ;;  %v7431_v18 = vpop.permute.xlu0 %3494 }
 0x5cf   : > { %4028 = vrot.lane.b32.xlu1 %v7354_v53, %s5248_s23 }
 0x5d0   : > { %3978 = vrot.lane.b32.xlu0 %v7316_v29, %s5248_s23 }
 0x5d1   : > { %v7405_v55 = vpop.permute.xlu1 %3492 }
 0x5d2   : > { %v7441_v44 = vpop.permute.xlu0 %3464 }
 0x5d3   : > { %4012 = vrot.lane.b32.xlu1 %v7365_v8, %s5248_s23 }
 0x5d4   : > { %3976 = vrot.lane.b32.xlu0 %v7327_v22, %s5248_s23 }
 0x5d5   : > { %v7413_v28 = vpop.permute.xlu1 %3462 }
 0x5d6   : > { %v7451_v14 = vpop.permute.xlu0 %3434 }
 0x5d7   : > { %3996 = vrot.lane.b32.xlu1 %v7378_v23, %s5248_s23 }
 0x5d8   : > { %4327 = vrot.lane.b32.xlu0 %v7263_v0, %s5250_s29 }
 0x5d9   : > { %v7425_v17 = vpop.permute.xlu1 %3432 }
 0x5da   : > { %v7461_v19 = vpop.permute.xlu0 %3404 }
 0x5db   : > { %3980 = vrot.lane.b32.xlu1 %v7391_v41, %s5248_s23 }
 0x5dc   : > { %4325 = vrot.lane.b32.xlu0 %v7270_v42, %s5250_s29 }
 0x5dd   : > { %v7433_v12 = vpop.permute.xlu1 %3402 }
 0x5de   : > { %v7473_v7 = vpop.permute.xlu0 %3527 }
 0x5df   : > { %4329 = vrot.lane.b32.xlu1 %v7354_v53, %s5250_s29 }
 0x5e0   : > { %4311 = vrot.lane.b32.xlu0 %v7278_v16, %s5250_s29 }
 0x5e1   : > { %v7445_v30 = vpop.permute.xlu1 %3531 }
 0x5e2   : > { %v7483_v5 = vpop.permute.xlu0 %3970 }
 0x5e3   : > { %4313 = vrot.lane.b32.xlu1 %v7365_v8, %s5250_s29  ;;  %8592 = vst [vmem:[#allocation19_spill] sm:$0xff] %v7483_v5 }
 0x5e4   : > { %4309 = vrot.lane.b32.xlu0 %v7285_v37, %s5250_s29 }
 0x5e5   : > { %v7453_v40 = vpop.permute.xlu1 %3974 }
 0x5e6   : > { %8590 = vst [vmem:[#allocation27_spill] sm:$0xff] %v7453_v40  ;;  %v7495_v24 = vpop.permute.xlu0 %4271 }
 0x5e7   : > { %4297 = vrot.lane.b32.xlu1 %v7378_v23, %s5250_s29  ;;  %8593 = vst [vmem:[#allocation20_spill] sm:$0xff] %v7495_v24 }
 0x5e8   : > { %4295 = vrot.lane.b32.xlu0 %v7295_v36, %s5250_s29 }
 0x5e9   : > { %v7465_v35 = vpop.permute.xlu1 %4275 }
 0x5ea   : > { %8591 = vst [vmem:[#allocation28_spill] sm:$0xff] %v7465_v35 }
 0x5eb   : > { %4281 = vrot.lane.b32.xlu1 %v7391_v41, %s5250_s29 }
 0x5ec   : > { %4293 = vrot.lane.b32.xlu0 %v7304_v27, %s5250_s29 }
 0x5ef   : > { %4631 = vrot.lane.b32.xlu1 %v7354_v53, %s5251_s8 }
 0x5f0   : > { %4279 = vrot.lane.b32.xlu0 %v7316_v29, %s5250_s29 }
 0x5f3   : > { %4615 = vrot.lane.b32.xlu1 %v7365_v8, %s5251_s8 }
 0x5f4   : > { %4277 = vrot.lane.b32.xlu0 %v7327_v22, %s5250_s29 }
 0x5f7   : > { %3595 = vrot.lane.b32.xlu1 %v7386_v39, %s5247_s22 }
 0x5f8   : > { %4629 = vrot.lane.b32.xlu0 %v7263_v0, %s5251_s8 }
 0x5f9   : > { %v7471_v56 = vpop.permute.xlu1 %3587 }
 0x5fb   : > { %3579 = vrot.lane.b32.xlu1 %v7401_v33, %s5247_s22 }
 0x5fc   : > { %4627 = vrot.lane.b32.xlu0 %v7270_v42, %s5251_s8 }
 0x5fd   : > { %v7479_v25 = vpop.permute.xlu1 %3571 }
 0x5ff   : > { %3563 = vrot.lane.b32.xlu1 %v7411_v50, %s5247_s22 }
 0x600   : > { %4613 = vrot.lane.b32.xlu0 %v7278_v16, %s5251_s8 }
 0x601   : > { %v7487_v48 = vpop.permute.xlu1 %3555 }
 0x603   : > { %3547 = vrot.lane.b32.xlu1 %v7421_v63, %s5247_s22 }
 0x604   : > { %4611 = vrot.lane.b32.xlu0 %v7285_v37, %s5251_s8 }
 0x605   : > { %v7493_v46 = vpop.permute.xlu1 %3539 }
 0x607   : > { %4038 = vrot.lane.b32.xlu1 %v7386_v39, %s5248_s23 }
 0x608   : > { %4597 = vrot.lane.b32.xlu0 %v7295_v36, %s5251_s8 }
 0x609   : > { %v7501_v43 = vpop.permute.xlu1 %4030 }
 0x60a   : > { %8594 = vst [vmem:[#allocation18_spill] sm:$0xff] %v7501_v43  ;;  %v7503_v35 = vpop.permute.xlu0 %3583 }
 0x60b   : > { %4022 = vrot.lane.b32.xlu1 %v7401_v33, %s5248_s23 }
 0x60c   : > { %4595 = vrot.lane.b32.xlu0 %v7304_v27, %s5251_s8 }
 0x60d   : > { %v7509_v34 = vpop.permute.xlu1 %4014 }
 0x60e   : > { %8595 = vst [vmem:[#allocation22_spill] sm:$0xff] %v7509_v34  ;;  %v7511_v3 = vpop.permute.xlu0 %3581 }
 0x60f   : > { %4006 = vrot.lane.b32.xlu1 %v7411_v50, %s5248_s23 }
 0x610   : > { %4581 = vrot.lane.b32.xlu0 %v7316_v29, %s5251_s8 }
 0x611   : > { %v7517_v24 = vpop.permute.xlu1 %3998 }
 0x612   : > { %8596 = vst [vmem:[#allocation21_spill] sm:$0xff] %v7517_v24  ;;  %v7519_v1 = vpop.permute.xlu0 %3567  ;;  %v7548_v24 = vsel %vm8600_vm6, %v7431_v18, %v7333_v49  ;;  %vm3667_vm6 = vcmask 654336  }
 0x613   : > { %3990 = vrot.lane.b32.xlu1 %v7421_v63, %s5248_s23 }
 0x614   : > { %4579 = vrot.lane.b32.xlu0 %v7327_v22, %s5251_s8 }
 0x615   : > { %v7525_v11 = vpop.permute.xlu1 %3982 }
 0x616   : > { %8597 = vst [vmem:[#allocation17_spill] sm:$0xff] %v7525_v11  ;;  %v7527_v52 = vpop.permute.xlu0 %3565 }
 0x617   : > { %4339 = vrot.lane.b32.xlu1 %v7386_v39, %s5250_s29 }
 0x618   : > { %4573 = vrot.lane.b32.xlu0 %v7193_v31, %s5251_s8 }
 0x619   : > { %v7533_v5 = vpop.permute.xlu1 %4331 }
 0x61a   : > { %8598 = vst [vmem:[#allocation36_spill] sm:$0xff] %v7533_v5  ;;  %v7535_v60 = vpop.permute.xlu0 %3551 }
 0x61b   : > { %4323 = vrot.lane.b32.xlu1 %v7401_v33, %s5250_s29 }
 0x61c   : > { %4571 = vrot.lane.b32.xlu0 %v7155_v9, %s5251_s8 }
 0x61d   : > { %v7541_v40 = vpop.permute.xlu1 %4315 }
 0x61e   : > { %8599 = vst [vmem:[#allocation37_spill] sm:$0xff] %v7541_v40  ;;  %v7543_v11 = vpop.permute.xlu0 %3549  ;;  %v7561_v40 = vsel %vm8602_vm1, %v7405_v55, %v7431_v18 }
 0x61f   : > { %4307 = vrot.lane.b32.xlu1 %v7411_v50, %s5250_s29 }
 0x620   : > { %3591 = vrot.lane.b32.xlu0 %v7548_v24, %s5247_s22 }
 0x621   : > { %v7554_v5 = vpop.permute.xlu1 %4299 }
 0x622   : > { %8601 = vst [vmem:[#allocation38_spill] sm:$0xff] %v7554_v5  ;;  %v7556_v34 = vpop.permute.xlu0 %3535  ;;  %v7574_v5 = vsel %vm8604_vm4, %v7441_v44, %v7341_v15 }
 0x623   : > { %4291 = vrot.lane.b32.xlu1 %v7421_v63, %s5250_s29 }
 0x624   : > { %3589 = vrot.lane.b32.xlu0 %v7561_v40, %s5247_s22 }
 0x625   : > { %v7567_v43 = vpop.permute.xlu1 %4283 }
 0x626   : > { %8603 = vst [vmem:[#allocation39_spill] sm:$0xff] %v7567_v43  ;;  %v7569_v10 = vpop.permute.xlu0 %3533  ;;  %v7587_v43 = vsel %vm8607_vm15, %v7413_v28, %v7441_v44  ;;  %v7605_v28 = vsel %vm8611_vm2, %v7451_v14, %v7347_v57 }
 0x627   : > { %4641 = vrot.lane.b32.xlu1 %v7386_v39, %s5251_s8 }
 0x628   : > { %3575 = vrot.lane.b32.xlu0 %v7574_v5, %s5247_s22 }
 0x629   : > { %v7580_v55 = vpop.permute.xlu1 %4633 }
 0x62a   : > { %8605 = vst [vmem:[#allocation40_spill] sm:$0xff] %v7580_v55  ;;  %v7582_v18 = vpop.permute.xlu0 %4026  ;;  %v7600_v55 = vsel %vm8610_vm3, %v7333_v49, %v7386_v39  ;;  %v7618_v49 = vsel %vm8613_vm5, %v7341_v15, %v7401_v33  ;;  %v7636_v15 = vsel %vm8616_vm12, %v7347_v57, %v7411_v50  ;;  %v7654_v57 = vsel %vm8620_vm11, %v7360_v20, %v7421_v63 }
 0x62b   : > { %8606 = vst [vmem:[#allocation41_spill] sm:$0xff] %v7582_v18  ;;  %4625 = vrot.lane.b32.xlu1 %v7401_v33, %s5251_s8  ;;  %8621 = vst [vmem:[#allocation48_spill] sm:$0xff] %v7654_v57 }
 0x62c   : > { %3573 = vrot.lane.b32.xlu0 %v7587_v43, %s5247_s22 }
 0x62d   : > { %v7593_v9 = vpop.permute.xlu1 %4617 }
 0x62e   : > { %8608 = vst [vmem:[#allocation42_spill] sm:$0xff] %v7593_v9  ;;  %v7595_v31 = vpop.permute.xlu0 %4024 }
 0x62f   : > { %8609 = vst [vmem:[#allocation43_spill] sm:$0xff] %v7595_v31  ;;  %3593 = vrot.lane.b32.xlu1 %v7600_v55, %s5247_s22  ;;  %v7623_v31 = vsel %vm8614_vm9, %v7425_v17, %v7451_v14  ;;  %v7641_v17 = vsel %vm8617_vm8, %v7461_v19, %v7360_v20 }
 0x630   : > { %3559 = vrot.lane.b32.xlu0 %v7605_v28, %s5247_s22  ;;  %8618 = vst [vmem:[#allocation46_spill] sm:$0xff] %v7641_v17 }
 0x631   : > { %v7611_v44 = vpop.permute.xlu1 %3585 }
 0x632   : > { %v7613_v9 = vpop.permute.xlu0 %4010 }
 0x633   : > { %8612 = vst [vmem:[#allocation44_spill] sm:$0xff] %v7613_v9  ;;  %3577 = vrot.lane.b32.xlu1 %v7618_v49, %s5247_s22 }
 0x634   : > { %3557 = vrot.lane.b32.xlu0 %v7623_v31, %s5247_s22 }
 0x635   : > { %v7629_v18 = vpop.permute.xlu1 %3569 }
 0x636   : > { %v7631_v22 = vpop.permute.xlu0 %4008 }
 0x637   : > { %8615 = vst [vmem:[#allocation45_spill] sm:$0xff] %v7631_v22  ;;  %3561 = vrot.lane.b32.xlu1 %v7636_v15, %s5247_s22  ;;  %v7659_v22 = vsel %vm8622_vm14, %v7433_v12, %v7461_v19 }
 0x638   : > { %3543 = vrot.lane.b32.xlu0 %v7641_v17, %s5247_s22 }
 0x639   : > { %v7647_v14 = vpop.permute.xlu1 %3553 }
 0x63a   : > { %v7649_v9 = vpop.permute.xlu0 %3994 }
 0x63b   : > { %8619 = vst [vmem:[#allocation47_spill] sm:$0xff] %v7649_v9  ;;  %3545 = vrot.lane.b32.xlu1 %v7654_v57, %s5247_s22 }
 0x63c   : > { %3541 = vrot.lane.b32.xlu0 %v7659_v22, %s5247_s22 }
 0x63d   : > { %v7665_v29 = vpop.permute.xlu1 %3537 }
 0x63e   : > { %v7667_v27 = vpop.permute.xlu0 %3992 }
 0x63f   : > { %8623 = vst [vmem:[#allocation49_spill] sm:$0xff] %v7667_v27  ;;  %4609 = vrot.lane.b32.xlu1 %v7411_v50, %s5251_s8 }
 0x640   : > { %4034 = vrot.lane.b32.xlu0 %v7548_v24, %s5248_s23 }
 0x641   : > { %v7673_v20 = vpop.permute.xlu1 %4028 }
 0x642   : > { %8624 = vst [vmem:[#allocation50_spill] sm:$0xff] %v7673_v20  ;;  %v7675_v12 = vpop.permute.xlu0 %3978 }
 0x643   : > { %8625 = vst [vmem:[#allocation51_spill] sm:$0xff] %v7675_v12  ;;  %4599 = vrot.lane.b32.xlu1 %v7378_v23, %s5251_s8 }
 0x644   : > { %4032 = vrot.lane.b32.xlu0 %v7561_v40, %s5248_s23 }
 0x645   : > { %v7681_v19 = vpop.permute.xlu1 %4012 }
 0x646   : > { %8626 = vst [vmem:[#allocation52_spill] sm:$0xff] %v7681_v19  ;;  %v7683_v9 = vpop.permute.xlu0 %3976 }
 0x647   : > { %8627 = vst [vmem:[#allocation53_spill] sm:$0xff] %v7683_v9  ;;  %4601 = vrot.lane.b32.xlu1 %v7249_v61, %s5251_s8 }
 0x648   : > { %4018 = vrot.lane.b32.xlu0 %v7574_v5, %s5248_s23 }
 0x649   : > { %v7689_v27 = vpop.permute.xlu1 %3996 }
 0x64a   : > { %8628 = vst [vmem:[#allocation54_spill] sm:$0xff] %v7689_v27  ;;  %v7691_v20 = vpop.permute.xlu0 %4327 }
 0x64b   : > { %8629 = vst [vmem:[#allocation55_spill] sm:$0xff] %v7691_v20  ;;  %4593 = vrot.lane.b32.xlu1 %v7421_v63, %s5251_s8 }
 0x64c   : > { %4016 = vrot.lane.b32.xlu0 %v7587_v43, %s5248_s23 }
 0x64d   : > { %v7697_v12 = vpop.permute.xlu1 %3980 }
 0x64e   : > { %8630 = vst [vmem:[#allocation56_spill] sm:$0xff] %v7697_v12  ;;  %v7699_v19 = vpop.permute.xlu0 %4325 }
 0x64f   : > { %8631 = vst [vmem:[#allocation57_spill] sm:$0xff] %v7699_v19  ;;  %4583 = vrot.lane.b32.xlu1 %v7391_v41, %s5251_s8 }
 0x650   : > { %4002 = vrot.lane.b32.xlu0 %v7605_v28, %s5248_s23 }
 0x651   : > { %v7705_v9 = vpop.permute.xlu1 %4329 }
 0x652   : > { %8632 = vst [vmem:[#allocation58_spill] sm:$0xff] %v7705_v9  ;;  %v7707_v27 = vpop.permute.xlu0 %4311 }
 0x653   : > { %8633 = vst [vmem:[#allocation59_spill] sm:$0xff] %v7707_v27  ;;  %4585 = vrot.lane.b32.xlu1 %v7255_v4, %s5251_s8 }
 0x654   : > { %4000 = vrot.lane.b32.xlu0 %v7623_v31, %s5248_s23 }
 0x655   : > { %v7713_v20 = vpop.permute.xlu1 %4313 }
 0x656   : > { %8634 = vst [vmem:[#allocation60_spill] sm:$0xff] %v7713_v20  ;;  %v7715_v12 = vpop.permute.xlu0 %4309 }
 0x657   : > { %8635 = vst [vmem:[#allocation61_spill] sm:$0xff] %v7715_v12  ;;  %4036 = vrot.lane.b32.xlu1 %v7600_v55, %s5248_s23 }
 0x658   : > { %3986 = vrot.lane.b32.xlu0 %v7641_v17, %s5248_s23 }
 0x659   : > { %v7721_v19 = vpop.permute.xlu1 %4297 }
 0x65a   : > { %8636 = vst [vmem:[#allocation62_spill] sm:$0xff] %v7721_v19  ;;  %v4296_v27 = vpop.permute.xlu0 %4295 }
 0x65b   : > { %4020 = vrot.lane.b32.xlu1 %v7618_v49, %s5248_s23  ;;  %v7727_v9 = vsel %vm4341_vm0, %v4296_v27, %v7721_v19 }
 0x65c   : > { %8637 = vst [vmem:[#allocation63_spill] sm:$0xff] %v7727_v9  ;;  %3984 = vrot.lane.b32.xlu0 %v7659_v22, %s5248_s23 }
 0x65d   : > { %v7731_v12 = vpop.permute.xlu1 %4281 }
 0x65e   : > { %8638 = vst [vmem:[#allocation64_spill] sm:$0xff] %v7731_v12  ;;  %v4294_v20 = vpop.permute.xlu0 %4293 }
 0x65f   : > { %v7734_v41 = vsel %vm4341_vm0, %v4294_v20, %v4296_v27  ;;  %4004 = vrot.lane.b32.xlu1 %v7636_v15, %s5248_s23 }
 0x660   : > { %8639 = vst [vmem:[#allocation65_spill] sm:$0xff] %v7734_v41  ;;  %4335 = vrot.lane.b32.xlu0 %v7548_v24, %s5250_s29 }
 0x661   : > { %v7740_v4 = vpop.permute.xlu1 %4631 }
 0x662   : > { %8640 = vst [vmem:[#allocation66_spill] sm:$0xff] %v7740_v4  ;;  %v4280_v63 = vpop.permute.xlu0 %4279 }
 0x663   : > { %3988 = vrot.lane.b32.xlu1 %v7654_v57, %s5248_s23  ;;  %v7746_v9 = vsel %vm4341_vm0, %v4280_v63, %v7731_v12 }
 0x664   : > { %8641 = vst [vmem:[#allocation67_spill] sm:$0xff] %v7746_v9  ;;  %4333 = vrot.lane.b32.xlu0 %v7561_v40, %s5250_s29 }
 0x665   : > { %v7750_v27 = vpop.permute.xlu1 %4615 }
 0x666   : > { %8642 = vst [vmem:[#allocation68_spill] sm:$0xff] %v7750_v27  ;;  %v4278_v20 = vpop.permute.xlu0 %4277 }
 0x667   : > { %v7753_v41 = vsel %vm4341_vm0, %v4278_v20, %v4280_v63  ;;  %4575 = vrot.lane.b32.xlu1 %v7163_v54, %s5251_s8 }
 0x668   : > { %8643 = vst [vmem:[#allocation69_spill] sm:$0xff] %v7753_v41  ;;  %4319 = vrot.lane.b32.xlu0 %v7574_v5, %s5250_s29 }
 0x669   : > { %v7759_v19 = vpop.permute.xlu1 %3595 }
 0x66a   : > { %v4630_v12 = vpop.permute.xlu0 %4629  ;;  %3754 = vmatprep.subr.mxu0 %v7759_v19 }
 0x66b   : > { %4337 = vrot.lane.b32.xlu1 %v7600_v55, %s5250_s29  ;;  %v7766_v9 = vsel %vm4643_vm7, %v4630_v12, %v7740_v4 }
 0x66c   : > { %8644 = vst [vmem:[#allocation70_spill] sm:$0xff] %v7766_v9  ;;  %4317 = vrot.lane.b32.xlu0 %v7587_v43, %s5250_s29 }
 0x66d   : > { %v7770_v63 = vpop.permute.xlu1 %3579 }
 0x66e   : > { %v4628_v20 = vpop.permute.xlu0 %4627 }
 0x66f   : > { %v7773_v41 = vsel %vm4643_vm7, %v4628_v20, %v4630_v12  ;;  %4321 = vrot.lane.b32.xlu1 %v7618_v49, %s5250_s29 }
 0x670   : > { %8645 = vst [vmem:[#allocation71_spill] sm:$0xff] %v7773_v41  ;;  %4303 = vrot.lane.b32.xlu0 %v7605_v28, %s5250_s29 }
 0x671   : > { %v7779_v54 = vpop.permute.xlu1 %3563 }
 0x672   : > { %v4614_v23 = vpop.permute.xlu0 %4613 }
 0x673   : > { %4305 = vrot.lane.b32.xlu1 %v7636_v15, %s5250_s29  ;;  %v7785_v9 = vsel %vm4643_vm7, %v4614_v23, %v7750_v27 }
 0x674   : > { %8646 = vst [vmem:[#allocation72_spill] sm:$0xff] %v7785_v9  ;;  %4301 = vrot.lane.b32.xlu0 %v7623_v31, %s5250_s29 }
 0x675   : > { %v7789_v12 = vpop.permute.xlu1 %3547 }
 0x676   : > { %v4612_v20 = vpop.permute.xlu0 %4611 }
 0x677   : > { %v7792_v41 = vsel %vm4643_vm7, %v4612_v20, %v4614_v23  ;;  %4289 = vrot.lane.b32.xlu1 %v7654_v57, %s5250_s29 }
 0x678   : > { %8647 = vst [vmem:[#allocation73_spill] sm:$0xff] %v7792_v41  ;;  %4287 = vrot.lane.b32.xlu0 %v7641_v17, %s5250_s29 }
 0x679   : > { %v7798_v4 = vpop.permute.xlu1 %4038 }
 0x67a   : > { %8648 = vst [vmem:[#allocation74_spill] sm:$0xff] %v7798_v4  ;;  %v7800_v36 = vpop.permute.xlu0 %4597 }
 0x67b   : > { %4577 = vrot.lane.b32.xlu1 %v7173_v45, %s5251_s8 }
 0x67c   : > { %4285 = vrot.lane.b32.xlu0 %v7659_v22, %s5250_s29 }
 0x67d   : > { %v7806_v9 = vpop.permute.xlu1 %4022 }
 0x67e   : > { %8649 = vst [vmem:[#allocation75_spill] sm:$0xff] %v7806_v9  ;;  %v4596_v23 = vpop.permute.xlu0 %4595 }
 0x67f   : > { %v7810_v20 = vsel %vm4643_vm7, %v4596_v23, %v7800_v36  ;;  %4639 = vrot.lane.b32.xlu1 %v7600_v55, %s5251_s8 }
 0x680   : > { %8650 = vst [vmem:[#allocation76_spill] sm:$0xff] %v7810_v20  ;;  %4637 = vrot.lane.b32.xlu0 %v7548_v24, %s5251_s8 }
 0x681   : > { %v7816_v41 = vpop.permute.xlu1 %4006 }
 0x682   : > { %8651 = vst [vmem:[#allocation77_spill] sm:$0xff] %v7816_v41  ;;  %v7818_v27 = vpop.permute.xlu0 %4581 }
 0x683   : > { %8652 = vst [vmem:[#allocation78_spill] sm:$0xff] %v7818_v27  ;;  %4623 = vrot.lane.b32.xlu1 %v7618_v49, %s5251_s8 }
 0x684   : > { %4635 = vrot.lane.b32.xlu0 %v7561_v40, %s5251_s8 }
 0x685   : > { %v7824_v9 = vpop.permute.xlu1 %3990 }
 0x686   : > { %8653 = vst [vmem:[#allocation79_spill] sm:$0xff] %v7824_v9  ;;  %v4580_v23 = vpop.permute.xlu0 %4579 }
 0x687   : > { %v7828_v20 = vsel %vm4643_vm7, %v4580_v23, %v7818_v27  ;;  %4607 = vrot.lane.b32.xlu1 %v7636_v15, %s5251_s8 }
 0x688   : > { %8654 = vst [vmem:[#allocation80_spill] sm:$0xff] %v7828_v20  ;;  %4621 = vrot.lane.b32.xlu0 %v7574_v5, %s5251_s8 }
 0x689   : > { %v7834_v41 = vpop.permute.xlu1 %4339 }
 0x68a   : > { %8655 = vst [vmem:[#allocation81_spill] sm:$0xff] %v7834_v41  ;;  %v7836_v4 = vpop.permute.xlu0 %4573 }
 0x68b   : > { %8656 = vst [vmem:[#allocation82_spill] sm:$0xff] %v7836_v4  ;;  %4591 = vrot.lane.b32.xlu1 %v7654_v57, %s5251_s8 }
 0x68c   : > { %4619 = vrot.lane.b32.xlu0 %v7587_v43, %s5251_s8 }
 0x68d   : > { %v7842_v9 = vpop.permute.xlu1 %4323 }
 0x68e   : > { %8657 = vst [vmem:[#allocation83_spill] sm:$0xff] %v7842_v9  ;;  %v7844_v23 = vpop.permute.xlu0 %4571 }
 0x68f   : > { %8658 = vst [vmem:[#allocation84_spill] sm:$0xff] %v7844_v23  ;;  %4567 = vrot.lane.b32.xlu1 %v7087_v32, %s5251_s8 }
 0x690   : > { %4605 = vrot.lane.b32.xlu0 %v7605_v28, %s5251_s8 }
 0x691   : > { %v7850_v20 = vpop.permute.xlu1 %4307 }
 0x692   : > { %8659 = vst [vmem:[#allocation85_spill] sm:$0xff] %v7850_v20  ;;  %v3592_v41 = vpop.permute.xlu0 %3591 }
 0x693   : > { %4569 = vrot.lane.b32.xlu1 %v7098_v6, %s5251_s8 }
 0x694   : > { %4603 = vrot.lane.b32.xlu0 %v7623_v31, %s5251_s8 }
 0x695   : > { %v7856_v4 = vpop.permute.xlu1 %4291 }
 0x696   : > { %8660 = vst [vmem:[#allocation86_spill] sm:$0xff] %v7856_v4  ;;  %v3590_v9 = vpop.permute.xlu0 %3589 }
 0x698   : > { %4589 = vrot.lane.b32.xlu0 %v7641_v17, %s5251_s8  ;;  %v3624_v17 = vsel %vm2575_vm13, %v3590_v9, %v3592_v41 }
 0x699   : > { %v7860_v23 = vpop.permute.xlu1 %4641 }
 0x69a   : > { %8661 = vst [vmem:[#allocation87_spill] sm:$0xff] %v7860_v23  ;;  %v3576_v32 = vpop.permute.xlu0 %3575  ;;  %v3621_v23 = vsel %vm2575_vm13, %v7511_v3, %v7503_v35 }
 0x69c   : > { %4587 = vrot.lane.b32.xlu0 %v7659_v22, %s5251_s8 }
 0x69d   : > { %v7864_v20 = vpop.permute.xlu1 %4625 }
 0x69e   : > { %8662 = vst [vmem:[#allocation88_spill] sm:$0xff] %v7864_v20  ;;  %v3574_v45 = vpop.permute.xlu0 %3573  ;;  %v3622_v20 = vsel %vm2575_vm13, %v7503_v35, %v7611_v44 }
 0x69f   : > { %v3618_v35 = vsel %vm2575_vm13, %v3574_v45, %v3576_v32 }
 0x6a0   : > { %4565 = vrot.lane.b32.xlu0 %v7117_v2, %s5251_s8 }
 0x6a1   : > { %v3594_v6 = vpop.permute.xlu1 %3593 }
 0x6a2   : > { %v3626_v4 = vsel %vm2575_vm13, %v3594_v6, %v7759_v19  ;;  %v3560_v57 = vpop.permute.xlu0 %3559  ;;  %v3625_v27 = vsel %vm2575_vm13, %v3592_v41, %v3594_v6  ;;  %v3623_v6 = vsel %vm2575_vm13, %v7611_v44, %v7471_v56  ;;  %v3617_v44 = vsel %vm2575_vm13, %v7629_v18, %v7479_v25 }
 0x6a3   : > { %3683 = vmatprep.subr.mxu1 %v3625_v27  ;;  %3755 = vmatpush1.msra.mxu0 %v3626_v4  ;;  %v4863_v4 = vld [vmem:[%s8299_s6] sm:$0xff]  ;;  %v3615_v27 = vsel %vm2575_vm13, %v7527_v52, %v7519_v1 }
 0x6a4   : > { %4563 = vrot.lane.b32.xlu0 %v7079_v38, %s5251_s8  ;;  %3684 = vmatpush1.msra.mxu1 %v3624_v17 }
 0x6a5   : > { %3756 = vmatprep.subr.mxu0 %v7471_v56  ;;  %3685 = vmatprep.subr.mxu1 %v3622_v20  ;;  %v3578_v9 = vpop.permute.xlu1 %3577  ;;  %v3616_v56 = vsel %vm2575_vm13, %v7519_v1, %v7629_v18  ;;  %v3611_v1 = vsel %vm2575_vm13, %v7647_v14, %v7487_v48 }
 0x6a6   : > { %3757 = vmatpush1.msra.mxu0 %v3623_v6  ;;  %v3620_v41 = vsel %vm2575_vm13, %v3578_v9, %v7770_v63  ;;  %v3558_v17 = vpop.permute.xlu0 %3557  ;;  %3686 = vmatpush1.msra.mxu1 %v3621_v23  ;;  %v3619_v3 = vsel %vm2575_vm13, %v3576_v32, %v3578_v9  ;;  %v3601_v9 = vsel %vm2575_vm13, %v7473_v7, %v7373_v47 }
 0x6a7   : > { %3758 = vmatprep.subr.mxu0 %v7770_v63  ;;  %3687 = vmatprep.subr.mxu1 %v3619_v3  ;;  %v3612_v20 = vsel %vm2575_vm13, %v3558_v17, %v3560_v57  ;;  %v8679_v17 = vld [vmem:[#allocation14_spill] sm:$0xff]  ;;  %v8680_v3 = vmov 0.0  }
 0x6a8   : > { %3759 = vmatpush1.msra.mxu0 %v3620_v41  ;;  %4866 = vperm.xlu0 %5205, %v4863_v4   ;;  %v3514_v41 = vld [vmem:[%s8298_s5] sm:$0xff] }
 0x6a9   : > { %3688 = vmatpush1.msra.mxu1 %v3618_v35  ;;  %3760 = vmatprep.subr.mxu0 %v7479_v25  ;;  %v3562_v19 = vpop.permute.xlu1 %3561  ;;  %v3610_v25 = vsel %vm2575_vm13, %v7535_v60, %v7647_v14  ;;  %v3603_v14 = vsel %vm2575_vm13, %v7569_v10, %v7556_v34  ;;  %v3600_v10 = vsel %vm2575_vm13, %v7337_v59, %v7473_v7  ;;  %v8681_v35 = vld [vmem:[#allocation74_spill] sm:$0xff] }
 0x6aa   : > { %3689 = vmatprep.subr.mxu1 %v3616_v56  ;;  %3761 = vmatpush1.msra.mxu0 %v3617_v44  ;;  %v3614_v32 = vsel %vm2575_vm13, %v3562_v19, %v7779_v54  ;;  %v3544_v45 = vpop.permute.xlu0 %3543  ;;  %v3613_v63 = vsel %vm2575_vm13, %v3560_v57, %v3562_v19 }
 0x6ab   : > { %3690 = vmatpush1.msra.mxu1 %v3615_v27  ;;  %3762 = vmatprep.subr.mxu0 %v7779_v54  ;;  %v3609_v54 = vsel %vm2575_vm13, %v7543_v11, %v7535_v60  ;;  %v3604_v11 = vsel %vm2575_vm13, %v7556_v34, %v7665_v29  ;;  %v3598_v34 = vsel %vm2575_vm13, %v7291_v21, %v7247_v26 }
 0x6ac   : > { %3691 = vmatprep.subr.mxu1 %v3613_v63  ;;  %3763 = vmatpush1.msra.mxu0 %v3614_v32  ;;  %v8683_v32 = vld [vmem:[#allocation41_spill] sm:$0xff]  ;;  %v8684_v63 = vld [vmem:[#allocation18_spill] sm:$0xff] }
 0x6ad   : > { %3692 = vmatpush1.msra.mxu1 %v3612_v20  ;;  %3764 = vmatprep.subr.mxu0 %v7487_v48  ;;  %v3546_v52 = vpop.permute.xlu1 %3545  ;;  %v3605_v48 = vsel %vm2575_vm13, %v7665_v29, %v7493_v46  ;;  %v3599_v29 = vsel %vm2575_vm13, %v7247_v26, %v7301_v58 }
 0x6ae   : > { %3693 = vmatprep.subr.mxu1 %v3610_v25  ;;  %3765 = vmatpush1.msra.mxu0 %v3611_v1  ;;  %v3608_v18 = vsel %vm2575_vm13, %v3546_v52, %v7789_v12  ;;  %v3542_v57 = vpop.permute.xlu0 %3541  ;;  %v3607_v23 = vsel %vm2575_vm13, %v3544_v45, %v3546_v52  ;;  %v8685_v25 = vld [vmem:[#allocation75_spill] sm:$0xff] }
 0x6af   : > { %v3606_v6 = vsel %vm2575_vm13, %v3542_v57, %v3544_v45  ;;  %3694 = vmatpush1.msra.mxu1 %v3609_v54  ;;  %3766 = vmatprep.subr.mxu0 %v7789_v12  ;;  %v8686_v54 = vld [vmem:[#allocation43_spill] sm:$0xff] }
 0x6b0   : > { %3695 = vmatprep.subr.mxu1 %v3607_v23  ;;  %3767 = vmatpush1.msra.mxu0 %v3608_v18  ;;  %v4064_v18 = vsel %vm3074_vm10, %v8686_v54, %v8683_v32 }
 0x6b1   : > { %3696 = vmatpush1.msra.mxu1 %v3606_v6  ;;  %3768 = vmatprep.subr.mxu0 %v7493_v46  ;;  %v7929_v60 = vpop.permute.xlu1 %4609  ;;  %v3602_v46 = vsel %vm2575_vm13, %v7373_v47, %v7445_v30  ;;  %v5015_v47 = vld [vmem:[%s8298_s5 + $0x8] sm:$0xff]  ;;  %v8687_v6 = vld [vmem:[#allocation22_spill] sm:$0xff] }
 0x6b2   : > { %3697 = vmatprep.subr.mxu1 %v3604_v11  ;;  %3769 = vmatpush1.msra.mxu0 %v3605_v48  ;;  %v7934_v12 = vpop.permute.xlu0 %4034  ;;  %v8688_v11 = vld [vmem:[#allocation52_spill] sm:$0xff] }
 0x6b3   : > { %3698 = vmatpush1.msra.mxu1 %v3603_v14  ;;  %3770 = vmatprep.subr.mxu0 %v7445_v30  ;;  %v3597_v30 = vsel %vm2575_vm13, %v7225_v13, %v7291_v21  ;;  %v4060_v48 = vsel %vm3074_vm10, %v8688_v11, %v8687_v6  ;;  %vm4876_vm13 = vcmask 130048  }
 0x6b4   : > { %3699 = vmatprep.subr.mxu1 %v3601_v9  ;;  %3771 = vmatpush1.msra.mxu0 %v3602_v46  ;;  %v8690_v46 = vld [vmem:[#allocation77_spill] sm:$0xff] }
 0x6b5   : > { %3700 = vmatpush1.msra.mxu1 %v3600_v10  ;;  %3772 = vmatprep.subr.mxu0 %v7301_v58  ;;  %v7953_v4 = vpop.permute.xlu1 %4599  ;;  %v8666_v58 = vld [vmem:[#allocation4_spill] sm:$0xff] }
 0x6b6   : > { %3701 = vmatprep.subr.mxu1 %v3598_v34  ;;  %3773 = vmatpush1.msra.mxu0 %v3599_v29  ;;  %v7958_v59 = vpop.permute.xlu0 %4032  ;;  %v7966_v7 = vsel %vm4643_vm7, %v7800_v36, %v7953_v4  ;;  %v8665_v36 = vld [vmem:[#allocation24_spill] sm:$0xff]  ;;  %v8691_v29 = vld [vmem:[#allocation45_spill] sm:$0xff] }
 0x6b7   : > { %3702 = vmatpush1.msra.mxu1 %v3597_v30  ;;  %3899 = vmatprep.subr.mxu0 %v7386_v39  ;;  %v8671_v39 = vld [vmem:[#allocation35_spill] sm:$0xff]  ;;  %v4067_v27 = vsel %vm3074_vm10, %v7958_v59, %v7934_v12 }
 0x6b8   : > { %5017 = vmatmul.mubr.msk.f32.vlgmr.msra.gmra.mxu0 %vm3667_vm6, %v5015_v47  ;;  %3828 = vmatprep.subr.mxu1 %v7548_v24  ;;  %v8667_v24 = vld [vmem:[#allocation26_spill] sm:$0xff] }
 0x6b9   : > { %3900 = vmatpush1.msra.mxu0 %v7600_v55  ;;  %5016 = vmatmul.mubr.msk.f32.vlgmr.msra.gmra.mxu1 %vm3667_vm6, %v5015_v47  ;;  %v7973_v26 = vpop.permute.xlu1 %4601  ;;  %v8676_v55 = vld [vmem:[#allocation13_spill] sm:$0xff] }
 0x6ba   : > { %3829 = vmatpush1.msra.mxu1 %v7561_v40  ;;  %3901 = vmatprep.subr.mxu0 %v7237_v62  ;;  %v7977_v13 = vpop.permute.xlu0 %4018  ;;  %v8675_v40 = vld [vmem:[#allocation11_spill] sm:$0xff] }
 0x6bb   : > { %3830 = vmatprep.subr.mxu1 %v7263_v0  ;;  %3902 = vmatpush1.msra.mxu0 %v7354_v53  ;;  %v8670_v53 = vld [vmem:[#allocation6_spill] sm:$0xff] }
 0x6bc   : > { %3831 = vmatpush1.msra.mxu1 %v7270_v42  ;;  %3903 = vmatprep.subr.mxu0 %v7401_v33  ;;  %v8663_v42 = vld [vmem:[#allocation78_spill] sm:$0xff]  ;;  %v8673_v33 = vld [vmem:[#allocation33_spill] sm:$0xff] }
 0x6bd   : > { %3832 = vmatprep.subr.mxu1 %v7574_v5  ;;  %3904 = vmatpush1.msra.mxu0 %v7618_v49  ;;  %v7985_v21 = vpop.permute.xlu1 %4593  ;;  %v8668_v5 = vld [vmem:[#allocation46_spill] sm:$0xff]  ;;  %v8677_v49 = vld [vmem:[#allocation15_spill] sm:$0xff] }
 0x6be   : > { %3833 = vmatpush1.msra.mxu1 %v7587_v43  ;;  %3905 = vmatprep.subr.mxu0 %v7243_v51  ;;  %v7989_v62 = vpop.permute.xlu0 %4016  ;;  %v8672_v43 = vld [vmem:[#allocation30_spill] sm:$0xff] }
 0x6bf   : > { %3834 = vmatprep.subr.mxu1 %v7278_v16  ;;  %3906 = vmatpush1.msra.mxu0 %v7365_v8  ;;  %v4061_v14 = vsel %vm3074_vm10, %v7989_v62, %v7977_v13  ;;  %v8693_v62 = vld [vmem:[#allocation54_spill] sm:$0xff] }
 0x6c0   : > { %3835 = vmatpush1.msra.mxu1 %v7285_v37  ;;  %3907 = vmatprep.subr.mxu0 %v7411_v50  ;;  %v8664_v37 = vld [vmem:[#allocation5_spill] sm:$0xff]  ;;  %v8674_v50 = vld [vmem:[#allocation12_spill] sm:$0xff] }
 0x6c1   : > { %3836 = vmatprep.subr.mxu1 %v7605_v28  ;;  %3908 = vmatpush1.msra.mxu0 %v7636_v15  ;;  %v7997_v0 = vpop.permute.xlu1 %4583  ;;  %v8678_v15 = vld [vmem:[#allocation16_spill] sm:$0xff] }
 0x6c2   : > { %3837 = vmatpush1.msra.mxu1 %v7623_v31  ;;  %3909 = vmatprep.subr.mxu0 %v7249_v61  ;;  %v8001_v51 = vpop.permute.xlu0 %4002  ;;  %v8006_v16 = vsel %vm4643_vm7, %v8663_v42, %v7997_v0  ;;  %v8669_v31 = vld [vmem:[#allocation48_spill] sm:$0xff] }
 0x6c3   : > { %3838 = vmatprep.subr.mxu1 %v8664_v37  ;;  %3910 = vmatpush1.msra.mxu0 %v8665_v36  ;;  %v8694_v36 = vld [vmem:[#allocation47_spill] sm:$0xff] }
 0x6c4   : > { %3839 = vmatpush1.msra.mxu1 %v8666_v58  ;;  %3911 = vmatprep.subr.mxu0 %v8667_v24  ;;  %v4053_v58 = vsel %vm3074_vm10, %v8694_v36, %v8693_v62  ;;  %v8695_v24 = vld [vmem:[#allocation79_spill] sm:$0xff] }
 0x6c5   : > { %3840 = vmatprep.subr.mxu1 %v8668_v5  ;;  %3912 = vmatpush1.msra.mxu0 %v8669_v31  ;;  %v8014_v61 = vpop.permute.xlu1 %4585 }
 0x6c6   : > { %3841 = vmatpush1.msra.mxu1 %v7659_v22  ;;  %3913 = vmatprep.subr.mxu0 %v8670_v53  ;;  %v4001_v8 = vpop.permute.xlu0 %4000  ;;  %v8696_v53 = vld [vmem:[#allocation49_spill] sm:$0xff] }
 0x6c7   : > { %3842 = vmatprep.subr.mxu1 %v8671_v39  ;;  %3914 = vmatpush1.msra.mxu0 %v8672_v43  ;;  %v4055_v37 = vsel %vm3074_vm10, %v4001_v8, %v8001_v51  ;;  %v4052_v39 = vsel %vm3074_vm10, %v8696_v53, %v8694_v36 }
 0x6c8   : > { %3843 = vmatpush1.msra.mxu1 %v8673_v33  ;;  %3915 = vmatprep.subr.mxu0 %v8674_v50  ;;  %v8697_v33 = vld [vmem:[#allocation17_spill] sm:$0xff]  ;;  %v8698_v50 = vld [vmem:[#allocation56_spill] sm:$0xff] }
 0x6c9   : > { %3844 = vmatprep.subr.mxu1 %v8675_v40  ;;  %3916 = vmatpush1.msra.mxu0 %v8676_v55  ;;  %v4037_v28 = vpop.permute.xlu1 %4036  ;;  %v4048_v40 = vsel %vm3074_vm10, %v8698_v50, %v8697_v33  ;;  %v8699_v55 = vld [vmem:[#allocation51_spill] sm:$0xff] }
 0x6ca   : > { %3845 = vmatpush1.msra.mxu1 %v8677_v49  ;;  %3917 = vmatprep.subr.mxu0 %v8678_v15  ;;  %v8026_v22 = vpop.permute.xlu0 %3986  ;;  %v4069_v56 = vsel %vm3074_vm10, %v4037_v28, %v8681_v35  ;;  %v4068_v44 = vsel %vm3074_vm10, %v7934_v12, %v4037_v28  ;;  %v8689_v12 = vld [vmem:[#allocation44_spill] sm:$0xff]  ;;  %v4047_v28 = vsel %vm3074_vm10, %v8699_v55, %v8698_v50  ;;  %v8700_v49 = vld [vmem:[#allocation53_spill] sm:$0xff] }
 0x6cb   : > { %3846 = vmatprep.subr.mxu1 %v7117_v2  ;;  %3918 = vmatpush1.msra.mxu0 %v8679_v17  ;;  %v4059_v9 = vsel %vm3074_vm10, %v8689_v12, %v8688_v11  ;;  %v4058_v47 = vsel %vm3074_vm10, %v8691_v29, %v8689_v12  ;;  %v4046_v15 = vsel %vm3074_vm10, %v8700_v49, %v8699_v55  ;;  %v8702_v17 = vld [vmem:[#allocation34_spill] sm:$0xff]  ;;  %v8713_v29 = vld [vmem:[#allocation83_spill] sm:$0xff] }
 0x6cc   : > { %3951 = vmatprep.mubr.f32.mxu0 %v8680_v3  ;;  %3847 = vmatpush1.msra.mxu1 %v7079_v38  ;;  %v8682_v38 = vld [vmem:[#allocation50_spill] sm:$0xff] }
 0x6cd   : > { %3880 = vmatprep.mubr.f32.mxu1 %v8680_v3  ;;  %5019 = vmatmul.mubr.msk.f32.vlgmr.msra.gmra.mxu0 %vm3667_vm6, %v3514_v41  ;;  %v4021_v19 = vpop.permute.xlu1 %4020  ;;  %v4065_v45 = vsel %vm3074_vm10, %v8683_v32, %v8682_v38  ;;  %v4066_v20 = vsel %vm3074_vm10, %v8682_v38, %v8684_v63  ;;  %v8705_v38 = vld [vmem:[#allocation2_spill] sm:$0xff]  ;;  %v8706_v32 = vld [vmem:[#allocation8_spill] sm:$0xff] }
 0x6ce   : > { %4196 = vmatprep.subr.mxu0 %v8681_v35  ;;  %5018 = vmatmul.mubr.msk.f32.vlgmr.msra.gmra.mxu1 %vm3667_vm6, %v3514_v41  ;;  %v3985_v2 = vpop.permute.xlu0 %3984  ;;  %v4063_v1 = vsel %vm3074_vm10, %v4021_v19, %v8685_v25  ;;  %v4062_v52 = vsel %vm3074_vm10, %v7977_v13, %v4021_v19  ;;  %v8692_v13 = vld [vmem:[#allocation21_spill] sm:$0xff]  ;;  %v8701_v41 = vld [vmem:[#allocation27_spill] sm:$0xff]  ;;  %v8720_v55 = vld [vmem:[#allocation38_spill] sm:$0xff] }
 0x6cf   : > { %4125 = vmatprep.subr.mxu1 %v4068_v44  ;;  %4197 = vmatpush1.msra.mxu0 %v4069_v56  ;;  %v4054_v42 = vsel %vm3074_vm10, %v8693_v62, %v8692_v13  ;;  %v4049_v43 = vsel %vm3074_vm10, %v3985_v2, %v8026_v22  ;;  %v8703_v35 = vld [vmem:[#allocation19_spill] sm:$0xff]  ;;  %v4045_v44 = vsel %vm3074_vm10, %v8702_v17, %v8701_v41  ;;  %v8704_v2 = vld [vmem:[#allocation25_spill] sm:$0xff] }
 0x6d0   : > { %4126 = vmatpush1.msra.mxu1 %v4067_v27  ;;  %4198 = vmatprep.subr.mxu0 %v8684_v63  ;;  %v4044_v56 = vsel %vm3074_vm10, %v8703_v35, %v8702_v17  ;;  %v4043_v27 = vsel %vm3074_vm10, %v8704_v2, %v8703_v35  ;;  %v8714_v62 = vld [vmem:[#allocation57_spill] sm:$0xff]  ;;  %v8723_v35 = vld [vmem:[#allocation63_spill] sm:$0xff] }
 0x6d1   : > { %4127 = vmatprep.subr.mxu1 %v4065_v45  ;;  %4199 = vmatpush1.msra.mxu0 %v4066_v20  ;;  %v4005_v57 = vpop.permute.xlu1 %4004  ;;  %v8707_v45 = vld [vmem:[#allocation3_spill] sm:$0xff]  ;;  %v4042_v20 = vsel %vm3074_vm10, %v8706_v32, %v8705_v38 }
 0x6d2   : > { %4128 = vmatpush1.msra.mxu1 %v4064_v18  ;;  %4200 = vmatprep.subr.mxu0 %v8685_v25  ;;  %v8061_v23 = vpop.permute.xlu0 %4335  ;;  %v4057_v10 = vsel %vm3074_vm10, %v4005_v57, %v8690_v46  ;;  %v4056_v34 = vsel %vm3074_vm10, %v8001_v51, %v4005_v57  ;;  %v4041_v63 = vsel %vm3074_vm10, %v8707_v45, %v8706_v32  ;;  %v5020_v25 = vld [vmem:[%s8298_s5 + $0x10] sm:$0xff]  ;;  %v8709_v18 = vld [vmem:[#allocation81_spill] sm:$0xff]  ;;  %v8725_v2 = vld [vmem:[#allocation39_spill] sm:$0xff] }
 0x6d3   : > { %4129 = vmatprep.subr.mxu1 %v4062_v52  ;;  %4201 = vmatpush1.msra.mxu0 %v4063_v1  ;;  %v8708_v1 = vld [vmem:[#allocation10_spill] sm:$0xff] }
 0x6d4   : > { %4130 = vmatpush1.msra.mxu1 %v4061_v14  ;;  %4202 = vmatprep.subr.mxu0 %v8687_v6  ;;  %v4040_v52 = vsel %vm3074_vm10, %v8708_v1, %v8707_v45  ;;  %v8711_v14 = vld [vmem:[#allocation58_spill] sm:$0xff]  ;;  %v8727_v45 = vld [vmem:[#allocation67_spill] sm:$0xff]  ;;  %v8730_v1 = vld [vmem:[#allocation69_spill] sm:$0xff] }
 0x6d5   : > { %4131 = vmatprep.subr.mxu1 %v4059_v9  ;;  %4203 = vmatpush1.msra.mxu0 %v4060_v48  ;;  %v3989_v59 = vpop.permute.xlu1 %3988  ;;  %v8710_v48 = vld [vmem:[#allocation36_spill] sm:$0xff] }
 0x6d6   : > { %4132 = vmatpush1.msra.mxu1 %v4058_v47  ;;  %4204 = vmatprep.subr.mxu0 %v8690_v46  ;;  %v4334_v30 = vpop.permute.xlu0 %4333  ;;  %v4051_v5 = vsel %vm3074_vm10, %v3989_v59, %v8695_v24  ;;  %v4050_v31 = vsel %vm3074_vm10, %v8026_v22, %v3989_v59  ;;  %v4368_v12 = vsel %vm4341_vm0, %v8711_v14, %v8710_v48 }
 0x6d7   : > { %4133 = vmatprep.subr.mxu1 %v4056_v34  ;;  %4205 = vmatpush1.msra.mxu0 %v4057_v10  ;;  %v4369_v9 = vsel %vm4341_vm0, %v4334_v30, %v8061_v23  ;;  %v8712_v10 = vld [vmem:[#allocation55_spill] sm:$0xff]  ;;  %v8715_v30 = vld [vmem:[#allocation37_spill] sm:$0xff] }
 0x6d8   : > { %4134 = vmatpush1.msra.mxu1 %v4055_v37  ;;  %4206 = vmatprep.subr.mxu0 %v8692_v13  ;;  %v4367_v34 = vsel %vm4341_vm0, %v8712_v10, %v8711_v14  ;;  %v8734_v14 = vld [vmem:[#allocation87_spill] sm:$0xff] }
 0x6d9   : > { %4135 = vmatprep.subr.mxu1 %v4053_v58  ;;  %4207 = vmatpush1.msra.mxu0 %v4054_v42  ;;  %v8097_v51 = vpop.permute.xlu1 %4575  ;;  %v8716_v42 = vld [vmem:[#allocation60_spill] sm:$0xff] }
 0x6da   : > { %4136 = vmatpush1.msra.mxu1 %v4052_v39  ;;  %4208 = vmatprep.subr.mxu0 %v8695_v24  ;;  %v4320_v8 = vpop.permute.xlu0 %4319  ;;  %v4362_v37 = vsel %vm4341_vm0, %v8716_v42, %v8715_v30  ;;  %v8717_v24 = vld [vmem:[#allocation59_spill] sm:$0xff] }
 0x6db   : > { %4137 = vmatprep.subr.mxu1 %v4050_v31  ;;  %4209 = vmatpush1.msra.mxu0 %v4051_v5  ;;  %v4361_v5 = vsel %vm4341_vm0, %v8717_v24, %v8716_v42  ;;  %v8718_v31 = vld [vmem:[#allocation85_spill] sm:$0xff]  ;;  %v8740_v42 = vld [vmem:[#allocation88_spill] sm:$0xff] }
 0x6dc   : > { %4138 = vmatpush1.msra.mxu1 %v4049_v43  ;;  %4210 = vmatprep.subr.mxu0 %v8697_v33  ;;  %v8719_v33 = vld [vmem:[#allocation61_spill] sm:$0xff] }
 0x6dd   : > { %4139 = vmatprep.subr.mxu1 %v4047_v28  ;;  %4211 = vmatpush1.msra.mxu0 %v4048_v40  ;;  %v4338_v22 = vpop.permute.xlu1 %4337  ;;  %v8721_v28 = vld [vmem:[#allocation62_spill] sm:$0xff] }
 0x6de   : > { %4140 = vmatpush1.msra.mxu1 %v4046_v15  ;;  %4212 = vmatprep.subr.mxu0 %v8701_v41  ;;  %v4318_v19 = vpop.permute.xlu0 %4317  ;;  %v4371_v57 = vsel %vm4341_vm0, %v4338_v22, %v8709_v18  ;;  %v4370_v6 = vsel %vm4341_vm0, %v8061_v23, %v4338_v22  ;;  %v4366_v23 = vsel %vm4341_vm0, %v8714_v62, %v8712_v10  ;;  %v8722_v15 = vld [vmem:[#allocation86_spill] sm:$0xff]  ;;  %v8738_v62 = vld [vmem:[#allocation40_spill] sm:$0xff] }
 0x6df   : > { %4141 = vmatprep.subr.mxu1 %v4044_v56  ;;  %4213 = vmatpush1.msra.mxu0 %v4045_v44  ;;  %v4363_v36 = vsel %vm4341_vm0, %v4318_v19, %v4320_v8  ;;  %v4356_v49 = vsel %vm4341_vm0, %v8721_v28, %v8720_v55  ;;  %v8724_v44 = vld [vmem:[#allocation65_spill] sm:$0xff]  ;;  %v8744_v28 = vld [vmem:[#allocation71_spill] sm:$0xff] }
 0x6e0   : > { %4142 = vmatpush1.msra.mxu1 %v4043_v27  ;;  %4214 = vmatprep.subr.mxu0 %v8705_v38  ;;  %v8726_v27 = vld [vmem:[#allocation64_spill] sm:$0xff] }
 0x6e1   : > { %4143 = vmatprep.subr.mxu1 %v4041_v63  ;;  %4215 = vmatpush1.msra.mxu0 %v4042_v20  ;;  %v4322_v54 = vpop.permute.xlu1 %4321  ;;  %v4350_v38 = vsel %vm4341_vm0, %v8726_v27, %v8725_v2  ;;  %v8728_v63 = vld [vmem:[#allocation28_spill] sm:$0xff] }
 0x6e2   : > { %4248 = vmatprep.mubr.f32.mxu0 %v8680_v3  ;;  %4144 = vmatpush1.msra.mxu1 %v4040_v52  ;;  %v4304_v11 = vpop.permute.xlu0 %4303  ;;  %v4365_v47 = vsel %vm4341_vm0, %v4322_v54, %v8713_v29  ;;  %v4364_v59 = vsel %vm4341_vm0, %v4320_v8, %v4322_v54  ;;  %v4360_v8 = vsel %vm4341_vm0, %v8719_v33, %v8717_v24  ;;  %v8729_v20 = vld [vmem:[#allocation32_spill] sm:$0xff]  ;;  %v5023_v52 = vld [vmem:[%s8298_s5 + $0x18] sm:$0xff] }
 0x6e3   : > { %4177 = vmatprep.mubr.f32.mxu1 %v8680_v3  ;;  %5022 = vmatmul.mubr.msk.f32.vlgmr.msra.gmra.mxu0 %vm3667_vm6, %v5020_v25  ;;  %v8731_v54 = vld [vmem:[#allocation20_spill] sm:$0xff] }
 0x6e4   : > { %4498 = vmatprep.subr.mxu0 %v8709_v18  ;;  %5021 = vmatmul.mubr.msk.f32.vlgmr.msra.gmra.mxu1 %vm3667_vm6, %v5020_v25  ;;  %v4347_v25 = vsel %vm4341_vm0, %v8729_v20, %v8728_v63  ;;  %v4346_v18 = vsel %vm4341_vm0, %v8731_v54, %v8729_v20 }
 0x6e5   : > { %4427 = vmatprep.subr.mxu1 %v4370_v6  ;;  %4499 = vmatpush1.msra.mxu0 %v4371_v57  ;;  %v4306_v46 = vpop.permute.xlu1 %4305  ;;  %v8732_v6 = vld [vmem:[#allocation29_spill] sm:$0xff] }
 0x6e6   : > { %4428 = vmatpush1.msra.mxu1 %v4369_v9  ;;  %4500 = vmatprep.subr.mxu0 %v8710_v48  ;;  %v4302_v13 = vpop.permute.xlu0 %4301  ;;  %v4359_v53 = vsel %vm4341_vm0, %v4306_v46, %v8718_v31  ;;  %v4358_v39 = vsel %vm4341_vm0, %v4304_v11, %v4306_v46  ;;  %v8735_v9 = vld [vmem:[#allocation23_spill] sm:$0xff] }
 0x6e7   : > { %4429 = vmatprep.subr.mxu1 %v4367_v34  ;;  %4501 = vmatpush1.msra.mxu0 %v4368_v12  ;;  %v4357_v50 = vsel %vm4341_vm0, %v4302_v13, %v4304_v11  ;;  %v8733_v11 = vld [vmem:[#allocation7_spill] sm:$0xff]  ;;  %v4345_v46 = vsel %vm4341_vm0, %v8735_v9, %v8731_v54 }
 0x6e8   : > { %4430 = vmatpush1.msra.mxu1 %v4366_v23  ;;  %4502 = vmatprep.subr.mxu0 %v8713_v29  ;;  %v4344_v48 = vsel %vm4341_vm0, %v8733_v11, %v8732_v6  ;;  %v8736_v34 = vld [vmem:[#allocation31_spill] sm:$0xff]  ;;  %v8739_v23 = vld [vmem:[#allocation66_spill] sm:$0xff] }
 0x6e9   : > { %4431 = vmatprep.subr.mxu1 %v4364_v59  ;;  %4503 = vmatpush1.msra.mxu0 %v4365_v47  ;;  %v4290_v58 = vpop.permute.xlu1 %4289  ;;  %v4343_v29 = vsel %vm4341_vm0, %v8736_v34, %v8733_v11  ;;  %v8737_v47 = vld [vmem:[#allocation9_spill] sm:$0xff] }
 0x6ea   : > { %4432 = vmatpush1.msra.mxu1 %v4363_v36  ;;  %4504 = vmatprep.subr.mxu0 %v8715_v30  ;;  %v4288_v43 = vpop.permute.xlu0 %4287  ;;  %v4353_v22 = vsel %vm4341_vm0, %v4290_v58, %v8722_v15  ;;  %v4342_v59 = vsel %vm4341_vm0, %v8737_v47, %v8736_v34  ;;  %v4670_v30 = vsel %vm4643_vm7, %v8739_v23, %v8738_v62 }
 0x6eb   : > { %4433 = vmatprep.subr.mxu1 %v4361_v5  ;;  %4505 = vmatpush1.msra.mxu0 %v4362_v37  ;;  %v4352_v41 = vsel %vm4341_vm0, %v4288_v43, %v4290_v58 }
 0x6ec   : > { %4434 = vmatpush1.msra.mxu1 %v4360_v8  ;;  %4506 = vmatprep.subr.mxu0 %v8718_v31  ;;  %v8741_v31 = vld [vmem:[#allocation42_spill] sm:$0xff] }
 0x6ed   : > { %4435 = vmatprep.subr.mxu1 %v4358_v39  ;;  %4507 = vmatpush1.msra.mxu0 %v4359_v53  ;;  %v8176_v40 = vpop.permute.xlu1 %4577  ;;  %v8742_v53 = vld [vmem:[#allocation68_spill] sm:$0xff] }
 0x6ee   : > { %4436 = vmatpush1.msra.mxu1 %v4357_v50  ;;  %4508 = vmatprep.subr.mxu0 %v8720_v55  ;;  %v4286_v17 = vpop.permute.xlu0 %4285  ;;  %v4664_v39 = vsel %vm4643_vm7, %v8742_v53, %v8741_v31  ;;  %v8743_v50 = vld [vmem:[#allocation70_spill] sm:$0xff] }
 0x6ef   : > { %4437 = vmatprep.subr.mxu1 %v8723_v35  ;;  %4509 = vmatpush1.msra.mxu0 %v4356_v49  ;;  %v4351_v56 = vsel %vm4341_vm0, %v4286_v17, %v4288_v43  ;;  %v8745_v17 = vld [vmem:[#allocation72_spill] sm:$0xff] }
 0x6f0   : > { %4438 = vmatpush1.msra.mxu1 %v8724_v44  ;;  %4510 = vmatprep.subr.mxu0 %v8722_v15  ;;  %v4658_v15 = vsel %vm4643_vm7, %v7953_v4, %v7973_v26  ;;  %v4652_v4 = vsel %vm4643_vm7, %v7997_v0, %v8014_v61  ;;  %v5026_v0 = vld [vmem:[%s8298_s5 + $0x20] sm:$0xff] }
 0x6f1   : > { %4511 = vmatpush1.msra.mxu0 %v4353_v22  ;;  %4439 = vmatprep.subr.mxu1 %v4352_v41  ;;  %v4640_v19 = vpop.permute.xlu1 %4639 }
 0x6f2   : > { %4512 = vmatprep.subr.mxu0 %v8725_v2  ;;  %4440 = vmatpush1.msra.mxu1 %v4351_v56  ;;  %v4638_v32 = vpop.permute.xlu0 %4637  ;;  %v4673_v12 = vsel %vm4643_vm7, %v4640_v19, %v8734_v14  ;;  %v8747_v2 = vld [vmem:[#allocation76_spill] sm:$0xff] }
 0x6f3   : > { %4513 = vmatpush1.msra.mxu0 %v4350_v38  ;;  %4441 = vmatprep.subr.mxu1 %v8727_v45  ;;  %v4672_v24 = vsel %vm4643_vm7, %v4638_v32, %v4640_v19 }
 0x6f4   : > { %4514 = vmatprep.subr.mxu0 %v8728_v63  ;;  %4550 = vmatprep.mubr.f32.mxu0 %v8680_v3  ;;  %v8750_v63 = vld [vmem:[#allocation84_spill] sm:$0xff] }
 0x6f5   : > { %4515 = vmatpush1.msra.mxu0 %v4347_v25  ;;  %4442 = vmatpush1.msra.mxu1 %v8730_v1  ;;  %v4624_v57 = vpop.permute.xlu1 %4623 }
 0x6f6   : > { %4516 = vmatprep.subr.mxu0 %v8732_v6  ;;  %4443 = vmatprep.subr.mxu1 %v4346_v18  ;;  %v4636_v10 = vpop.permute.xlu0 %4635  ;;  %v4667_v37 = vsel %vm4643_vm7, %v4624_v57, %v8740_v42 }
 0x6f7   : > { %4517 = vmatpush1.msra.mxu0 %v4344_v48  ;;  %4444 = vmatpush1.msra.mxu1 %v4345_v46  ;;  %v4671_v58 = vsel %vm4643_vm7, %v4636_v10, %v4638_v32  ;;  %v8748_v32 = vld [vmem:[#allocation80_spill] sm:$0xff] }
 0x6f8   : > { %5025 = vmatmul.mubr.msk.f32.vlgmr.msra.gmra.mxu0 %vm3667_vm6, %v5023_v52  ;;  %4800 = vmatprep.subr.mxu0 %v8734_v14 }
 0x6f9   : > { %4801 = vmatpush1.msra.mxu0 %v4673_v12  ;;  %4445 = vmatprep.subr.mxu1 %v4343_v29  ;;  %v4608_v13 = vpop.permute.xlu1 %4607 }
 0x6fa   : > { %4802 = vmatprep.subr.mxu0 %v8738_v62  ;;  %4446 = vmatpush1.msra.mxu1 %v4342_v59  ;;  %v4622_v36 = vpop.permute.xlu0 %4621  ;;  %v4661_v43 = vsel %vm4643_vm7, %v4608_v13, %v7929_v60 }
 0x6fb   : > { %4803 = vmatpush1.msra.mxu0 %v4670_v30  ;;  %4479 = vmatprep.mubr.f32.mxu1 %v8680_v3  ;;  %v4666_v33 = vsel %vm4643_vm7, %v4622_v36, %v4624_v57 }
 0x6fc   : > { %4804 = vmatprep.subr.mxu0 %v8740_v42  ;;  %5024 = vmatmul.mubr.msk.f32.vlgmr.msra.gmra.mxu1 %vm3667_vm6, %v5023_v52 }
 0x6fd   : > { %4729 = vmatprep.subr.mxu1 %v4672_v24  ;;  %4805 = vmatpush1.msra.mxu0 %v4667_v37  ;;  %v4592_v5 = vpop.permute.xlu1 %4591 }
 0x6fe   : > { %4730 = vmatpush1.msra.mxu1 %v4671_v58  ;;  %4806 = vmatprep.subr.mxu0 %v8741_v31  ;;  %v4620_v8 = vpop.permute.xlu0 %4619  ;;  %v4655_v22 = vsel %vm4643_vm7, %v4592_v5, %v7985_v21 }
 0x6ff   : > { %4731 = vmatprep.subr.mxu1 %v8743_v50  ;;  %4807 = vmatpush1.msra.mxu0 %v4664_v39  ;;  %v4665_v55 = vsel %vm4643_vm7, %v4620_v8, %v4622_v36 }
 0x700   : > { %4732 = vmatpush1.msra.mxu1 %v8744_v28  ;;  %4808 = vmatprep.subr.mxu0 %v7929_v60  ;;  %v8746_v60 = vld [vmem:[#allocation73_spill] sm:$0xff] }
 0x701   : > { %4809 = vmatpush1.msra.mxu0 %v4661_v43  ;;  %4733 = vmatprep.subr.mxu1 %v4666_v33  ;;  %v4568_v49 = vpop.permute.xlu1 %4567 }
 0x702   : > { %4810 = vmatprep.subr.mxu0 %v7973_v26  ;;  %4734 = vmatpush1.msra.mxu1 %v4665_v55  ;;  %v4606_v41 = vpop.permute.xlu0 %4605 }
 0x703   : > { %4811 = vmatpush1.msra.mxu0 %v4658_v15  ;;  %4735 = vmatprep.subr.mxu1 %v8745_v17  ;;  %v4660_v35 = vsel %vm4643_vm7, %v4606_v41, %v4608_v13 }
 0x704   : > { %4812 = vmatprep.subr.mxu0 %v7985_v21  ;;  %4736 = vmatpush1.msra.mxu1 %v8746_v60  ;;  %v4649_v21 = vsel %vm4643_vm7, %v8097_v51, %v8176_v40 }
 0x705   : > { %4813 = vmatpush1.msra.mxu0 %v4655_v22  ;;  %4737 = vmatprep.subr.mxu1 %v4660_v35  ;;  %v4570_v56 = vpop.permute.xlu1 %4569 }
 0x706   : > { %4814 = vmatprep.subr.mxu0 %v8014_v61  ;;  %v4604_v26 = vpop.permute.xlu0 %4603  ;;  %4852 = vmatprep.mubr.f32.mxu0 %v8680_v3  ;;  %v4646_v19 = vsel %vm4643_vm7, %v4568_v49, %v4570_v56 }
 0x707   : > { %4815 = vmatpush1.msra.mxu0 %v4652_v4  ;;  %v4659_v44 = vsel %vm4643_vm7, %v4604_v26, %v4606_v41  ;;  %4781 = vmatprep.mubr.f32.mxu1 %v8680_v3 }
 0x708   : > { %4816 = vmatprep.subr.mxu0 %v8176_v40  ;;  %4738 = vmatpush1.msra.mxu1 %v4659_v44 }
 0x709   : > { %4817 = vmatpush1.msra.mxu0 %v4649_v21  ;;  %4739 = vmatprep.subr.mxu1 %v7966_v7  ;;  %v8749_v7 = vld [vmem:[#allocation82_spill] sm:$0xff] }
 0x70a   : > { %4818 = vmatprep.subr.mxu0 %v4570_v56  ;;  %v4590_v61 = vpop.permute.xlu0 %4589  ;;  %4740 = vmatpush1.msra.mxu1 %v8747_v2  ;;  %v4648_v45 = vsel %vm4643_vm7, %v8749_v7, %v8097_v51  ;;  %v4647_v20 = vsel %vm4643_vm7, %v8750_v63, %v8749_v7 }
 0x70b   : > { %4819 = vmatpush1.msra.mxu0 %v4646_v19  ;;  %v4654_v3 = vsel %vm4643_vm7, %v4590_v61, %v4592_v5 }
 0x70c   : > { %5028 = vmatmul.mubr.msk.f32.vlgmr.msra.gmra.mxu0 %vm3667_vm6, %v5026_v0  ;;  %4741 = vmatprep.subr.mxu1 %v4654_v3 }
 0x70e   : > { %v4588_v40 = vpop.permute.xlu0 %4587 }
 0x70f   : > { %v4653_v27 = vsel %vm4643_vm7, %v4588_v40, %v4590_v61 }
 0x710   : > { %4742 = vmatpush1.msra.mxu1 %v4653_v27 }
 0x711   : > { %4743 = vmatprep.subr.mxu1 %v8006_v16 }
 0x712   : > { %v4566_v38 = vpop.permute.xlu0 %4565  ;;  %4744 = vmatpush1.msra.mxu1 %v8748_v32 }
 0x713   : > { %4745 = vmatprep.subr.mxu1 %v4648_v45  ;;  %v4645_v25 = vsel %vm4643_vm7, %v4566_v38, %v4568_v49 }
 0x714   : > { %4746 = vmatpush1.msra.mxu1 %v4647_v20 }
 0x715   : > { %4747 = vmatprep.subr.mxu1 %v4645_v25 }
 0x716   : > { %v4564_v1 = vpop.permute.xlu0 %4563 }
 0x717   : > { %v4644_v52 = vsel %vm4643_vm7, %v4564_v1, %v4566_v38 }
 0x718   : > { %4748 = vmatpush1.msra.mxu1 %v4644_v52 }
 0x719   : > { %5027 = vmatmul.mubr.msk.f32.vlgmr.msra.gmra.mxu1 %vm3667_vm6, %v5026_v0 }
 0x723   : > { %v4867_v42 = vpop.permute.xlu0 %4866 }
 0x778   : > { %v3808_v16 = vpop.f32.mrf.mxu0 }
 0x779   : > { %v3737_v57 = vpop.f32.mrf.mxu1 }
 0x77a   : > { %v3810_v54 = vpop.f32.mrf.mxu0 }
 0x77b   : > { %v3739_v11 = vpop.f32.mrf.mxu1 }
 0x78d   : > { %v3953_v18 = vpop.f32.mrf.mxu0 }
 0x78e   : > { %v3954_v12 = vadd.f32 %v3953_v18, %v3808_v16  ;;  %v3882_v9 = vpop.f32.mrf.mxu1 }
 0x78f   : > { %v3955_v51 = vpop.f32.mrf.mxu0  ;;  %v3883_v53 = vadd.f32 %v3882_v9, %v3737_v57 }
 0x790   : > { %v3956_v46 = vadd.f32 %v3955_v51, %v3810_v54  ;;  %v3884_v29 = vpop.f32.mrf.mxu1 }
 0x791   : > { %v3885_v39 = vadd.f32 %v3884_v29, %v3739_v11 }
 0x7a3   : > { %v4250_v6 = vpop.f32.mrf.mxu0 }
 0x7a4   : > { %v4257_v10 = vadd.f32 %v4250_v6, %v3954_v12  ;;  %v4179_v62 = vpop.f32.mrf.mxu1 }
 0x7a5   : > { %v4252_v48 = vpop.f32.mrf.mxu0  ;;  %v4255_v43 = vadd.f32 %v4179_v62, %v3883_v53 }
 0x7a6   : > { %v4258_v47 = vadd.f32 %v4252_v48, %v3956_v46  ;;  %v4181_v24 = vpop.f32.mrf.mxu1 }
 0x7a7   : > { %v4256_v8 = vadd.f32 %v4181_v24, %v3885_v39 }
 0x7b8   : > { %v4552_v14 = vpop.f32.mrf.mxu0 }
 0x7b9   : > { %v4559_v59 = vadd.f32 %v4552_v14, %v4257_v10 }
 0x7ba   : > { %v4554_v34 = vpop.f32.mrf.mxu0 }
 0x7bb   : > { %v4560_v23 = vadd.f32 %v4554_v34, %v4258_v47 }
 0x7bc   : > { %v4481_v31 = vpop.f32.mrf.mxu1 }
 0x7bd   : > { %v4557_v50 = vadd.f32 %v4481_v31, %v4255_v43 }
 0x7be   : > { %v4483_v33 = vpop.f32.mrf.mxu1 }
 0x7bf   : > { %v4558_v28 = vadd.f32 %v4483_v33, %v4256_v8 }
 0x7cc   : > { %v4854_v13 = vpop.f32.mrf.mxu0 }
 0x7cd   : > { %v4861_v30 = vadd.f32 %v4854_v13, %v4559_v59 }
 0x7ce   : > { %v4856_v37 = vpop.f32.mrf.mxu0 }
 0x7cf   : > { %v4871_v36 = vadd.f32 %v4867_v42, %v4861_v30  ;;  %v4862_v58 = vadd.f32 %v4856_v37, %v4560_v23 }
 0x7d1   : > { %4875 = vst [vmem:[%s278_s21 + $0x10] sm:$0xff] %v4871_v36  ;;  %v4872_v5 = vadd.f32 %v4867_v42, %v4862_v58 }
 0x7d3   : > { %4877 = vst.msk [vmem:[%s278_s21 + $0x18] sm:$0xff] %vm4876_vm13, %v4872_v5 }
 0x7d9   : > { %v4783_v55 = vpop.f32.mrf.mxu1 }
 0x7da   : > { %v4859_v49 = vadd.f32 %v4783_v55, %v4557_v50 }
 0x7db   : > { %v4785_v15 = vpop.f32.mrf.mxu1 }
 0x7dc   : > { %v4869_v22 = vadd.f32 %v4867_v42, %v4859_v49  ;;  %v4860_v41 = vadd.f32 %v4785_v15, %v4558_v28 }
 0x7de   : > { %4873 = vst [vmem:[%s278_s21] sm:$0xff] %v4869_v22  ;;  %v4870_v17 = vadd.f32 %v4867_v42, %v4860_v41 }
 0x7e0   : > { %4874 = vst [vmem:[%s278_s21 + $0x8] sm:$0xff] %v4870_v17 }
 0x7e1 PF: > { %s17_s24 = sadd.s32 1, %s5232_s24  }
 0x7e2   : > { %p14_p4 = scmp.ge.s32.totalorder %s17_s24, 4  }
 0x7e4   :  { %16 = sbr.rel (!%p14_p4) target bundleno = 1 (0x1), region = 88 }

</bundles_post_ra>
